<compile_context>
chip_gen: v5e
topology: v5e:2x2
jax: 0.10.0
libtpu: 0.0.40
codegen_flags: <defaults>
</compile_context>

<pallas_src>
import random

import jax
import jax.numpy as jnp
from jax.experimental import pallas as pl
from jax.experimental.pallas import tpu as pltpu

SOS_token = 0
EOS_token = 1
MAX_LENGTH = 20

HIDDEN = 32
IN_VOCAB = 16
OUT_VOCAB = 16


# ------------------------------ Pallas kernel -------------------------------

def seq2seq_kernel(src_ref, tgt_ref, tf_ref,
                   enc_emb_ref, enc_wih_ref, enc_bih_ref, enc_bhh_ref,
                   dec_emb_ref, dec_wih_ref, dec_whh_ref,
                   dec_bih_ref, dec_bhh_ref, dec_wout_ref, dec_bout_ref,
                   out_ref):
    T, V = out_ref.shape          # target_length, OUT_VOCAB
    L = src_ref.shape[0]          # input_length
    IV = enc_emb_ref.shape[0]     # IN_VOCAB
    f32 = jnp.float32

    # ----------------- Encoder: all L steps as one batched matmul -----------
    # h0 is re-zeroed for every encoder call in the reference, so W_hh @ h = 0
    # and only the b_hh bias survives; every step is independent.
    src_oh = (jax.lax.broadcasted_iota(jnp.int32, (L, IV), 1)
              == src_ref[...]).astype(f32)                                # (L, IV)
    x_enc = jnp.dot(src_oh, enc_emb_ref[...], preferred_element_type=f32)  # (L, H)
    gi_r = jnp.dot(x_enc, enc_wih_ref[0], preferred_element_type=f32) + enc_bih_ref[0]
    gi_z = jnp.dot(x_enc, enc_wih_ref[1], preferred_element_type=f32) + enc_bih_ref[1]
    gi_n = jnp.dot(x_enc, enc_wih_ref[2], preferred_element_type=f32) + enc_bih_ref[2]
    r_e = jax.nn.sigmoid(gi_r + enc_bhh_ref[0])
    z_e = jax.nn.sigmoid(gi_z + enc_bhh_ref[1])
    n_e = jnp.tanh(gi_n + r_e * enc_bhh_ref[2])
    h_all = (1.0 - z_e) * n_e                                             # + z*0
    h = h_all[L - 1:L, :]          # (1, H): only the last step's hidden is used

    # --------------------- Decoder: fused greedy/TF loop ---------------------
    out_ref[...] = jnp.zeros_like(out_ref)   # torch.zeros(target_length, B, V)

    # Hoist weight/bias loads out of the loop (kernel-resident for all steps).
    emb = dec_emb_ref[...]
    wih_r, wih_z, wih_n = dec_wih_ref[0], dec_wih_ref[1], dec_wih_ref[2]
    whh_r, whh_z, whh_n = dec_whh_ref[0], dec_whh_ref[1], dec_whh_ref[2]
    bih_r, bih_z, bih_n = dec_bih_ref[0], dec_bih_ref[1], dec_bih_ref[2]
    bhh_r, bhh_z, bhh_n = dec_bhh_ref[0], dec_bhh_ref[1], dec_bhh_ref[2]
    wout = dec_wout_ref[...]
    bout = dec_bout_ref[...]

    lane_f = jax.lax.broadcasted_iota(jnp.int32, (1, V), 1).astype(f32)   # (1, V)

    x = emb[SOS_token:SOS_token + 1, :]       # decoder_input = [SOS]
    stopped = jnp.zeros((1, 1), f32)          # set once the reference would break

    # Static unroll (tiny trip count) so the scheduler can overlap the GRU
    # matmuls, the output projection and the exp/log (EUP) of log_softmax.
    for t in range(T):
        # GRU cell (PyTorch gate order: r, z, n).
        gr = (jnp.dot(x, wih_r, preferred_element_type=f32) + bih_r
              + jnp.dot(h, whh_r, preferred_element_type=f32) + bhh_r)
        gz = (jnp.dot(x, wih_z, preferred_element_type=f32) + bih_z
              + jnp.dot(h, whh_z, preferred_element_type=f32) + bhh_z)
        rr = jax.nn.sigmoid(gr)
        zz = jax.nn.sigmoid(gz)
        ng = jnp.tanh(jnp.dot(x, wih_n, preferred_element_type=f32) + bih_n
                      + rr * (jnp.dot(h, whh_n, preferred_element_type=f32) + bhh_n))
        h = (1.0 - zz) * ng + zz * h                                      # (1, H)

        # Output projection + log_softmax.
        logits = jnp.dot(h, wout, preferred_element_type=f32) + bout      # (1, V)
        m = jnp.max(logits, axis=-1, keepdims=True)
        s = logits - m
        logp = s - jnp.log(jnp.sum(jnp.exp(s), axis=-1, keepdims=True))

        # outputs[t] = decoder_output; stays zero once the loop has "broken".
        out_ref[pl.ds(t, 1), :] = jnp.where(stopped > 0.0, 0.0, logp)

        # Greedy top-1 (first-max tie-break, like torch argmax/topk).
        is_max = logits == m
        greedy = -jnp.max(jnp.where(is_max, -lane_f, jnp.float32(-V)),
                          axis=-1, keepdims=True)                         # (1, 1)

        # Teacher forcing + next-input embedding via a one-hot matmul
        # (keeps the data-dependent "gather" entirely on-device/in-kernel).
        tf = tf_ref[t]                         # scalar int32 coin flip
        tgt = tgt_ref[t].astype(f32)           # scalar target token id
        next_tok = jnp.where(tf > 0, tgt, greedy)                         # (1, 1)
        next_oh = (lane_f == next_tok).astype(f32)                        # (1, V)
        x = jnp.dot(next_oh, emb, preferred_element_type=f32)             # (1, H)

        # Reference: break if (not teacher_force) and topi == EOS.
        hit_eos = jnp.logical_and(tf == 0, greedy == jnp.float32(EOS_token))
        stopped = jnp.maximum(stopped, hit_eos.astype(f32))


# ------------------------------- wrappers ------------------------------------

def _vmem():
    return pl.BlockSpec(memory_space=pltpu.MemorySpace.VMEM)


def _smem():
    return pl.BlockSpec(memory_space=pltpu.MemorySpace.SMEM)


@jax.jit
def _seq2seq_call(src_col, tgt_ids, tf_mask,
                  enc_emb, enc_wih, enc_bih, enc_bhh,
                  dec_emb, dec_wih, dec_whh, dec_bih, dec_bhh,
                  dec_wout, dec_bout):
    target_length = tgt_ids.shape[0]
    return pl.pallas_call(
        seq2seq_kernel,
        out_shape=jax.ShapeDtypeStruct((target_length, OUT_VOCAB), jnp.float32),
        in_specs=[_vmem(), _smem(), _smem()] + [_vmem()] * 11,
        out_specs=_vmem(),
    )(src_col, tgt_ids, tf_mask,
      enc_emb, enc_wih, enc_bih, enc_bhh,
      dec_emb, dec_wih, dec_whh, dec_bih, dec_bhh, dec_wout, dec_bout)


def seq2seq_forward(source, target, params, teacher_forcing_ratio=0.5):
    """Mirrors Seq2Seq.forward from the PyTorch reference.

    source, target: int32 arrays of shape (seq_len, batch); batch must be 1
    (the reference feeds a single-token decoder input). Returns log-probs of
    shape (target_length, batch, OUT_VOCAB).
    """
    batch_size = target.shape[1]
    target_length = target.shape[0]
    assert batch_size == 1, "reference decoder feeds a single token per step"

    # Teacher-forcing coin flips drawn up front (same host RNG, same order as
    # the reference loop). Steps after an un-forced EOS are zero-masked inside
    # the kernel, reproducing the reference early `break`.
    tf_mask = jnp.asarray(
        [1 if random.random() < teacher_forcing_ratio else 0
         for _ in range(target_length)], dtype=jnp.int32)

    enc, dec = params["encoder"], params["decoder"]
    src_col = source[:, 0:1].astype(jnp.int32)     # (L, 1)
    tgt_ids = target[:, 0].astype(jnp.int32)       # (T,)

    out = _seq2seq_call(src_col, tgt_ids, tf_mask,
                        enc["emb"], enc["wih"], enc["bih"], enc["bhh"],
                        dec["emb"], dec["wih"], dec["whh"], dec["bih"],
                        dec["bhh"], dec["wout"], dec["bout"])
    return out.reshape(target_length, batch_size, OUT_VOCAB)


# --------------------------------- main --------------------------------------

if __name__ == "__main__":
    key = jax.random.PRNGKey(0)
    ks = jax.random.split(key, 13)

    def init(k, shape):
        return (0.1 * jax.random.normal(k, shape)).astype(jnp.float32)

    params = {
        "encoder": {
            "emb": init(ks[0], (IN_VOCAB, HIDDEN)),
            "wih": init(ks[1], (3, HIDDEN, HIDDEN)),      # gates r, z, n
            # whh is unused by the forward pass: the reference zeroes the
            # hidden state on every encoder call, so W_hh @ h == 0.
            "whh": init(ks[2], (3, HIDDEN, HIDDEN)),
            "bih": init(ks[3], (3, 1, HIDDEN)),
            "bhh": init(ks[4], (3, 1, HIDDEN)),
        },
        "decoder": {
            "emb": init(ks[5], (OUT_VOCAB, HIDDEN)),
            "wih": init(ks[6], (3, HIDDEN, HIDDEN)),
            "whh": init(ks[7], (3, HIDDEN, HIDDEN)),
            "bih": init(ks[8], (3, 1, HIDDEN)),
            "bhh": init(ks[9], (3, 1, HIDDEN)),
            "wout": init(ks[10], (HIDDEN, OUT_VOCAB)),
            "bout": init(ks[11], (1, OUT_VOCAB)),
        },
    }

    seq_len, batch = 8, 1   # batch=1 matches the reference single-token decode
    source = jax.random.randint(ks[12], (seq_len, batch), 0, IN_VOCAB,
                                dtype=jnp.int32)
    target = jax.random.randint(jax.random.PRNGKey(1), (seq_len, batch), 0,
                                OUT_VOCAB, dtype=jnp.int32)

    random.seed(0)  # deterministic teacher-forcing decisions
    out = seq2seq_forward(source, target, params, teacher_forcing_ratio=0.5)
    jax.block_until_ready(out)
    print("KERNEL_OK")
</pallas_src>

<mosaic_0001>
module attributes {stable_mosaic.version = 11 : i64} {
  func.func @seq2seq_kernel(%arg0: memref<8x1xi32, #tpu.memory_space<vmem>>, %arg1: memref<8xi32, #tpu.memory_space<smem>>, %arg2: memref<8xi32, #tpu.memory_space<smem>>, %arg3: memref<16x32xf32, #tpu.memory_space<vmem>>, %arg4: memref<3x32x32xf32, #tpu.memory_space<vmem>>, %arg5: memref<3x1x32xf32, #tpu.memory_space<vmem>>, %arg6: memref<3x1x32xf32, #tpu.memory_space<vmem>>, %arg7: memref<16x32xf32, #tpu.memory_space<vmem>>, %arg8: memref<3x32x32xf32, #tpu.memory_space<vmem>>, %arg9: memref<3x32x32xf32, #tpu.memory_space<vmem>>, %arg10: memref<3x1x32xf32, #tpu.memory_space<vmem>>, %arg11: memref<3x1x32xf32, #tpu.memory_space<vmem>>, %arg12: memref<32x16xf32, #tpu.memory_space<vmem>>, %arg13: memref<1x16xf32, #tpu.memory_space<vmem>>, %arg14: memref<8x16xf32, #tpu.memory_space<vmem>>) attributes {dimension_semantics = [], scalar_prefetch = 0 : i64, scratch_operands = 0 : i64, tpu.core_type = #tpu.core_type<tc>} {
    %0 = tpu.iota {dimensions = array<i32: 1>} : vector<8x16xi32>
    %c0 = arith.constant 0 : index
    %c0_0 = arith.constant 0 : index
    %1 = vector.load %arg0[%c0, %c0_0] : memref<8x1xi32, #tpu.memory_space<vmem>>, vector<8x1xi32>
    %2 = vector.broadcast %1 : vector<8x1xi32> to vector<8x16xi32>
    %3 = arith.cmpi eq, %0, %2 : vector<8x16xi32>
    %4 = arith.extui %3 : vector<8x16xi1> to vector<8x16xi32>
    %5 = arith.sitofp %4 : vector<8x16xi32> to vector<8x16xf32>
    %c0_1 = arith.constant 0 : index
    %c0_2 = arith.constant 0 : index
    %6 = vector.load %arg3[%c0_1, %c0_2] : memref<16x32xf32, #tpu.memory_space<vmem>>, vector<16x32xf32>
    %cst = arith.constant dense<0.000000e+00> : vector<8x32xf32>
    %7 = tpu.matmul %5, %6, %cst {dimension_numbers = #tpu.dot_dimension_numbers<[1], [0], [0], [1], [0, 0, 1, 1], [], []>} : vector<8x16xf32>, vector<16x32xf32>, vector<8x32xf32> -> vector<8x32xf32>
    %c0_3 = arith.constant 0 : index
    %c0_4 = arith.constant 0 : index
    %c0_5 = arith.constant 0 : index
    %8 = vector.load %arg4[%c0_3, %c0_4, %c0_5] : memref<3x32x32xf32, #tpu.memory_space<vmem>>, vector<1x32x32xf32>
    %9 = vector.shape_cast %8 : vector<1x32x32xf32> to vector<32x32xf32>
    %cst_6 = arith.constant dense<0.000000e+00> : vector<8x32xf32>
    %10 = tpu.matmul %7, %9, %cst_6 {dimension_numbers = #tpu.dot_dimension_numbers<[1], [0], [0], [1], [0, 0, 1, 1], [], []>} : vector<8x32xf32>, vector<32x32xf32>, vector<8x32xf32> -> vector<8x32xf32>
    %c0_7 = arith.constant 0 : index
    %c0_8 = arith.constant 0 : index
    %c0_9 = arith.constant 0 : index
    %11 = vector.load %arg5[%c0_7, %c0_8, %c0_9] : memref<3x1x32xf32, #tpu.memory_space<vmem>>, vector<1x1x32xf32>
    %12 = vector.shape_cast %11 : vector<1x1x32xf32> to vector<1x32xf32>
    %13 = vector.broadcast %12 : vector<1x32xf32> to vector<8x32xf32>
    %14 = arith.addf %10, %13 : vector<8x32xf32>
    %c1 = arith.constant 1 : index
    %c0_10 = arith.constant 0 : index
    %c0_11 = arith.constant 0 : index
    %15 = vector.load %arg4[%c1, %c0_10, %c0_11] : memref<3x32x32xf32, #tpu.memory_space<vmem>>, vector<1x32x32xf32>
    %16 = vector.shape_cast %15 : vector<1x32x32xf32> to vector<32x32xf32>
    %cst_12 = arith.constant dense<0.000000e+00> : vector<8x32xf32>
    %17 = tpu.matmul %7, %16, %cst_12 {dimension_numbers = #tpu.dot_dimension_numbers<[1], [0], [0], [1], [0, 0, 1, 1], [], []>} : vector<8x32xf32>, vector<32x32xf32>, vector<8x32xf32> -> vector<8x32xf32>
    %c1_13 = arith.constant 1 : index
    %c0_14 = arith.constant 0 : index
    %c0_15 = arith.constant 0 : index
    %18 = vector.load %arg5[%c1_13, %c0_14, %c0_15] : memref<3x1x32xf32, #tpu.memory_space<vmem>>, vector<1x1x32xf32>
    %19 = vector.shape_cast %18 : vector<1x1x32xf32> to vector<1x32xf32>
    %20 = vector.broadcast %19 : vector<1x32xf32> to vector<8x32xf32>
    %21 = arith.addf %17, %20 : vector<8x32xf32>
    %c2 = arith.constant 2 : index
    %c0_16 = arith.constant 0 : index
    %c0_17 = arith.constant 0 : index
    %22 = vector.load %arg4[%c2, %c0_16, %c0_17] : memref<3x32x32xf32, #tpu.memory_space<vmem>>, vector<1x32x32xf32>
    %23 = vector.shape_cast %22 : vector<1x32x32xf32> to vector<32x32xf32>
    %cst_18 = arith.constant dense<0.000000e+00> : vector<8x32xf32>
    %24 = tpu.matmul %7, %23, %cst_18 {dimension_numbers = #tpu.dot_dimension_numbers<[1], [0], [0], [1], [0, 0, 1, 1], [], []>} : vector<8x32xf32>, vector<32x32xf32>, vector<8x32xf32> -> vector<8x32xf32>
    %c2_19 = arith.constant 2 : index
    %c0_20 = arith.constant 0 : index
    %c0_21 = arith.constant 0 : index
    %25 = vector.load %arg5[%c2_19, %c0_20, %c0_21] : memref<3x1x32xf32, #tpu.memory_space<vmem>>, vector<1x1x32xf32>
    %26 = vector.shape_cast %25 : vector<1x1x32xf32> to vector<1x32xf32>
    %27 = vector.broadcast %26 : vector<1x32xf32> to vector<8x32xf32>
    %28 = arith.addf %24, %27 : vector<8x32xf32>
    %c0_22 = arith.constant 0 : index
    %c0_23 = arith.constant 0 : index
    %c0_24 = arith.constant 0 : index
    %29 = vector.load %arg6[%c0_22, %c0_23, %c0_24] : memref<3x1x32xf32, #tpu.memory_space<vmem>>, vector<1x1x32xf32>
    %30 = vector.shape_cast %29 : vector<1x1x32xf32> to vector<1x32xf32>
    %31 = vector.broadcast %30 : vector<1x32xf32> to vector<8x32xf32>
    %32 = arith.addf %14, %31 : vector<8x32xf32>
    %33 = arith.negf %32 : vector<8x32xf32>
    %34 = math.exp %33 : vector<8x32xf32>
    %cst_25 = arith.constant 1.000000e+00 : f32
    %35 = vector.broadcast %cst_25 : f32 to vector<8x32xf32>
    %36 = arith.addf %35, %34 : vector<8x32xf32>
    %37 = arith.divf %35, %36 : vector<8x32xf32>
    %c1_26 = arith.constant 1 : index
    %c0_27 = arith.constant 0 : index
    %c0_28 = arith.constant 0 : index
    %38 = vector.load %arg6[%c1_26, %c0_27, %c0_28] : memref<3x1x32xf32, #tpu.memory_space<vmem>>, vector<1x1x32xf32>
    %39 = vector.shape_cast %38 : vector<1x1x32xf32> to vector<1x32xf32>
    %40 = vector.broadcast %39 : vector<1x32xf32> to vector<8x32xf32>
    %41 = arith.addf %21, %40 : vector<8x32xf32>
    %42 = arith.negf %41 : vector<8x32xf32>
    %43 = math.exp %42 : vector<8x32xf32>
    %cst_29 = arith.constant 1.000000e+00 : f32
    %44 = vector.broadcast %cst_29 : f32 to vector<8x32xf32>
    %45 = arith.addf %44, %43 : vector<8x32xf32>
    %46 = arith.divf %44, %45 : vector<8x32xf32>
    %c2_30 = arith.constant 2 : index
    %c0_31 = arith.constant 0 : index
    %c0_32 = arith.constant 0 : index
    %47 = vector.load %arg6[%c2_30, %c0_31, %c0_32] : memref<3x1x32xf32, #tpu.memory_space<vmem>>, vector<1x1x32xf32>
    %48 = vector.shape_cast %47 : vector<1x1x32xf32> to vector<1x32xf32>
    %49 = vector.broadcast %48 : vector<1x32xf32> to vector<8x32xf32>
    %50 = arith.mulf %37, %49 : vector<8x32xf32>
    %51 = arith.addf %28, %50 : vector<8x32xf32>
    %52 = math.tanh %51 : vector<8x32xf32>
    %cst_33 = arith.constant 1.000000e+00 : f32
    %53 = vector.broadcast %cst_33 : f32 to vector<8x32xf32>
    %54 = arith.subf %53, %46 : vector<8x32xf32>
    %55 = arith.mulf %54, %52 : vector<8x32xf32>
    %56 = vector.extract_strided_slice %55 {offsets = [7, 0], sizes = [1, 32], strides = [1, 1]} : vector<8x32xf32> to vector<1x32xf32>
    %cst_34 = arith.constant 0.000000e+00 : f32
    %57 = vector.broadcast %cst_34 : f32 to vector<8x16xf32>
    %c0_35 = arith.constant 0 : index
    %c0_36 = arith.constant 0 : index
    %58 = vector.load %arg14[%c0_35, %c0_36] : memref<8x16xf32, #tpu.memory_space<vmem>>, vector<8x16xf32>
    tpu.vector_store %arg14[%c0_35, %c0_36], %57 {strides = array<i32>} : memref<8x16xf32, #tpu.memory_space<vmem>>, vector<8x16xf32>,
    %c0_37 = arith.constant 0 : index
    %c0_38 = arith.constant 0 : index
    %59 = vector.load %arg7[%c0_37, %c0_38] : memref<16x32xf32, #tpu.memory_space<vmem>>, vector<16x32xf32>
    %c0_39 = arith.constant 0 : index
    %c0_40 = arith.constant 0 : index
    %c0_41 = arith.constant 0 : index
    %60 = vector.load %arg8[%c0_39, %c0_40, %c0_41] : memref<3x32x32xf32, #tpu.memory_space<vmem>>, vector<1x32x32xf32>
    %61 = vector.shape_cast %60 : vector<1x32x32xf32> to vector<32x32xf32>
    %c1_42 = arith.constant 1 : index
    %c0_43 = arith.constant 0 : index
    %c0_44 = arith.constant 0 : index
    %62 = vector.load %arg8[%c1_42, %c0_43, %c0_44] : memref<3x32x32xf32, #tpu.memory_space<vmem>>, vector<1x32x32xf32>
    %63 = vector.shape_cast %62 : vector<1x32x32xf32> to vector<32x32xf32>
    %c2_45 = arith.constant 2 : index
    %c0_46 = arith.constant 0 : index
    %c0_47 = arith.constant 0 : index
    %64 = vector.load %arg8[%c2_45, %c0_46, %c0_47] : memref<3x32x32xf32, #tpu.memory_space<vmem>>, vector<1x32x32xf32>
    %65 = vector.shape_cast %64 : vector<1x32x32xf32> to vector<32x32xf32>
    %c0_48 = arith.constant 0 : index
    %c0_49 = arith.constant 0 : index
    %c0_50 = arith.constant 0 : index
    %66 = vector.load %arg9[%c0_48, %c0_49, %c0_50] : memref<3x32x32xf32, #tpu.memory_space<vmem>>, vector<1x32x32xf32>
    %67 = vector.shape_cast %66 : vector<1x32x32xf32> to vector<32x32xf32>
    %c1_51 = arith.constant 1 : index
    %c0_52 = arith.constant 0 : index
    %c0_53 = arith.constant 0 : index
    %68 = vector.load %arg9[%c1_51, %c0_52, %c0_53] : memref<3x32x32xf32, #tpu.memory_space<vmem>>, vector<1x32x32xf32>
    %69 = vector.shape_cast %68 : vector<1x32x32xf32> to vector<32x32xf32>
    %c2_54 = arith.constant 2 : index
    %c0_55 = arith.constant 0 : index
    %c0_56 = arith.constant 0 : index
    %70 = vector.load %arg9[%c2_54, %c0_55, %c0_56] : memref<3x32x32xf32, #tpu.memory_space<vmem>>, vector<1x32x32xf32>
    %71 = vector.shape_cast %70 : vector<1x32x32xf32> to vector<32x32xf32>
    %c0_57 = arith.constant 0 : index
    %c0_58 = arith.constant 0 : index
    %c0_59 = arith.constant 0 : index
    %72 = vector.load %arg10[%c0_57, %c0_58, %c0_59] : memref<3x1x32xf32, #tpu.memory_space<vmem>>, vector<1x1x32xf32>
    %73 = vector.shape_cast %72 : vector<1x1x32xf32> to vector<1x32xf32>
    %c1_60 = arith.constant 1 : index
    %c0_61 = arith.constant 0 : index
    %c0_62 = arith.constant 0 : index
    %74 = vector.load %arg10[%c1_60, %c0_61, %c0_62] : memref<3x1x32xf32, #tpu.memory_space<vmem>>, vector<1x1x32xf32>
    %75 = vector.shape_cast %74 : vector<1x1x32xf32> to vector<1x32xf32>
    %c2_63 = arith.constant 2 : index
    %c0_64 = arith.constant 0 : index
    %c0_65 = arith.constant 0 : index
    %76 = vector.load %arg10[%c2_63, %c0_64, %c0_65] : memref<3x1x32xf32, #tpu.memory_space<vmem>>, vector<1x1x32xf32>
    %77 = vector.shape_cast %76 : vector<1x1x32xf32> to vector<1x32xf32>
    %c0_66 = arith.constant 0 : index
    %c0_67 = arith.constant 0 : index
    %c0_68 = arith.constant 0 : index
    %78 = vector.load %arg11[%c0_66, %c0_67, %c0_68] : memref<3x1x32xf32, #tpu.memory_space<vmem>>, vector<1x1x32xf32>
    %79 = vector.shape_cast %78 : vector<1x1x32xf32> to vector<1x32xf32>
    %c1_69 = arith.constant 1 : index
    %c0_70 = arith.constant 0 : index
    %c0_71 = arith.constant 0 : index
    %80 = vector.load %arg11[%c1_69, %c0_70, %c0_71] : memref<3x1x32xf32, #tpu.memory_space<vmem>>, vector<1x1x32xf32>
    %81 = vector.shape_cast %80 : vector<1x1x32xf32> to vector<1x32xf32>
    %c2_72 = arith.constant 2 : index
    %c0_73 = arith.constant 0 : index
    %c0_74 = arith.constant 0 : index
    %82 = vector.load %arg11[%c2_72, %c0_73, %c0_74] : memref<3x1x32xf32, #tpu.memory_space<vmem>>, vector<1x1x32xf32>
    %83 = vector.shape_cast %82 : vector<1x1x32xf32> to vector<1x32xf32>
    %c0_75 = arith.constant 0 : index
    %c0_76 = arith.constant 0 : index
    %84 = vector.load %arg12[%c0_75, %c0_76] : memref<32x16xf32, #tpu.memory_space<vmem>>, vector<32x16xf32>
    %c0_77 = arith.constant 0 : index
    %c0_78 = arith.constant 0 : index
    %85 = vector.load %arg13[%c0_77, %c0_78] : memref<1x16xf32, #tpu.memory_space<vmem>>, vector<1x16xf32>
    %86 = tpu.iota {dimensions = array<i32: 1>} : vector<1x16xi32>
    %87 = arith.sitofp %86 : vector<1x16xi32> to vector<1x16xf32>
    %88 = vector.extract_strided_slice %59 {offsets = [0, 0], sizes = [1, 32], strides = [1, 1]} : vector<16x32xf32> to vector<1x32xf32>
    %cst_79 = arith.constant 0.000000e+00 : f32
    %89 = vector.broadcast %cst_79 : f32 to vector<1x1xf32>
    %cst_80 = arith.constant dense<0.000000e+00> : vector<1x32xf32>
    %90 = tpu.matmul %88, %61, %cst_80 {dimension_numbers = #tpu.dot_dimension_numbers<[1], [0], [0], [1], [0, 0, 1, 1], [], []>} : vector<1x32xf32>, vector<32x32xf32>, vector<1x32xf32> -> vector<1x32xf32>
    %91 = arith.addf %90, %73 : vector<1x32xf32>
    %cst_81 = arith.constant dense<0.000000e+00> : vector<1x32xf32>
    %92 = tpu.matmul %56, %67, %cst_81 {dimension_numbers = #tpu.dot_dimension_numbers<[1], [0], [0], [1], [0, 0, 1, 1], [], []>} : vector<1x32xf32>, vector<32x32xf32>, vector<1x32xf32> -> vector<1x32xf32>
    %93 = arith.addf %91, %92 : vector<1x32xf32>
    %94 = arith.addf %93, %79 : vector<1x32xf32>
    %cst_82 = arith.constant dense<0.000000e+00> : vector<1x32xf32>
    %95 = tpu.matmul %88, %63, %cst_82 {dimension_numbers = #tpu.dot_dimension_numbers<[1], [0], [0], [1], [0, 0, 1, 1], [], []>} : vector<1x32xf32>, vector<32x32xf32>, vector<1x32xf32> -> vector<1x32xf32>
    %96 = arith.addf %95, %75 : vector<1x32xf32>
    %cst_83 = arith.constant dense<0.000000e+00> : vector<1x32xf32>
    %97 = tpu.matmul %56, %69, %cst_83 {dimension_numbers = #tpu.dot_dimension_numbers<[1], [0], [0], [1], [0, 0, 1, 1], [], []>} : vector<1x32xf32>, vector<32x32xf32>, vector<1x32xf32> -> vector<1x32xf32>
    %98 = arith.addf %96, %97 : vector<1x32xf32>
    %99 = arith.addf %98, %81 : vector<1x32xf32>
    %100 = arith.negf %94 : vector<1x32xf32>
    %101 = math.exp %100 : vector<1x32xf32>
    %cst_84 = arith.constant 1.000000e+00 : f32
    %102 = vector.broadcast %cst_84 : f32 to vector<1x32xf32>
    %103 = arith.addf %102, %101 : vector<1x32xf32>
    %104 = arith.divf %102, %103 : vector<1x32xf32>
    %105 = arith.negf %99 : vector<1x32xf32>
    %106 = math.exp %105 : vector<1x32xf32>
    %cst_85 = arith.constant 1.000000e+00 : f32
    %107 = vector.broadcast %cst_85 : f32 to vector<1x32xf32>
    %108 = arith.addf %107, %106 : vector<1x32xf32>
    %109 = arith.divf %107, %108 : vector<1x32xf32>
    %cst_86 = arith.constant dense<0.000000e+00> : vector<1x32xf32>
    %110 = tpu.matmul %88, %65, %cst_86 {dimension_numbers = #tpu.dot_dimension_numbers<[1], [0], [0], [1], [0, 0, 1, 1], [], []>} : vector<1x32xf32>, vector<32x32xf32>, vector<1x32xf32> -> vector<1x32xf32>
    %111 = arith.addf %110, %77 : vector<1x32xf32>
    %cst_87 = arith.constant dense<0.000000e+00> : vector<1x32xf32>
    %112 = tpu.matmul %56, %71, %cst_87 {dimension_numbers = #tpu.dot_dimension_numbers<[1], [0], [0], [1], [0, 0, 1, 1], [], []>} : vector<1x32xf32>, vector<32x32xf32>, vector<1x32xf32> -> vector<1x32xf32>
    %113 = arith.addf %112, %83 : vector<1x32xf32>
    %114 = arith.mulf %104, %113 : vector<1x32xf32>
    %115 = arith.addf %111, %114 : vector<1x32xf32>
    %116 = math.tanh %115 : vector<1x32xf32>
    %cst_88 = arith.constant 1.000000e+00 : f32
    %117 = vector.broadcast %cst_88 : f32 to vector<1x32xf32>
    %118 = arith.subf %117, %109 : vector<1x32xf32>
    %119 = arith.mulf %118, %116 : vector<1x32xf32>
    %120 = arith.mulf %109, %56 : vector<1x32xf32>
    %121 = arith.addf %119, %120 : vector<1x32xf32>
    %cst_89 = arith.constant dense<0.000000e+00> : vector<1x16xf32>
    %122 = tpu.matmul %121, %84, %cst_89 {dimension_numbers = #tpu.dot_dimension_numbers<[1], [0], [0], [1], [0, 0, 1, 1], [], []>} : vector<1x32xf32>, vector<32x16xf32>, vector<1x16xf32> -> vector<1x16xf32>
    %123 = arith.addf %122, %85 : vector<1x16xf32>
    %cst_90 = arith.constant dense<0xFF800000> : vector<1xf32>
    %124 = vector.multi_reduction <maximumf>, %123, %cst_90 [1] : vector<1x16xf32> to vector<1xf32>
    %125 = vector.shape_cast %124 : vector<1xf32> to vector<1x1xf32>
    %126 = vector.broadcast %125 : vector<1x1xf32> to vector<1x16xf32>
    %127 = arith.subf %123, %126 : vector<1x16xf32>
    %128 = math.exp %127 : vector<1x16xf32>
    %cst_91 = arith.constant dense<0.000000e+00> : vector<1xf32>
    %129 = vector.multi_reduction <add>, %128, %cst_91 [1] : vector<1x16xf32> to vector<1xf32>
    %130 = vector.shape_cast %129 : vector<1xf32> to vector<1x1xf32>
    %131 = math.log %130 : vector<1x1xf32>
    %132 = vector.broadcast %131 : vector<1x1xf32> to vector<1x16xf32>
    %133 = arith.subf %127, %132 : vector<1x16xf32>
    %cst_92 = arith.constant 0.000000e+00 : f32
    %134 = vector.broadcast %cst_92 : f32 to vector<1x1xf32>
    %135 = arith.cmpf ogt, %89, %134 : vector<1x1xf32>
    %cst_93 = arith.constant 0.000000e+00 : f32
    %136 = vector.shape_cast %135 : vector<1x1xi1> to vector<1x1xi1>
    %137 = vector.broadcast %136 : vector<1x1xi1> to vector<1x16xi1>
    %138 = vector.broadcast %cst_93 : f32 to vector<1x16xf32>
    %139 = arith.select %137, %138, %133 : vector<1x16xi1>, vector<1x16xf32>
    %c0_94 = arith.constant 0 : index
    %c0_95 = arith.constant 0 : index
    %140 = vector.load %arg14[%c0_94, %c0_95] : memref<8x16xf32, #tpu.memory_space<vmem>>, vector<1x16xf32>
    tpu.vector_store %arg14[%c0_94, %c0_95], %139 {strides = array<i32>} : memref<8x16xf32, #tpu.memory_space<vmem>>, vector<1x16xf32>,
    %141 = vector.broadcast %125 : vector<1x1xf32> to vector<1x16xf32>
    %142 = arith.cmpf oeq, %123, %141 : vector<1x16xf32>
    %cst_96 = arith.constant 0.000000e+00 : f32
    %143 = vector.broadcast %cst_96 : f32 to vector<1x16xf32>
    %144 = arith.subf %143, %87 : vector<1x16xf32>
    %cst_97 = arith.constant -1.600000e+01 : f32
    %145 = vector.broadcast %cst_97 : f32 to vector<1x16xf32>
    %146 = arith.select %142, %144, %145 : vector<1x16xi1>, vector<1x16xf32>
    %cst_98 = arith.constant dense<0xFF800000> : vector<1xf32>
    %147 = vector.multi_reduction <maximumf>, %146, %cst_98 [1] : vector<1x16xf32> to vector<1xf32>
    %148 = vector.shape_cast %147 : vector<1xf32> to vector<1x1xf32>
    %cst_99 = arith.constant 0.000000e+00 : f32
    %149 = vector.broadcast %cst_99 : f32 to vector<1x1xf32>
    %150 = arith.subf %149, %148 : vector<1x1xf32>
    %c0_100 = arith.constant 0 : index
    %151 = memref.load %arg2[%c0_100] : memref<8xi32, #tpu.memory_space<smem>>
    %c0_101 = arith.constant 0 : index
    %152 = memref.load %arg1[%c0_101] : memref<8xi32, #tpu.memory_space<smem>>
    %153 = arith.sitofp %152 : i32 to f32
    %c0_i32 = arith.constant 0 : i32
    %154 = arith.cmpi sgt, %151, %c0_i32 : i32
    %155 = vector.broadcast %153 : f32 to vector<1x1xf32>
    %156 = arith.select %154, %155, %150 : vector<1x1xf32>
    %157 = vector.broadcast %156 : vector<1x1xf32> to vector<1x16xf32>
    %158 = arith.cmpf oeq, %87, %157 : vector<1x16xf32>
    %159 = arith.extui %158 : vector<1x16xi1> to vector<1x16xi32>
    %160 = arith.sitofp %159 : vector<1x16xi32> to vector<1x16xf32>
    %cst_102 = arith.constant dense<0.000000e+00> : vector<1x32xf32>
    %161 = tpu.matmul %160, %59, %cst_102 {dimension_numbers = #tpu.dot_dimension_numbers<[1], [0], [0], [1], [0, 0, 1, 1], [], []>} : vector<1x16xf32>, vector<16x32xf32>, vector<1x32xf32> -> vector<1x32xf32>
    %c0_i32_103 = arith.constant 0 : i32
    %162 = arith.cmpi eq, %151, %c0_i32_103 : i32
    %cst_104 = arith.constant 1.000000e+00 : f32
    %163 = vector.broadcast %cst_104 : f32 to vector<1x1xf32>
    %164 = arith.cmpf oeq, %150, %163 : vector<1x1xf32>
    %165 = vector.broadcast %162 : i1 to vector<1x1xi1>
    %166 = arith.andi %165, %164 : vector<1x1xi1>
    %167 = arith.extui %166 : vector<1x1xi1> to vector<1x1xi32>
    %168 = arith.sitofp %167 : vector<1x1xi32> to vector<1x1xf32>
    %169 = arith.maximumf %89, %168 : vector<1x1xf32>
    %cst_105 = arith.constant dense<0.000000e+00> : vector<1x32xf32>
    %170 = tpu.matmul %161, %61, %cst_105 {dimension_numbers = #tpu.dot_dimension_numbers<[1], [0], [0], [1], [0, 0, 1, 1], [], []>} : vector<1x32xf32>, vector<32x32xf32>, vector<1x32xf32> -> vector<1x32xf32>
    %171 = arith.addf %170, %73 : vector<1x32xf32>
    %cst_106 = arith.constant dense<0.000000e+00> : vector<1x32xf32>
    %172 = tpu.matmul %121, %67, %cst_106 {dimension_numbers = #tpu.dot_dimension_numbers<[1], [0], [0], [1], [0, 0, 1, 1], [], []>} : vector<1x32xf32>, vector<32x32xf32>, vector<1x32xf32> -> vector<1x32xf32>
    %173 = arith.addf %171, %172 : vector<1x32xf32>
    %174 = arith.addf %173, %79 : vector<1x32xf32>
    %cst_107 = arith.constant dense<0.000000e+00> : vector<1x32xf32>
    %175 = tpu.matmul %161, %63, %cst_107 {dimension_numbers = #tpu.dot_dimension_numbers<[1], [0], [0], [1], [0, 0, 1, 1], [], []>} : vector<1x32xf32>, vector<32x32xf32>, vector<1x32xf32> -> vector<1x32xf32>
    %176 = arith.addf %175, %75 : vector<1x32xf32>
    %cst_108 = arith.constant dense<0.000000e+00> : vector<1x32xf32>
    %177 = tpu.matmul %121, %69, %cst_108 {dimension_numbers = #tpu.dot_dimension_numbers<[1], [0], [0], [1], [0, 0, 1, 1], [], []>} : vector<1x32xf32>, vector<32x32xf32>, vector<1x32xf32> -> vector<1x32xf32>
    %178 = arith.addf %176, %177 : vector<1x32xf32>
    %179 = arith.addf %178, %81 : vector<1x32xf32>
    %180 = arith.negf %174 : vector<1x32xf32>
    %181 = math.exp %180 : vector<1x32xf32>
    %cst_109 = arith.constant 1.000000e+00 : f32
    %182 = vector.broadcast %cst_109 : f32 to vector<1x32xf32>
    %183 = arith.addf %182, %181 : vector<1x32xf32>
    %184 = arith.divf %182, %183 : vector<1x32xf32>
    %185 = arith.negf %179 : vector<1x32xf32>
    %186 = math.exp %185 : vector<1x32xf32>
    %cst_110 = arith.constant 1.000000e+00 : f32
    %187 = vector.broadcast %cst_110 : f32 to vector<1x32xf32>
    %188 = arith.addf %187, %186 : vector<1x32xf32>
    %189 = arith.divf %187, %188 : vector<1x32xf32>
    %cst_111 = arith.constant dense<0.000000e+00> : vector<1x32xf32>
    %190 = tpu.matmul %161, %65, %cst_111 {dimension_numbers = #tpu.dot_dimension_numbers<[1], [0], [0], [1], [0, 0, 1, 1], [], []>} : vector<1x32xf32>, vector<32x32xf32>, vector<1x32xf32> -> vector<1x32xf32>
    %191 = arith.addf %190, %77 : vector<1x32xf32>
    %cst_112 = arith.constant dense<0.000000e+00> : vector<1x32xf32>
    %192 = tpu.matmul %121, %71, %cst_112 {dimension_numbers = #tpu.dot_dimension_numbers<[1], [0], [0], [1], [0, 0, 1, 1], [], []>} : vector<1x32xf32>, vector<32x32xf32>, vector<1x32xf32> -> vector<1x32xf32>
    %193 = arith.addf %192, %83 : vector<1x32xf32>
    %194 = arith.mulf %184, %193 : vector<1x32xf32>
    %195 = arith.addf %191, %194 : vector<1x32xf32>
    %196 = math.tanh %195 : vector<1x32xf32>
    %cst_113 = arith.constant 1.000000e+00 : f32
    %197 = vector.broadcast %cst_113 : f32 to vector<1x32xf32>
    %198 = arith.subf %197, %189 : vector<1x32xf32>
    %199 = arith.mulf %198, %196 : vector<1x32xf32>
    %200 = arith.mulf %189, %121 : vector<1x32xf32>
    %201 = arith.addf %199, %200 : vector<1x32xf32>
    %cst_114 = arith.constant dense<0.000000e+00> : vector<1x16xf32>
    %202 = tpu.matmul %201, %84, %cst_114 {dimension_numbers = #tpu.dot_dimension_numbers<[1], [0], [0], [1], [0, 0, 1, 1], [], []>} : vector<1x32xf32>, vector<32x16xf32>, vector<1x16xf32> -> vector<1x16xf32>
    %203 = arith.addf %202, %85 : vector<1x16xf32>
    %cst_115 = arith.constant dense<0xFF800000> : vector<1xf32>
    %204 = vector.multi_reduction <maximumf>, %203, %cst_115 [1] : vector<1x16xf32> to vector<1xf32>
    %205 = vector.shape_cast %204 : vector<1xf32> to vector<1x1xf32>
    %206 = vector.broadcast %205 : vector<1x1xf32> to vector<1x16xf32>
    %207 = arith.subf %203, %206 : vector<1x16xf32>
    %208 = math.exp %207 : vector<1x16xf32>
    %cst_116 = arith.constant dense<0.000000e+00> : vector<1xf32>
    %209 = vector.multi_reduction <add>, %208, %cst_116 [1] : vector<1x16xf32> to vector<1xf32>
    %210 = vector.shape_cast %209 : vector<1xf32> to vector<1x1xf32>
    %211 = math.log %210 : vector<1x1xf32>
    %212 = vector.broadcast %211 : vector<1x1xf32> to vector<1x16xf32>
    %213 = arith.subf %207, %212 : vector<1x16xf32>
    %cst_117 = arith.constant 0.000000e+00 : f32
    %214 = vector.broadcast %cst_117 : f32 to vector<1x1xf32>
    %215 = arith.cmpf ogt, %169, %214 : vector<1x1xf32>
    %cst_118 = arith.constant 0.000000e+00 : f32
    %216 = vector.shape_cast %215 : vector<1x1xi1> to vector<1x1xi1>
    %217 = vector.broadcast %216 : vector<1x1xi1> to vector<1x16xi1>
    %218 = vector.broadcast %cst_118 : f32 to vector<1x16xf32>
    %219 = arith.select %217, %218, %213 : vector<1x16xi1>, vector<1x16xf32>
    %c1_119 = arith.constant 1 : index
    %c0_120 = arith.constant 0 : index
    %220 = vector.load %arg14[%c1_119, %c0_120] : memref<8x16xf32, #tpu.memory_space<vmem>>, vector<1x16xf32>
    tpu.vector_store %arg14[%c1_119, %c0_120], %219 {strides = array<i32>} : memref<8x16xf32, #tpu.memory_space<vmem>>, vector<1x16xf32>,
    %221 = vector.broadcast %205 : vector<1x1xf32> to vector<1x16xf32>
    %222 = arith.cmpf oeq, %203, %221 : vector<1x16xf32>
    %cst_121 = arith.constant 0.000000e+00 : f32
    %223 = vector.broadcast %cst_121 : f32 to vector<1x16xf32>
    %224 = arith.subf %223, %87 : vector<1x16xf32>
    %cst_122 = arith.constant -1.600000e+01 : f32
    %225 = vector.broadcast %cst_122 : f32 to vector<1x16xf32>
    %226 = arith.select %222, %224, %225 : vector<1x16xi1>, vector<1x16xf32>
    %cst_123 = arith.constant dense<0xFF800000> : vector<1xf32>
    %227 = vector.multi_reduction <maximumf>, %226, %cst_123 [1] : vector<1x16xf32> to vector<1xf32>
    %228 = vector.shape_cast %227 : vector<1xf32> to vector<1x1xf32>
    %cst_124 = arith.constant 0.000000e+00 : f32
    %229 = vector.broadcast %cst_124 : f32 to vector<1x1xf32>
    %230 = arith.subf %229, %228 : vector<1x1xf32>
    %c1_125 = arith.constant 1 : index
    %231 = memref.load %arg2[%c1_125] : memref<8xi32, #tpu.memory_space<smem>>
    %c1_126 = arith.constant 1 : index
    %232 = memref.load %arg1[%c1_126] : memref<8xi32, #tpu.memory_space<smem>>
    %233 = arith.sitofp %232 : i32 to f32
    %c0_i32_127 = arith.constant 0 : i32
    %234 = arith.cmpi sgt, %231, %c0_i32_127 : i32
    %235 = vector.broadcast %233 : f32 to vector<1x1xf32>
    %236 = arith.select %234, %235, %230 : vector<1x1xf32>
    %237 = vector.broadcast %236 : vector<1x1xf32> to vector<1x16xf32>
    %238 = arith.cmpf oeq, %87, %237 : vector<1x16xf32>
    %239 = arith.extui %238 : vector<1x16xi1> to vector<1x16xi32>
    %240 = arith.sitofp %239 : vector<1x16xi32> to vector<1x16xf32>
    %cst_128 = arith.constant dense<0.000000e+00> : vector<1x32xf32>
    %241 = tpu.matmul %240, %59, %cst_128 {dimension_numbers = #tpu.dot_dimension_numbers<[1], [0], [0], [1], [0, 0, 1, 1], [], []>} : vector<1x16xf32>, vector<16x32xf32>, vector<1x32xf32> -> vector<1x32xf32>
    %c0_i32_129 = arith.constant 0 : i32
    %242 = arith.cmpi eq, %231, %c0_i32_129 : i32
    %cst_130 = arith.constant 1.000000e+00 : f32
    %243 = vector.broadcast %cst_130 : f32 to vector<1x1xf32>
    %244 = arith.cmpf oeq, %230, %243 : vector<1x1xf32>
    %245 = vector.broadcast %242 : i1 to vector<1x1xi1>
    %246 = arith.andi %245, %244 : vector<1x1xi1>
    %247 = arith.extui %246 : vector<1x1xi1> to vector<1x1xi32>
    %248 = arith.sitofp %247 : vector<1x1xi32> to vector<1x1xf32>
    %249 = arith.maximumf %169, %248 : vector<1x1xf32>
    %cst_131 = arith.constant dense<0.000000e+00> : vector<1x32xf32>
    %250 = tpu.matmul %241, %61, %cst_131 {dimension_numbers = #tpu.dot_dimension_numbers<[1], [0], [0], [1], [0, 0, 1, 1], [], []>} : vector<1x32xf32>, vector<32x32xf32>, vector<1x32xf32> -> vector<1x32xf32>
    %251 = arith.addf %250, %73 : vector<1x32xf32>
    %cst_132 = arith.constant dense<0.000000e+00> : vector<1x32xf32>
    %252 = tpu.matmul %201, %67, %cst_132 {dimension_numbers = #tpu.dot_dimension_numbers<[1], [0], [0], [1], [0, 0, 1, 1], [], []>} : vector<1x32xf32>, vector<32x32xf32>, vector<1x32xf32> -> vector<1x32xf32>
    %253 = arith.addf %251, %252 : vector<1x32xf32>
    %254 = arith.addf %253, %79 : vector<1x32xf32>
    %cst_133 = arith.constant dense<0.000000e+00> : vector<1x32xf32>
    %255 = tpu.matmul %241, %63, %cst_133 {dimension_numbers = #tpu.dot_dimension_numbers<[1], [0], [0], [1], [0, 0, 1, 1], [], []>} : vector<1x32xf32>, vector<32x32xf32>, vector<1x32xf32> -> vector<1x32xf32>
    %256 = arith.addf %255, %75 : vector<1x32xf32>
    %cst_134 = arith.constant dense<0.000000e+00> : vector<1x32xf32>
    %257 = tpu.matmul %201, %69, %cst_134 {dimension_numbers = #tpu.dot_dimension_numbers<[1], [0], [0], [1], [0, 0, 1, 1], [], []>} : vector<1x32xf32>, vector<32x32xf32>, vector<1x32xf32> -> vector<1x32xf32>
    %258 = arith.addf %256, %257 : vector<1x32xf32>
    %259 = arith.addf %258, %81 : vector<1x32xf32>
    %260 = arith.negf %254 : vector<1x32xf32>
    %261 = math.exp %260 : vector<1x32xf32>
    %cst_135 = arith.constant 1.000000e+00 : f32
    %262 = vector.broadcast %cst_135 : f32 to vector<1x32xf32>
    %263 = arith.addf %262, %261 : vector<1x32xf32>
    %264 = arith.divf %262, %263 : vector<1x32xf32>
    %265 = arith.negf %259 : vector<1x32xf32>
    %266 = math.exp %265 : vector<1x32xf32>
    %cst_136 = arith.constant 1.000000e+00 : f32
    %267 = vector.broadcast %cst_136 : f32 to vector<1x32xf32>
    %268 = arith.addf %267, %266 : vector<1x32xf32>
    %269 = arith.divf %267, %268 : vector<1x32xf32>
    %cst_137 = arith.constant dense<0.000000e+00> : vector<1x32xf32>
    %270 = tpu.matmul %241, %65, %cst_137 {dimension_numbers = #tpu.dot_dimension_numbers<[1], [0], [0], [1], [0, 0, 1, 1], [], []>} : vector<1x32xf32>, vector<32x32xf32>, vector<1x32xf32> -> vector<1x32xf32>
    %271 = arith.addf %270, %77 : vector<1x32xf32>
    %cst_138 = arith.constant dense<0.000000e+00> : vector<1x32xf32>
    %272 = tpu.matmul %201, %71, %cst_138 {dimension_numbers = #tpu.dot_dimension_numbers<[1], [0], [0], [1], [0, 0, 1, 1], [], []>} : vector<1x32xf32>, vector<32x32xf32>, vector<1x32xf32> -> vector<1x32xf32>
    %273 = arith.addf %272, %83 : vector<1x32xf32>
    %274 = arith.mulf %264, %273 : vector<1x32xf32>
    %275 = arith.addf %271, %274 : vector<1x32xf32>
    %276 = math.tanh %275 : vector<1x32xf32>
    %cst_139 = arith.constant 1.000000e+00 : f32
    %277 = vector.broadcast %cst_139 : f32 to vector<1x32xf32>
    %278 = arith.subf %277, %269 : vector<1x32xf32>
    %279 = arith.mulf %278, %276 : vector<1x32xf32>
    %280 = arith.mulf %269, %201 : vector<1x32xf32>
    %281 = arith.addf %279, %280 : vector<1x32xf32>
    %cst_140 = arith.constant dense<0.000000e+00> : vector<1x16xf32>
    %282 = tpu.matmul %281, %84, %cst_140 {dimension_numbers = #tpu.dot_dimension_numbers<[1], [0], [0], [1], [0, 0, 1, 1], [], []>} : vector<1x32xf32>, vector<32x16xf32>, vector<1x16xf32> -> vector<1x16xf32>
    %283 = arith.addf %282, %85 : vector<1x16xf32>
    %cst_141 = arith.constant dense<0xFF800000> : vector<1xf32>
    %284 = vector.multi_reduction <maximumf>, %283, %cst_141 [1] : vector<1x16xf32> to vector<1xf32>
    %285 = vector.shape_cast %284 : vector<1xf32> to vector<1x1xf32>
    %286 = vector.broadcast %285 : vector<1x1xf32> to vector<1x16xf32>
    %287 = arith.subf %283, %286 : vector<1x16xf32>
    %288 = math.exp %287 : vector<1x16xf32>
    %cst_142 = arith.constant dense<0.000000e+00> : vector<1xf32>
    %289 = vector.multi_reduction <add>, %288, %cst_142 [1] : vector<1x16xf32> to vector<1xf32>
    %290 = vector.shape_cast %289 : vector<1xf32> to vector<1x1xf32>
    %291 = math.log %290 : vector<1x1xf32>
    %292 = vector.broadcast %291 : vector<1x1xf32> to vector<1x16xf32>
    %293 = arith.subf %287, %292 : vector<1x16xf32>
    %cst_143 = arith.constant 0.000000e+00 : f32
    %294 = vector.broadcast %cst_143 : f32 to vector<1x1xf32>
    %295 = arith.cmpf ogt, %249, %294 : vector<1x1xf32>
    %cst_144 = arith.constant 0.000000e+00 : f32
    %296 = vector.shape_cast %295 : vector<1x1xi1> to vector<1x1xi1>
    %297 = vector.broadcast %296 : vector<1x1xi1> to vector<1x16xi1>
    %298 = vector.broadcast %cst_144 : f32 to vector<1x16xf32>
    %299 = arith.select %297, %298, %293 : vector<1x16xi1>, vector<1x16xf32>
    %c2_145 = arith.constant 2 : index
    %c0_146 = arith.constant 0 : index
    %300 = vector.load %arg14[%c2_145, %c0_146] : memref<8x16xf32, #tpu.memory_space<vmem>>, vector<1x16xf32>
    tpu.vector_store %arg14[%c2_145, %c0_146], %299 {strides = array<i32>} : memref<8x16xf32, #tpu.memory_space<vmem>>, vector<1x16xf32>,
    %301 = vector.broadcast %285 : vector<1x1xf32> to vector<1x16xf32>
    %302 = arith.cmpf oeq, %283, %301 : vector<1x16xf32>
    %cst_147 = arith.constant 0.000000e+00 : f32
    %303 = vector.broadcast %cst_147 : f32 to vector<1x16xf32>
    %304 = arith.subf %303, %87 : vector<1x16xf32>
    %cst_148 = arith.constant -1.600000e+01 : f32
    %305 = vector.broadcast %cst_148 : f32 to vector<1x16xf32>
    %306 = arith.select %302, %304, %305 : vector<1x16xi1>, vector<1x16xf32>
    %cst_149 = arith.constant dense<0xFF800000> : vector<1xf32>
    %307 = vector.multi_reduction <maximumf>, %306, %cst_149 [1] : vector<1x16xf32> to vector<1xf32>
    %308 = vector.shape_cast %307 : vector<1xf32> to vector<1x1xf32>
    %cst_150 = arith.constant 0.000000e+00 : f32
    %309 = vector.broadcast %cst_150 : f32 to vector<1x1xf32>
    %310 = arith.subf %309, %308 : vector<1x1xf32>
    %c2_151 = arith.constant 2 : index
    %311 = memref.load %arg2[%c2_151] : memref<8xi32, #tpu.memory_space<smem>>
    %c2_152 = arith.constant 2 : index
    %312 = memref.load %arg1[%c2_152] : memref<8xi32, #tpu.memory_space<smem>>
    %313 = arith.sitofp %312 : i32 to f32
    %c0_i32_153 = arith.constant 0 : i32
    %314 = arith.cmpi sgt, %311, %c0_i32_153 : i32
    %315 = vector.broadcast %313 : f32 to vector<1x1xf32>
    %316 = arith.select %314, %315, %310 : vector<1x1xf32>
    %317 = vector.broadcast %316 : vector<1x1xf32> to vector<1x16xf32>
    %318 = arith.cmpf oeq, %87, %317 : vector<1x16xf32>
    %319 = arith.extui %318 : vector<1x16xi1> to vector<1x16xi32>
    %320 = arith.sitofp %319 : vector<1x16xi32> to vector<1x16xf32>
    %cst_154 = arith.constant dense<0.000000e+00> : vector<1x32xf32>
    %321 = tpu.matmul %320, %59, %cst_154 {dimension_numbers = #tpu.dot_dimension_numbers<[1], [0], [0], [1], [0, 0, 1, 1], [], []>} : vector<1x16xf32>, vector<16x32xf32>, vector<1x32xf32> -> vector<1x32xf32>
    %c0_i32_155 = arith.constant 0 : i32
    %322 = arith.cmpi eq, %311, %c0_i32_155 : i32
    %cst_156 = arith.constant 1.000000e+00 : f32
    %323 = vector.broadcast %cst_156 : f32 to vector<1x1xf32>
    %324 = arith.cmpf oeq, %310, %323 : vector<1x1xf32>
    %325 = vector.broadcast %322 : i1 to vector<1x1xi1>
    %326 = arith.andi %325, %324 : vector<1x1xi1>
    %327 = arith.extui %326 : vector<1x1xi1> to vector<1x1xi32>
    %328 = arith.sitofp %327 : vector<1x1xi32> to vector<1x1xf32>
    %329 = arith.maximumf %249, %328 : vector<1x1xf32>
    %cst_157 = arith.constant dense<0.000000e+00> : vector<1x32xf32>
    %330 = tpu.matmul %321, %61, %cst_157 {dimension_numbers = #tpu.dot_dimension_numbers<[1], [0], [0], [1], [0, 0, 1, 1], [], []>} : vector<1x32xf32>, vector<32x32xf32>, vector<1x32xf32> -> vector<1x32xf32>
    %331 = arith.addf %330, %73 : vector<1x32xf32>
    %cst_158 = arith.constant dense<0.000000e+00> : vector<1x32xf32>
    %332 = tpu.matmul %281, %67, %cst_158 {dimension_numbers = #tpu.dot_dimension_numbers<[1], [0], [0], [1], [0, 0, 1, 1], [], []>} : vector<1x32xf32>, vector<32x32xf32>, vector<1x32xf32> -> vector<1x32xf32>
    %333 = arith.addf %331, %332 : vector<1x32xf32>
    %334 = arith.addf %333, %79 : vector<1x32xf32>
    %cst_159 = arith.constant dense<0.000000e+00> : vector<1x32xf32>
    %335 = tpu.matmul %321, %63, %cst_159 {dimension_numbers = #tpu.dot_dimension_numbers<[1], [0], [0], [1], [0, 0, 1, 1], [], []>} : vector<1x32xf32>, vector<32x32xf32>, vector<1x32xf32> -> vector<1x32xf32>
    %336 = arith.addf %335, %75 : vector<1x32xf32>
    %cst_160 = arith.constant dense<0.000000e+00> : vector<1x32xf32>
    %337 = tpu.matmul %281, %69, %cst_160 {dimension_numbers = #tpu.dot_dimension_numbers<[1], [0], [0], [1], [0, 0, 1, 1], [], []>} : vector<1x32xf32>, vector<32x32xf32>, vector<1x32xf32> -> vector<1x32xf32>
    %338 = arith.addf %336, %337 : vector<1x32xf32>
    %339 = arith.addf %338, %81 : vector<1x32xf32>
    %340 = arith.negf %334 : vector<1x32xf32>
    %341 = math.exp %340 : vector<1x32xf32>
    %cst_161 = arith.constant 1.000000e+00 : f32
    %342 = vector.broadcast %cst_161 : f32 to vector<1x32xf32>
    %343 = arith.addf %342, %341 : vector<1x32xf32>
    %344 = arith.divf %342, %343 : vector<1x32xf32>
    %345 = arith.negf %339 : vector<1x32xf32>
    %346 = math.exp %345 : vector<1x32xf32>
    %cst_162 = arith.constant 1.000000e+00 : f32
    %347 = vector.broadcast %cst_162 : f32 to vector<1x32xf32>
    %348 = arith.addf %347, %346 : vector<1x32xf32>
    %349 = arith.divf %347, %348 : vector<1x32xf32>
    %cst_163 = arith.constant dense<0.000000e+00> : vector<1x32xf32>
    %350 = tpu.matmul %321, %65, %cst_163 {dimension_numbers = #tpu.dot_dimension_numbers<[1], [0], [0], [1], [0, 0, 1, 1], [], []>} : vector<1x32xf32>, vector<32x32xf32>, vector<1x32xf32> -> vector<1x32xf32>
    %351 = arith.addf %350, %77 : vector<1x32xf32>
    %cst_164 = arith.constant dense<0.000000e+00> : vector<1x32xf32>
    %352 = tpu.matmul %281, %71, %cst_164 {dimension_numbers = #tpu.dot_dimension_numbers<[1], [0], [0], [1], [0, 0, 1, 1], [], []>} : vector<1x32xf32>, vector<32x32xf32>, vector<1x32xf32> -> vector<1x32xf32>
    %353 = arith.addf %352, %83 : vector<1x32xf32>
    %354 = arith.mulf %344, %353 : vector<1x32xf32>
    %355 = arith.addf %351, %354 : vector<1x32xf32>
    %356 = math.tanh %355 : vector<1x32xf32>
    %cst_165 = arith.constant 1.000000e+00 : f32
    %357 = vector.broadcast %cst_165 : f32 to vector<1x32xf32>
    %358 = arith.subf %357, %349 : vector<1x32xf32>
    %359 = arith.mulf %358, %356 : vector<1x32xf32>
    %360 = arith.mulf %349, %281 : vector<1x32xf32>
    %361 = arith.addf %359, %360 : vector<1x32xf32>
    %cst_166 = arith.constant dense<0.000000e+00> : vector<1x16xf32>
    %362 = tpu.matmul %361, %84, %cst_166 {dimension_numbers = #tpu.dot_dimension_numbers<[1], [0], [0], [1], [0, 0, 1, 1], [], []>} : vector<1x32xf32>, vector<32x16xf32>, vector<1x16xf32> -> vector<1x16xf32>
    %363 = arith.addf %362, %85 : vector<1x16xf32>
    %cst_167 = arith.constant dense<0xFF800000> : vector<1xf32>
    %364 = vector.multi_reduction <maximumf>, %363, %cst_167 [1] : vector<1x16xf32> to vector<1xf32>
    %365 = vector.shape_cast %364 : vector<1xf32> to vector<1x1xf32>
    %366 = vector.broadcast %365 : vector<1x1xf32> to vector<1x16xf32>
    %367 = arith.subf %363, %366 : vector<1x16xf32>
    %368 = math.exp %367 : vector<1x16xf32>
    %cst_168 = arith.constant dense<0.000000e+00> : vector<1xf32>
    %369 = vector.multi_reduction <add>, %368, %cst_168 [1] : vector<1x16xf32> to vector<1xf32>
    %370 = vector.shape_cast %369 : vector<1xf32> to vector<1x1xf32>
    %371 = math.log %370 : vector<1x1xf32>
    %372 = vector.broadcast %371 : vector<1x1xf32> to vector<1x16xf32>
    %373 = arith.subf %367, %372 : vector<1x16xf32>
    %cst_169 = arith.constant 0.000000e+00 : f32
    %374 = vector.broadcast %cst_169 : f32 to vector<1x1xf32>
    %375 = arith.cmpf ogt, %329, %374 : vector<1x1xf32>
    %cst_170 = arith.constant 0.000000e+00 : f32
    %376 = vector.shape_cast %375 : vector<1x1xi1> to vector<1x1xi1>
    %377 = vector.broadcast %376 : vector<1x1xi1> to vector<1x16xi1>
    %378 = vector.broadcast %cst_170 : f32 to vector<1x16xf32>
    %379 = arith.select %377, %378, %373 : vector<1x16xi1>, vector<1x16xf32>
    %c3 = arith.constant 3 : index
    %c0_171 = arith.constant 0 : index
    %380 = vector.load %arg14[%c3, %c0_171] : memref<8x16xf32, #tpu.memory_space<vmem>>, vector<1x16xf32>
    tpu.vector_store %arg14[%c3, %c0_171], %379 {strides = array<i32>} : memref<8x16xf32, #tpu.memory_space<vmem>>, vector<1x16xf32>,
    %381 = vector.broadcast %365 : vector<1x1xf32> to vector<1x16xf32>
    %382 = arith.cmpf oeq, %363, %381 : vector<1x16xf32>
    %cst_172 = arith.constant 0.000000e+00 : f32
    %383 = vector.broadcast %cst_172 : f32 to vector<1x16xf32>
    %384 = arith.subf %383, %87 : vector<1x16xf32>
    %cst_173 = arith.constant -1.600000e+01 : f32
    %385 = vector.broadcast %cst_173 : f32 to vector<1x16xf32>
    %386 = arith.select %382, %384, %385 : vector<1x16xi1>, vector<1x16xf32>
    %cst_174 = arith.constant dense<0xFF800000> : vector<1xf32>
    %387 = vector.multi_reduction <maximumf>, %386, %cst_174 [1] : vector<1x16xf32> to vector<1xf32>
    %388 = vector.shape_cast %387 : vector<1xf32> to vector<1x1xf32>
    %cst_175 = arith.constant 0.000000e+00 : f32
    %389 = vector.broadcast %cst_175 : f32 to vector<1x1xf32>
    %390 = arith.subf %389, %388 : vector<1x1xf32>
    %c3_176 = arith.constant 3 : index
    %391 = memref.load %arg2[%c3_176] : memref<8xi32, #tpu.memory_space<smem>>
    %c3_177 = arith.constant 3 : index
    %392 = memref.load %arg1[%c3_177] : memref<8xi32, #tpu.memory_space<smem>>
    %393 = arith.sitofp %392 : i32 to f32
    %c0_i32_178 = arith.constant 0 : i32
    %394 = arith.cmpi sgt, %391, %c0_i32_178 : i32
    %395 = vector.broadcast %393 : f32 to vector<1x1xf32>
    %396 = arith.select %394, %395, %390 : vector<1x1xf32>
    %397 = vector.broadcast %396 : vector<1x1xf32> to vector<1x16xf32>
    %398 = arith.cmpf oeq, %87, %397 : vector<1x16xf32>
    %399 = arith.extui %398 : vector<1x16xi1> to vector<1x16xi32>
    %400 = arith.sitofp %399 : vector<1x16xi32> to vector<1x16xf32>
    %cst_179 = arith.constant dense<0.000000e+00> : vector<1x32xf32>
    %401 = tpu.matmul %400, %59, %cst_179 {dimension_numbers = #tpu.dot_dimension_numbers<[1], [0], [0], [1], [0, 0, 1, 1], [], []>} : vector<1x16xf32>, vector<16x32xf32>, vector<1x32xf32> -> vector<1x32xf32>
    %c0_i32_180 = arith.constant 0 : i32
    %402 = arith.cmpi eq, %391, %c0_i32_180 : i32
    %cst_181 = arith.constant 1.000000e+00 : f32
    %403 = vector.broadcast %cst_181 : f32 to vector<1x1xf32>
    %404 = arith.cmpf oeq, %390, %403 : vector<1x1xf32>
    %405 = vector.broadcast %402 : i1 to vector<1x1xi1>
    %406 = arith.andi %405, %404 : vector<1x1xi1>
    %407 = arith.extui %406 : vector<1x1xi1> to vector<1x1xi32>
    %408 = arith.sitofp %407 : vector<1x1xi32> to vector<1x1xf32>
    %409 = arith.maximumf %329, %408 : vector<1x1xf32>
    %cst_182 = arith.constant dense<0.000000e+00> : vector<1x32xf32>
    %410 = tpu.matmul %401, %61, %cst_182 {dimension_numbers = #tpu.dot_dimension_numbers<[1], [0], [0], [1], [0, 0, 1, 1], [], []>} : vector<1x32xf32>, vector<32x32xf32>, vector<1x32xf32> -> vector<1x32xf32>
    %411 = arith.addf %410, %73 : vector<1x32xf32>
    %cst_183 = arith.constant dense<0.000000e+00> : vector<1x32xf32>
    %412 = tpu.matmul %361, %67, %cst_183 {dimension_numbers = #tpu.dot_dimension_numbers<[1], [0], [0], [1], [0, 0, 1, 1], [], []>} : vector<1x32xf32>, vector<32x32xf32>, vector<1x32xf32> -> vector<1x32xf32>
    %413 = arith.addf %411, %412 : vector<1x32xf32>
    %414 = arith.addf %413, %79 : vector<1x32xf32>
    %cst_184 = arith.constant dense<0.000000e+00> : vector<1x32xf32>
    %415 = tpu.matmul %401, %63, %cst_184 {dimension_numbers = #tpu.dot_dimension_numbers<[1], [0], [0], [1], [0, 0, 1, 1], [], []>} : vector<1x32xf32>, vector<32x32xf32>, vector<1x32xf32> -> vector<1x32xf32>
    %416 = arith.addf %415, %75 : vector<1x32xf32>
    %cst_185 = arith.constant dense<0.000000e+00> : vector<1x32xf32>
    %417 = tpu.matmul %361, %69, %cst_185 {dimension_numbers = #tpu.dot_dimension_numbers<[1], [0], [0], [1], [0, 0, 1, 1], [], []>} : vector<1x32xf32>, vector<32x32xf32>, vector<1x32xf32> -> vector<1x32xf32>
    %418 = arith.addf %416, %417 : vector<1x32xf32>
    %419 = arith.addf %418, %81 : vector<1x32xf32>
    %420 = arith.negf %414 : vector<1x32xf32>
    %421 = math.exp %420 : vector<1x32xf32>
    %cst_186 = arith.constant 1.000000e+00 : f32
    %422 = vector.broadcast %cst_186 : f32 to vector<1x32xf32>
    %423 = arith.addf %422, %421 : vector<1x32xf32>
    %424 = arith.divf %422, %423 : vector<1x32xf32>
    %425 = arith.negf %419 : vector<1x32xf32>
    %426 = math.exp %425 : vector<1x32xf32>
    %cst_187 = arith.constant 1.000000e+00 : f32
    %427 = vector.broadcast %cst_187 : f32 to vector<1x32xf32>
    %428 = arith.addf %427, %426 : vector<1x32xf32>
    %429 = arith.divf %427, %428 : vector<1x32xf32>
    %cst_188 = arith.constant dense<0.000000e+00> : vector<1x32xf32>
    %430 = tpu.matmul %401, %65, %cst_188 {dimension_numbers = #tpu.dot_dimension_numbers<[1], [0], [0], [1], [0, 0, 1, 1], [], []>} : vector<1x32xf32>, vector<32x32xf32>, vector<1x32xf32> -> vector<1x32xf32>
    %431 = arith.addf %430, %77 : vector<1x32xf32>
    %cst_189 = arith.constant dense<0.000000e+00> : vector<1x32xf32>
    %432 = tpu.matmul %361, %71, %cst_189 {dimension_numbers = #tpu.dot_dimension_numbers<[1], [0], [0], [1], [0, 0, 1, 1], [], []>} : vector<1x32xf32>, vector<32x32xf32>, vector<1x32xf32> -> vector<1x32xf32>
    %433 = arith.addf %432, %83 : vector<1x32xf32>
    %434 = arith.mulf %424, %433 : vector<1x32xf32>
    %435 = arith.addf %431, %434 : vector<1x32xf32>
    %436 = math.tanh %435 : vector<1x32xf32>
    %cst_190 = arith.constant 1.000000e+00 : f32
    %437 = vector.broadcast %cst_190 : f32 to vector<1x32xf32>
    %438 = arith.subf %437, %429 : vector<1x32xf32>
    %439 = arith.mulf %438, %436 : vector<1x32xf32>
    %440 = arith.mulf %429, %361 : vector<1x32xf32>
    %441 = arith.addf %439, %440 : vector<1x32xf32>
    %cst_191 = arith.constant dense<0.000000e+00> : vector<1x16xf32>
    %442 = tpu.matmul %441, %84, %cst_191 {dimension_numbers = #tpu.dot_dimension_numbers<[1], [0], [0], [1], [0, 0, 1, 1], [], []>} : vector<1x32xf32>, vector<32x16xf32>, vector<1x16xf32> -> vector<1x16xf32>
    %443 = arith.addf %442, %85 : vector<1x16xf32>
    %cst_192 = arith.constant dense<0xFF800000> : vector<1xf32>
    %444 = vector.multi_reduction <maximumf>, %443, %cst_192 [1] : vector<1x16xf32> to vector<1xf32>
    %445 = vector.shape_cast %444 : vector<1xf32> to vector<1x1xf32>
    %446 = vector.broadcast %445 : vector<1x1xf32> to vector<1x16xf32>
    %447 = arith.subf %443, %446 : vector<1x16xf32>
    %448 = math.exp %447 : vector<1x16xf32>
    %cst_193 = arith.constant dense<0.000000e+00> : vector<1xf32>
    %449 = vector.multi_reduction <add>, %448, %cst_193 [1] : vector<1x16xf32> to vector<1xf32>
    %450 = vector.shape_cast %449 : vector<1xf32> to vector<1x1xf32>
    %451 = math.log %450 : vector<1x1xf32>
    %452 = vector.broadcast %451 : vector<1x1xf32> to vector<1x16xf32>
    %453 = arith.subf %447, %452 : vector<1x16xf32>
    %cst_194 = arith.constant 0.000000e+00 : f32
    %454 = vector.broadcast %cst_194 : f32 to vector<1x1xf32>
    %455 = arith.cmpf ogt, %409, %454 : vector<1x1xf32>
    %cst_195 = arith.constant 0.000000e+00 : f32
    %456 = vector.shape_cast %455 : vector<1x1xi1> to vector<1x1xi1>
    %457 = vector.broadcast %456 : vector<1x1xi1> to vector<1x16xi1>
    %458 = vector.broadcast %cst_195 : f32 to vector<1x16xf32>
    %459 = arith.select %457, %458, %453 : vector<1x16xi1>, vector<1x16xf32>
    %c4 = arith.constant 4 : index
    %c0_196 = arith.constant 0 : index
    %460 = vector.load %arg14[%c4, %c0_196] : memref<8x16xf32, #tpu.memory_space<vmem>>, vector<1x16xf32>
    tpu.vector_store %arg14[%c4, %c0_196], %459 {strides = array<i32>} : memref<8x16xf32, #tpu.memory_space<vmem>>, vector<1x16xf32>,
    %461 = vector.broadcast %445 : vector<1x1xf32> to vector<1x16xf32>
    %462 = arith.cmpf oeq, %443, %461 : vector<1x16xf32>
    %cst_197 = arith.constant 0.000000e+00 : f32
    %463 = vector.broadcast %cst_197 : f32 to vector<1x16xf32>
    %464 = arith.subf %463, %87 : vector<1x16xf32>
    %cst_198 = arith.constant -1.600000e+01 : f32
    %465 = vector.broadcast %cst_198 : f32 to vector<1x16xf32>
    %466 = arith.select %462, %464, %465 : vector<1x16xi1>, vector<1x16xf32>
    %cst_199 = arith.constant dense<0xFF800000> : vector<1xf32>
    %467 = vector.multi_reduction <maximumf>, %466, %cst_199 [1] : vector<1x16xf32> to vector<1xf32>
    %468 = vector.shape_cast %467 : vector<1xf32> to vector<1x1xf32>
    %cst_200 = arith.constant 0.000000e+00 : f32
    %469 = vector.broadcast %cst_200 : f32 to vector<1x1xf32>
    %470 = arith.subf %469, %468 : vector<1x1xf32>
    %c4_201 = arith.constant 4 : index
    %471 = memref.load %arg2[%c4_201] : memref<8xi32, #tpu.memory_space<smem>>
    %c4_202 = arith.constant 4 : index
    %472 = memref.load %arg1[%c4_202] : memref<8xi32, #tpu.memory_space<smem>>
    %473 = arith.sitofp %472 : i32 to f32
    %c0_i32_203 = arith.constant 0 : i32
    %474 = arith.cmpi sgt, %471, %c0_i32_203 : i32
    %475 = vector.broadcast %473 : f32 to vector<1x1xf32>
    %476 = arith.select %474, %475, %470 : vector<1x1xf32>
    %477 = vector.broadcast %476 : vector<1x1xf32> to vector<1x16xf32>
    %478 = arith.cmpf oeq, %87, %477 : vector<1x16xf32>
    %479 = arith.extui %478 : vector<1x16xi1> to vector<1x16xi32>
    %480 = arith.sitofp %479 : vector<1x16xi32> to vector<1x16xf32>
    %cst_204 = arith.constant dense<0.000000e+00> : vector<1x32xf32>
    %481 = tpu.matmul %480, %59, %cst_204 {dimension_numbers = #tpu.dot_dimension_numbers<[1], [0], [0], [1], [0, 0, 1, 1], [], []>} : vector<1x16xf32>, vector<16x32xf32>, vector<1x32xf32> -> vector<1x32xf32>
    %c0_i32_205 = arith.constant 0 : i32
    %482 = arith.cmpi eq, %471, %c0_i32_205 : i32
    %cst_206 = arith.constant 1.000000e+00 : f32
    %483 = vector.broadcast %cst_206 : f32 to vector<1x1xf32>
    %484 = arith.cmpf oeq, %470, %483 : vector<1x1xf32>
    %485 = vector.broadcast %482 : i1 to vector<1x1xi1>
    %486 = arith.andi %485, %484 : vector<1x1xi1>
    %487 = arith.extui %486 : vector<1x1xi1> to vector<1x1xi32>
    %488 = arith.sitofp %487 : vector<1x1xi32> to vector<1x1xf32>
    %489 = arith.maximumf %409, %488 : vector<1x1xf32>
    %cst_207 = arith.constant dense<0.000000e+00> : vector<1x32xf32>
    %490 = tpu.matmul %481, %61, %cst_207 {dimension_numbers = #tpu.dot_dimension_numbers<[1], [0], [0], [1], [0, 0, 1, 1], [], []>} : vector<1x32xf32>, vector<32x32xf32>, vector<1x32xf32> -> vector<1x32xf32>
    %491 = arith.addf %490, %73 : vector<1x32xf32>
    %cst_208 = arith.constant dense<0.000000e+00> : vector<1x32xf32>
    %492 = tpu.matmul %441, %67, %cst_208 {dimension_numbers = #tpu.dot_dimension_numbers<[1], [0], [0], [1], [0, 0, 1, 1], [], []>} : vector<1x32xf32>, vector<32x32xf32>, vector<1x32xf32> -> vector<1x32xf32>
    %493 = arith.addf %491, %492 : vector<1x32xf32>
    %494 = arith.addf %493, %79 : vector<1x32xf32>
    %cst_209 = arith.constant dense<0.000000e+00> : vector<1x32xf32>
    %495 = tpu.matmul %481, %63, %cst_209 {dimension_numbers = #tpu.dot_dimension_numbers<[1], [0], [0], [1], [0, 0, 1, 1], [], []>} : vector<1x32xf32>, vector<32x32xf32>, vector<1x32xf32> -> vector<1x32xf32>
    %496 = arith.addf %495, %75 : vector<1x32xf32>
    %cst_210 = arith.constant dense<0.000000e+00> : vector<1x32xf32>
    %497 = tpu.matmul %441, %69, %cst_210 {dimension_numbers = #tpu.dot_dimension_numbers<[1], [0], [0], [1], [0, 0, 1, 1], [], []>} : vector<1x32xf32>, vector<32x32xf32>, vector<1x32xf32> -> vector<1x32xf32>
    %498 = arith.addf %496, %497 : vector<1x32xf32>
    %499 = arith.addf %498, %81 : vector<1x32xf32>
    %500 = arith.negf %494 : vector<1x32xf32>
    %501 = math.exp %500 : vector<1x32xf32>
    %cst_211 = arith.constant 1.000000e+00 : f32
    %502 = vector.broadcast %cst_211 : f32 to vector<1x32xf32>
    %503 = arith.addf %502, %501 : vector<1x32xf32>
    %504 = arith.divf %502, %503 : vector<1x32xf32>
    %505 = arith.negf %499 : vector<1x32xf32>
    %506 = math.exp %505 : vector<1x32xf32>
    %cst_212 = arith.constant 1.000000e+00 : f32
    %507 = vector.broadcast %cst_212 : f32 to vector<1x32xf32>
    %508 = arith.addf %507, %506 : vector<1x32xf32>
    %509 = arith.divf %507, %508 : vector<1x32xf32>
    %cst_213 = arith.constant dense<0.000000e+00> : vector<1x32xf32>
    %510 = tpu.matmul %481, %65, %cst_213 {dimension_numbers = #tpu.dot_dimension_numbers<[1], [0], [0], [1], [0, 0, 1, 1], [], []>} : vector<1x32xf32>, vector<32x32xf32>, vector<1x32xf32> -> vector<1x32xf32>
    %511 = arith.addf %510, %77 : vector<1x32xf32>
    %cst_214 = arith.constant dense<0.000000e+00> : vector<1x32xf32>
    %512 = tpu.matmul %441, %71, %cst_214 {dimension_numbers = #tpu.dot_dimension_numbers<[1], [0], [0], [1], [0, 0, 1, 1], [], []>} : vector<1x32xf32>, vector<32x32xf32>, vector<1x32xf32> -> vector<1x32xf32>
    %513 = arith.addf %512, %83 : vector<1x32xf32>
    %514 = arith.mulf %504, %513 : vector<1x32xf32>
    %515 = arith.addf %511, %514 : vector<1x32xf32>
    %516 = math.tanh %515 : vector<1x32xf32>
    %cst_215 = arith.constant 1.000000e+00 : f32
    %517 = vector.broadcast %cst_215 : f32 to vector<1x32xf32>
    %518 = arith.subf %517, %509 : vector<1x32xf32>
    %519 = arith.mulf %518, %516 : vector<1x32xf32>
    %520 = arith.mulf %509, %441 : vector<1x32xf32>
    %521 = arith.addf %519, %520 : vector<1x32xf32>
    %cst_216 = arith.constant dense<0.000000e+00> : vector<1x16xf32>
    %522 = tpu.matmul %521, %84, %cst_216 {dimension_numbers = #tpu.dot_dimension_numbers<[1], [0], [0], [1], [0, 0, 1, 1], [], []>} : vector<1x32xf32>, vector<32x16xf32>, vector<1x16xf32> -> vector<1x16xf32>
    %523 = arith.addf %522, %85 : vector<1x16xf32>
    %cst_217 = arith.constant dense<0xFF800000> : vector<1xf32>
    %524 = vector.multi_reduction <maximumf>, %523, %cst_217 [1] : vector<1x16xf32> to vector<1xf32>
    %525 = vector.shape_cast %524 : vector<1xf32> to vector<1x1xf32>
    %526 = vector.broadcast %525 : vector<1x1xf32> to vector<1x16xf32>
    %527 = arith.subf %523, %526 : vector<1x16xf32>
    %528 = math.exp %527 : vector<1x16xf32>
    %cst_218 = arith.constant dense<0.000000e+00> : vector<1xf32>
    %529 = vector.multi_reduction <add>, %528, %cst_218 [1] : vector<1x16xf32> to vector<1xf32>
    %530 = vector.shape_cast %529 : vector<1xf32> to vector<1x1xf32>
    %531 = math.log %530 : vector<1x1xf32>
    %532 = vector.broadcast %531 : vector<1x1xf32> to vector<1x16xf32>
    %533 = arith.subf %527, %532 : vector<1x16xf32>
    %cst_219 = arith.constant 0.000000e+00 : f32
    %534 = vector.broadcast %cst_219 : f32 to vector<1x1xf32>
    %535 = arith.cmpf ogt, %489, %534 : vector<1x1xf32>
    %cst_220 = arith.constant 0.000000e+00 : f32
    %536 = vector.shape_cast %535 : vector<1x1xi1> to vector<1x1xi1>
    %537 = vector.broadcast %536 : vector<1x1xi1> to vector<1x16xi1>
    %538 = vector.broadcast %cst_220 : f32 to vector<1x16xf32>
    %539 = arith.select %537, %538, %533 : vector<1x16xi1>, vector<1x16xf32>
    %c5 = arith.constant 5 : index
    %c0_221 = arith.constant 0 : index
    %540 = vector.load %arg14[%c5, %c0_221] : memref<8x16xf32, #tpu.memory_space<vmem>>, vector<1x16xf32>
    tpu.vector_store %arg14[%c5, %c0_221], %539 {strides = array<i32>} : memref<8x16xf32, #tpu.memory_space<vmem>>, vector<1x16xf32>,
    %541 = vector.broadcast %525 : vector<1x1xf32> to vector<1x16xf32>
    %542 = arith.cmpf oeq, %523, %541 : vector<1x16xf32>
    %cst_222 = arith.constant 0.000000e+00 : f32
    %543 = vector.broadcast %cst_222 : f32 to vector<1x16xf32>
    %544 = arith.subf %543, %87 : vector<1x16xf32>
    %cst_223 = arith.constant -1.600000e+01 : f32
    %545 = vector.broadcast %cst_223 : f32 to vector<1x16xf32>
    %546 = arith.select %542, %544, %545 : vector<1x16xi1>, vector<1x16xf32>
    %cst_224 = arith.constant dense<0xFF800000> : vector<1xf32>
    %547 = vector.multi_reduction <maximumf>, %546, %cst_224 [1] : vector<1x16xf32> to vector<1xf32>
    %548 = vector.shape_cast %547 : vector<1xf32> to vector<1x1xf32>
    %cst_225 = arith.constant 0.000000e+00 : f32
    %549 = vector.broadcast %cst_225 : f32 to vector<1x1xf32>
    %550 = arith.subf %549, %548 : vector<1x1xf32>
    %c5_226 = arith.constant 5 : index
    %551 = memref.load %arg2[%c5_226] : memref<8xi32, #tpu.memory_space<smem>>
    %c5_227 = arith.constant 5 : index
    %552 = memref.load %arg1[%c5_227] : memref<8xi32, #tpu.memory_space<smem>>
    %553 = arith.sitofp %552 : i32 to f32
    %c0_i32_228 = arith.constant 0 : i32
    %554 = arith.cmpi sgt, %551, %c0_i32_228 : i32
    %555 = vector.broadcast %553 : f32 to vector<1x1xf32>
    %556 = arith.select %554, %555, %550 : vector<1x1xf32>
    %557 = vector.broadcast %556 : vector<1x1xf32> to vector<1x16xf32>
    %558 = arith.cmpf oeq, %87, %557 : vector<1x16xf32>
    %559 = arith.extui %558 : vector<1x16xi1> to vector<1x16xi32>
    %560 = arith.sitofp %559 : vector<1x16xi32> to vector<1x16xf32>
    %cst_229 = arith.constant dense<0.000000e+00> : vector<1x32xf32>
    %561 = tpu.matmul %560, %59, %cst_229 {dimension_numbers = #tpu.dot_dimension_numbers<[1], [0], [0], [1], [0, 0, 1, 1], [], []>} : vector<1x16xf32>, vector<16x32xf32>, vector<1x32xf32> -> vector<1x32xf32>
    %c0_i32_230 = arith.constant 0 : i32
    %562 = arith.cmpi eq, %551, %c0_i32_230 : i32
    %cst_231 = arith.constant 1.000000e+00 : f32
    %563 = vector.broadcast %cst_231 : f32 to vector<1x1xf32>
    %564 = arith.cmpf oeq, %550, %563 : vector<1x1xf32>
    %565 = vector.broadcast %562 : i1 to vector<1x1xi1>
    %566 = arith.andi %565, %564 : vector<1x1xi1>
    %567 = arith.extui %566 : vector<1x1xi1> to vector<1x1xi32>
    %568 = arith.sitofp %567 : vector<1x1xi32> to vector<1x1xf32>
    %569 = arith.maximumf %489, %568 : vector<1x1xf32>
    %cst_232 = arith.constant dense<0.000000e+00> : vector<1x32xf32>
    %570 = tpu.matmul %561, %61, %cst_232 {dimension_numbers = #tpu.dot_dimension_numbers<[1], [0], [0], [1], [0, 0, 1, 1], [], []>} : vector<1x32xf32>, vector<32x32xf32>, vector<1x32xf32> -> vector<1x32xf32>
    %571 = arith.addf %570, %73 : vector<1x32xf32>
    %cst_233 = arith.constant dense<0.000000e+00> : vector<1x32xf32>
    %572 = tpu.matmul %521, %67, %cst_233 {dimension_numbers = #tpu.dot_dimension_numbers<[1], [0], [0], [1], [0, 0, 1, 1], [], []>} : vector<1x32xf32>, vector<32x32xf32>, vector<1x32xf32> -> vector<1x32xf32>
    %573 = arith.addf %571, %572 : vector<1x32xf32>
    %574 = arith.addf %573, %79 : vector<1x32xf32>
    %cst_234 = arith.constant dense<0.000000e+00> : vector<1x32xf32>
    %575 = tpu.matmul %561, %63, %cst_234 {dimension_numbers = #tpu.dot_dimension_numbers<[1], [0], [0], [1], [0, 0, 1, 1], [], []>} : vector<1x32xf32>, vector<32x32xf32>, vector<1x32xf32> -> vector<1x32xf32>
    %576 = arith.addf %575, %75 : vector<1x32xf32>
    %cst_235 = arith.constant dense<0.000000e+00> : vector<1x32xf32>
    %577 = tpu.matmul %521, %69, %cst_235 {dimension_numbers = #tpu.dot_dimension_numbers<[1], [0], [0], [1], [0, 0, 1, 1], [], []>} : vector<1x32xf32>, vector<32x32xf32>, vector<1x32xf32> -> vector<1x32xf32>
    %578 = arith.addf %576, %577 : vector<1x32xf32>
    %579 = arith.addf %578, %81 : vector<1x32xf32>
    %580 = arith.negf %574 : vector<1x32xf32>
    %581 = math.exp %580 : vector<1x32xf32>
    %cst_236 = arith.constant 1.000000e+00 : f32
    %582 = vector.broadcast %cst_236 : f32 to vector<1x32xf32>
    %583 = arith.addf %582, %581 : vector<1x32xf32>
    %584 = arith.divf %582, %583 : vector<1x32xf32>
    %585 = arith.negf %579 : vector<1x32xf32>
    %586 = math.exp %585 : vector<1x32xf32>
    %cst_237 = arith.constant 1.000000e+00 : f32
    %587 = vector.broadcast %cst_237 : f32 to vector<1x32xf32>
    %588 = arith.addf %587, %586 : vector<1x32xf32>
    %589 = arith.divf %587, %588 : vector<1x32xf32>
    %cst_238 = arith.constant dense<0.000000e+00> : vector<1x32xf32>
    %590 = tpu.matmul %561, %65, %cst_238 {dimension_numbers = #tpu.dot_dimension_numbers<[1], [0], [0], [1], [0, 0, 1, 1], [], []>} : vector<1x32xf32>, vector<32x32xf32>, vector<1x32xf32> -> vector<1x32xf32>
    %591 = arith.addf %590, %77 : vector<1x32xf32>
    %cst_239 = arith.constant dense<0.000000e+00> : vector<1x32xf32>
    %592 = tpu.matmul %521, %71, %cst_239 {dimension_numbers = #tpu.dot_dimension_numbers<[1], [0], [0], [1], [0, 0, 1, 1], [], []>} : vector<1x32xf32>, vector<32x32xf32>, vector<1x32xf32> -> vector<1x32xf32>
    %593 = arith.addf %592, %83 : vector<1x32xf32>
    %594 = arith.mulf %584, %593 : vector<1x32xf32>
    %595 = arith.addf %591, %594 : vector<1x32xf32>
    %596 = math.tanh %595 : vector<1x32xf32>
    %cst_240 = arith.constant 1.000000e+00 : f32
    %597 = vector.broadcast %cst_240 : f32 to vector<1x32xf32>
    %598 = arith.subf %597, %589 : vector<1x32xf32>
    %599 = arith.mulf %598, %596 : vector<1x32xf32>
    %600 = arith.mulf %589, %521 : vector<1x32xf32>
    %601 = arith.addf %599, %600 : vector<1x32xf32>
    %cst_241 = arith.constant dense<0.000000e+00> : vector<1x16xf32>
    %602 = tpu.matmul %601, %84, %cst_241 {dimension_numbers = #tpu.dot_dimension_numbers<[1], [0], [0], [1], [0, 0, 1, 1], [], []>} : vector<1x32xf32>, vector<32x16xf32>, vector<1x16xf32> -> vector<1x16xf32>
    %603 = arith.addf %602, %85 : vector<1x16xf32>
    %cst_242 = arith.constant dense<0xFF800000> : vector<1xf32>
    %604 = vector.multi_reduction <maximumf>, %603, %cst_242 [1] : vector<1x16xf32> to vector<1xf32>
    %605 = vector.shape_cast %604 : vector<1xf32> to vector<1x1xf32>
    %606 = vector.broadcast %605 : vector<1x1xf32> to vector<1x16xf32>
    %607 = arith.subf %603, %606 : vector<1x16xf32>
    %608 = math.exp %607 : vector<1x16xf32>
    %cst_243 = arith.constant dense<0.000000e+00> : vector<1xf32>
    %609 = vector.multi_reduction <add>, %608, %cst_243 [1] : vector<1x16xf32> to vector<1xf32>
    %610 = vector.shape_cast %609 : vector<1xf32> to vector<1x1xf32>
    %611 = math.log %610 : vector<1x1xf32>
    %612 = vector.broadcast %611 : vector<1x1xf32> to vector<1x16xf32>
    %613 = arith.subf %607, %612 : vector<1x16xf32>
    %cst_244 = arith.constant 0.000000e+00 : f32
    %614 = vector.broadcast %cst_244 : f32 to vector<1x1xf32>
    %615 = arith.cmpf ogt, %569, %614 : vector<1x1xf32>
    %cst_245 = arith.constant 0.000000e+00 : f32
    %616 = vector.shape_cast %615 : vector<1x1xi1> to vector<1x1xi1>
    %617 = vector.broadcast %616 : vector<1x1xi1> to vector<1x16xi1>
    %618 = vector.broadcast %cst_245 : f32 to vector<1x16xf32>
    %619 = arith.select %617, %618, %613 : vector<1x16xi1>, vector<1x16xf32>
    %c6 = arith.constant 6 : index
    %c0_246 = arith.constant 0 : index
    %620 = vector.load %arg14[%c6, %c0_246] : memref<8x16xf32, #tpu.memory_space<vmem>>, vector<1x16xf32>
    tpu.vector_store %arg14[%c6, %c0_246], %619 {strides = array<i32>} : memref<8x16xf32, #tpu.memory_space<vmem>>, vector<1x16xf32>,
    %621 = vector.broadcast %605 : vector<1x1xf32> to vector<1x16xf32>
    %622 = arith.cmpf oeq, %603, %621 : vector<1x16xf32>
    %cst_247 = arith.constant 0.000000e+00 : f32
    %623 = vector.broadcast %cst_247 : f32 to vector<1x16xf32>
    %624 = arith.subf %623, %87 : vector<1x16xf32>
    %cst_248 = arith.constant -1.600000e+01 : f32
    %625 = vector.broadcast %cst_248 : f32 to vector<1x16xf32>
    %626 = arith.select %622, %624, %625 : vector<1x16xi1>, vector<1x16xf32>
    %cst_249 = arith.constant dense<0xFF800000> : vector<1xf32>
    %627 = vector.multi_reduction <maximumf>, %626, %cst_249 [1] : vector<1x16xf32> to vector<1xf32>
    %628 = vector.shape_cast %627 : vector<1xf32> to vector<1x1xf32>
    %cst_250 = arith.constant 0.000000e+00 : f32
    %629 = vector.broadcast %cst_250 : f32 to vector<1x1xf32>
    %630 = arith.subf %629, %628 : vector<1x1xf32>
    %c6_251 = arith.constant 6 : index
    %631 = memref.load %arg2[%c6_251] : memref<8xi32, #tpu.memory_space<smem>>
    %c6_252 = arith.constant 6 : index
    %632 = memref.load %arg1[%c6_252] : memref<8xi32, #tpu.memory_space<smem>>
    %633 = arith.sitofp %632 : i32 to f32
    %c0_i32_253 = arith.constant 0 : i32
    %634 = arith.cmpi sgt, %631, %c0_i32_253 : i32
    %635 = vector.broadcast %633 : f32 to vector<1x1xf32>
    %636 = arith.select %634, %635, %630 : vector<1x1xf32>
    %637 = vector.broadcast %636 : vector<1x1xf32> to vector<1x16xf32>
    %638 = arith.cmpf oeq, %87, %637 : vector<1x16xf32>
    %639 = arith.extui %638 : vector<1x16xi1> to vector<1x16xi32>
    %640 = arith.sitofp %639 : vector<1x16xi32> to vector<1x16xf32>
    %cst_254 = arith.constant dense<0.000000e+00> : vector<1x32xf32>
    %641 = tpu.matmul %640, %59, %cst_254 {dimension_numbers = #tpu.dot_dimension_numbers<[1], [0], [0], [1], [0, 0, 1, 1], [], []>} : vector<1x16xf32>, vector<16x32xf32>, vector<1x32xf32> -> vector<1x32xf32>
    %c0_i32_255 = arith.constant 0 : i32
    %642 = arith.cmpi eq, %631, %c0_i32_255 : i32
    %cst_256 = arith.constant 1.000000e+00 : f32
    %643 = vector.broadcast %cst_256 : f32 to vector<1x1xf32>
    %644 = arith.cmpf oeq, %630, %643 : vector<1x1xf32>
    %645 = vector.broadcast %642 : i1 to vector<1x1xi1>
    %646 = arith.andi %645, %644 : vector<1x1xi1>
    %647 = arith.extui %646 : vector<1x1xi1> to vector<1x1xi32>
    %648 = arith.sitofp %647 : vector<1x1xi32> to vector<1x1xf32>
    %649 = arith.maximumf %569, %648 : vector<1x1xf32>
    %cst_257 = arith.constant dense<0.000000e+00> : vector<1x32xf32>
    %650 = tpu.matmul %641, %61, %cst_257 {dimension_numbers = #tpu.dot_dimension_numbers<[1], [0], [0], [1], [0, 0, 1, 1], [], []>} : vector<1x32xf32>, vector<32x32xf32>, vector<1x32xf32> -> vector<1x32xf32>
    %651 = arith.addf %650, %73 : vector<1x32xf32>
    %cst_258 = arith.constant dense<0.000000e+00> : vector<1x32xf32>
    %652 = tpu.matmul %601, %67, %cst_258 {dimension_numbers = #tpu.dot_dimension_numbers<[1], [0], [0], [1], [0, 0, 1, 1], [], []>} : vector<1x32xf32>, vector<32x32xf32>, vector<1x32xf32> -> vector<1x32xf32>
    %653 = arith.addf %651, %652 : vector<1x32xf32>
    %654 = arith.addf %653, %79 : vector<1x32xf32>
    %cst_259 = arith.constant dense<0.000000e+00> : vector<1x32xf32>
    %655 = tpu.matmul %641, %63, %cst_259 {dimension_numbers = #tpu.dot_dimension_numbers<[1], [0], [0], [1], [0, 0, 1, 1], [], []>} : vector<1x32xf32>, vector<32x32xf32>, vector<1x32xf32> -> vector<1x32xf32>
    %656 = arith.addf %655, %75 : vector<1x32xf32>
    %cst_260 = arith.constant dense<0.000000e+00> : vector<1x32xf32>
    %657 = tpu.matmul %601, %69, %cst_260 {dimension_numbers = #tpu.dot_dimension_numbers<[1], [0], [0], [1], [0, 0, 1, 1], [], []>} : vector<1x32xf32>, vector<32x32xf32>, vector<1x32xf32> -> vector<1x32xf32>
    %658 = arith.addf %656, %657 : vector<1x32xf32>
    %659 = arith.addf %658, %81 : vector<1x32xf32>
    %660 = arith.negf %654 : vector<1x32xf32>
    %661 = math.exp %660 : vector<1x32xf32>
    %cst_261 = arith.constant 1.000000e+00 : f32
    %662 = vector.broadcast %cst_261 : f32 to vector<1x32xf32>
    %663 = arith.addf %662, %661 : vector<1x32xf32>
    %664 = arith.divf %662, %663 : vector<1x32xf32>
    %665 = arith.negf %659 : vector<1x32xf32>
    %666 = math.exp %665 : vector<1x32xf32>
    %cst_262 = arith.constant 1.000000e+00 : f32
    %667 = vector.broadcast %cst_262 : f32 to vector<1x32xf32>
    %668 = arith.addf %667, %666 : vector<1x32xf32>
    %669 = arith.divf %667, %668 : vector<1x32xf32>
    %cst_263 = arith.constant dense<0.000000e+00> : vector<1x32xf32>
    %670 = tpu.matmul %641, %65, %cst_263 {dimension_numbers = #tpu.dot_dimension_numbers<[1], [0], [0], [1], [0, 0, 1, 1], [], []>} : vector<1x32xf32>, vector<32x32xf32>, vector<1x32xf32> -> vector<1x32xf32>
    %671 = arith.addf %670, %77 : vector<1x32xf32>
    %cst_264 = arith.constant dense<0.000000e+00> : vector<1x32xf32>
    %672 = tpu.matmul %601, %71, %cst_264 {dimension_numbers = #tpu.dot_dimension_numbers<[1], [0], [0], [1], [0, 0, 1, 1], [], []>} : vector<1x32xf32>, vector<32x32xf32>, vector<1x32xf32> -> vector<1x32xf32>
    %673 = arith.addf %672, %83 : vector<1x32xf32>
    %674 = arith.mulf %664, %673 : vector<1x32xf32>
    %675 = arith.addf %671, %674 : vector<1x32xf32>
    %676 = math.tanh %675 : vector<1x32xf32>
    %cst_265 = arith.constant 1.000000e+00 : f32
    %677 = vector.broadcast %cst_265 : f32 to vector<1x32xf32>
    %678 = arith.subf %677, %669 : vector<1x32xf32>
    %679 = arith.mulf %678, %676 : vector<1x32xf32>
    %680 = arith.mulf %669, %601 : vector<1x32xf32>
    %681 = arith.addf %679, %680 : vector<1x32xf32>
    %cst_266 = arith.constant dense<0.000000e+00> : vector<1x16xf32>
    %682 = tpu.matmul %681, %84, %cst_266 {dimension_numbers = #tpu.dot_dimension_numbers<[1], [0], [0], [1], [0, 0, 1, 1], [], []>} : vector<1x32xf32>, vector<32x16xf32>, vector<1x16xf32> -> vector<1x16xf32>
    %683 = arith.addf %682, %85 : vector<1x16xf32>
    %cst_267 = arith.constant dense<0xFF800000> : vector<1xf32>
    %684 = vector.multi_reduction <maximumf>, %683, %cst_267 [1] : vector<1x16xf32> to vector<1xf32>
    %685 = vector.shape_cast %684 : vector<1xf32> to vector<1x1xf32>
    %686 = vector.broadcast %685 : vector<1x1xf32> to vector<1x16xf32>
    %687 = arith.subf %683, %686 : vector<1x16xf32>
    %688 = math.exp %687 : vector<1x16xf32>
    %cst_268 = arith.constant dense<0.000000e+00> : vector<1xf32>
    %689 = vector.multi_reduction <add>, %688, %cst_268 [1] : vector<1x16xf32> to vector<1xf32>
    %690 = vector.shape_cast %689 : vector<1xf32> to vector<1x1xf32>
    %691 = math.log %690 : vector<1x1xf32>
    %692 = vector.broadcast %691 : vector<1x1xf32> to vector<1x16xf32>
    %693 = arith.subf %687, %692 : vector<1x16xf32>
    %cst_269 = arith.constant 0.000000e+00 : f32
    %694 = vector.broadcast %cst_269 : f32 to vector<1x1xf32>
    %695 = arith.cmpf ogt, %649, %694 : vector<1x1xf32>
    %cst_270 = arith.constant 0.000000e+00 : f32
    %696 = vector.shape_cast %695 : vector<1x1xi1> to vector<1x1xi1>
    %697 = vector.broadcast %696 : vector<1x1xi1> to vector<1x16xi1>
    %698 = vector.broadcast %cst_270 : f32 to vector<1x16xf32>
    %699 = arith.select %697, %698, %693 : vector<1x16xi1>, vector<1x16xf32>
    %c7 = arith.constant 7 : index
    %c0_271 = arith.constant 0 : index
    %700 = vector.load %arg14[%c7, %c0_271] : memref<8x16xf32, #tpu.memory_space<vmem>>, vector<1x16xf32>
    tpu.vector_store %arg14[%c7, %c0_271], %699 {strides = array<i32>} : memref<8x16xf32, #tpu.memory_space<vmem>>, vector<1x16xf32>,
    return
  }
}

</mosaic_0001>

<bundles_post_ra>
// kernel: _seq2seq_call.1
= control target key start
LH: loop header
LB: loop body
LE: loop exit
PB: predicated region body
PF: predicated region fallthrough
CT: control target
= control target key end

     0   :  { %19 = vsyncpa [#allocation5], 0  ;;  %s3885_s0 = inlined_call_operand.vmem [shape: s32[8,1], index: 0, kind: input, shape index: {}]   ;;  %s3886_s1 = inlined_call_operand.vmem [shape: s32[8], index: 1, kind: input, shape index: {}]   ;;  %s3887_s2 = inlined_call_operand.vmem [shape: s32[8], index: 2, kind: input, shape index: {}]   ;;  %s3888_s3 = inlined_call_operand.vmem [shape: f32[16,32], index: 3, kind: input, shape index: {}]   ;;  %s3889_s4 = inlined_call_operand.hbm [shape: f32[3,32,32], index: 4, kind: input, shape index: {}]   ;;  %s3890_s5 = inlined_call_operand.vmem [shape: f32[3,1,32], index: 5, kind: input, shape index: {}]   ;;  %s3891_s6 = inlined_call_operand.vmem [shape: f32[3,1,32], index: 6, kind: input, shape index: {}]   ;;  %s3892_s7 = inlined_call_operand.vmem [shape: f32[16,32], index: 7, kind: input, shape index: {}]   ;;  %s3893_s8 = inlined_call_operand.hbm [shape: f32[3,32,32], index: 8, kind: input, shape index: {}]   ;;  %s3894_s9 = inlined_call_operand.hbm [shape: f32[3,32,32], index: 9, kind: input, shape index: {}]   ;;  %s3895_s10 = inlined_call_operand.vmem [shape: f32[3,1,32], index: 10, kind: input, shape index: {}]   ;;  %s3896_s11 = inlined_call_operand.vmem [shape: f32[3,1,32], index: 11, kind: input, shape index: {}]   ;;  %s3897_s12 = inlined_call_operand.vmem [shape: f32[32,16], index: 12, kind: input, shape index: {}]   ;;  %s3898_s13 = inlined_call_operand.vmem [shape: f32[1,16], index: 13, kind: input, shape index: {}]   ;;  %s3899_s14 = inlined_call_operand.hbm [shape: f32[8,16], index: 14, kind: output, shape index: {}]  }
   0x1   :  { %20 = vsyncpa [#allocation7], 0 }
   0x2   :  { %21 = vsyncpa [#allocation3], 0 }
   0x3   :  { %22 = vsyncpa [#allocation10], 0 }
   0x4   :  { %23 = vsyncpa [#allocation4], 0  ;;  %s69_s15 = sshll.u32 %s3893_s8, 4  ;;  %s2852_s16 = smov [#allocation9]   ;;  %s70_s15 = int_to_ptr.hbm [resolvable:$true] %s69_s15 }
   0x5   :  { %s71_s17 = sshll.u32 %s2852_s16, 4  ;;  %s31_s20 = sshll.u32 %s3886_s1, 4  ;;  %s72_s17 = int_to_ptr.vmem [resolvable:$true] %s71_s17  ;;  %s32_s20 = int_to_ptr.vmem [resolvable:$true] %s31_s20 }
   0x6   :  { %s2853_s21 = smov 128   ;;  %s2854_s22 = smov 8  }
   0x7   :  { %77 = dma.hbm_to_vmem [thread:$0]  %s70_s15, 1536, %s72_s17, [#allocation10], %s2853_s21, %s2853_s21, %s2854_s22  }
   0x8   :  { %s2855_s23 = smov [#allocation2]   ;;  %s40_s26 = sshll.u32 %s3887_s2, 4  ;;  %s41_s26 = int_to_ptr.vmem [resolvable:$true] %s40_s26 }
   0x9   :  { %34 = dma.vmem_to_smem %s32_s20, 16, %s2855_s23, [#allocation5]  }
   0xa   :  { %s50_s28 = sshll.u32 %s3889_s4, 4  ;;  %s2856_s29 = smov [#allocation6]   ;;  %s51_s28 = int_to_ptr.hbm [resolvable:$true] %s50_s28 }
   0xb   :  { %43 = dma.vmem_to_smem %s41_s26, 16, %s2856_s29, [#allocation7]  }
   0xc   :  { %s2857_s30 = smov [#allocation8]   ;;  %s82_s15 = sshll.u32 %s3894_s9, 4  ;;  %s83_s15 = int_to_ptr.hbm [resolvable:$true] %s82_s15 }
   0xd   :  { %s52_s1 = sshll.u32 %s2857_s30, 4  ;;  %s2858_s17 = smov [#allocation11]   ;;  %s53_s1 = int_to_ptr.vmem [resolvable:$true] %s52_s1 }
   0xe   :  { %58 = dma.hbm_to_vmem [thread:$0]  %s51_s28, 1536, %s53_s1, [#allocation3], %s2853_s21, %s2853_s21, %s2854_s22  }
   0xf   :  { %s84_s19 = sshll.u32 %s2858_s17, 4  ;;  %s85_s19 = int_to_ptr.vmem [resolvable:$true] %s84_s19 }
  0x10   :  { %90 = dma.hbm_to_vmem [thread:$0]  %s83_s15, 1536, %s85_s19, [#allocation10], %s2853_s21, %s2853_s21, %s2854_s22  }
  0x11   :  { %2842 = dma.done.wait [#allocation5], 16  }
  0x12   :  { %2843 = vsyncadd [#allocation5], 4294967280 }
  0x13   :  { %2844 = dma.done.wait [#allocation7], 16  }
  0x14   :  { %2845 = vsyncadd [#allocation7], 4294967280 }
  0x15   :  { %2846 = dma.done.wait [#allocation3], 1536  }
  0x16   :  { %2847 = vsyncadd [#allocation3], 4294965760 }
  0x17   :  { %2848 = dma.done.wait [#allocation10], 3072  }
  0x18   :  { %2849 = vsyncadd [#allocation10], 4294964224 }
  0x19   :  { %119 = sfence }
  0x1a   :  { %v122_v0 = vld [vmem:[%s3885_s0] sm:$0xff]  ;;  %v130_v1 = vld [vmem:[%s3888_s3 + $0x8] sm:$0xff]  ;;  %v2859_v2 = vmov 0   ;;  %vm131_vm0 = vcmask 130048   ;;  %v3900_v4 = vmov 0.0   ;;  %v158_v5 = vld [vmem:[#allocation8 + $0x18] sm:$0xff]  ;;  %v120_v14 = vlaneseq }
  0x1b   :  { %2556 = vset.pattern.permute.xlu0 %v2859_v2  ;;  %149 = vmatpush.msra.mxu0 %v130_v1  ;;  %v129_v3 = vld [vmem:[%s3888_s3] sm:$0xff]  ;;  %306 = vst.msk [vmem:[#allocation12] sm:$0xff] %vm131_vm0, %v3900_v4  ;;  %v191_v6 = vld [vmem:[#allocation8 + $0x38] sm:$0xff]  ;;  %v157_v8 = vld [vmem:[#allocation8 + $0x10] sm:$0xff]  ;;  %vm163_vm2 = vcmask 261120   ;;  %s578_s18 = sld [smem:[#allocation6]] }
  0x1c   :  { %124 = vperm.xlu0 %2556, %v122_v0   ;;  %v221_v7 = vld [vmem:[#allocation8 + $0x58] sm:$0xff]  ;;  %179 = vmatpush.msra.mxu1 %v158_v5  ;;  %v190_v9 = vld [vmem:[#allocation8 + $0x30] sm:$0xff]  ;;  %v156_v11 = vld [vmem:[#allocation8 + $0x8] sm:$0xff]  ;;  %v2963_v15 = vand.u32 127, %v120_v14  ;;  %s2462_s19 = sld [smem:[#allocation6 + $0x1]] }
  0x1d   :  { %150 = vmatpush.msra.mxu0 %v129_v3  ;;  %209 = vmatpush.msra.mxu2 %v191_v6  ;;  %v220_v10 = vld [vmem:[#allocation8 + $0x50] sm:$0xff]  ;;  %v189_v12 = vld [vmem:[#allocation8 + $0x28] sm:$0xff]  ;;  %v155_v18 = vld [vmem:[#allocation8] sm:$0xff]  ;;  %s2463_s2 = sld [smem:[#allocation2 + $0x1]] }
  0x1e   :  { %239 = vmatpush.msra.mxu3 %v221_v7  ;;  %180 = vmatpush.msra.mxu1 %v157_v8  ;;  %v219_v13 = vld [vmem:[#allocation8 + $0x48] sm:$0xff]  ;;  %v188_v19 = vld [vmem:[#allocation8 + $0x20] sm:$0xff]  ;;  %v2983_v30 = vld [vmem:[#allocation9 + $0x18] sm:$0xff]  ;;  %s2476_s21 = sld [smem:[#allocation6 + $0x2]] }
  0x1f   :  { %210 = vmatpush.msra.mxu2 %v190_v9  ;;  %v218_v20 = vld [vmem:[#allocation8 + $0x40] sm:$0xff]  ;;  %v2985_v31 = vld [vmem:[#allocation9 + $0x38] sm:$0xff]  ;;  %v2987_v32 = vld [vmem:[#allocation9 + $0x10] sm:$0xff]  ;;  %368 = vmatpush.msrb.mxu0 %v2983_v30  ;;  %s2477_s22 = sld [smem:[#allocation2 + $0x2]] }
  0x20   :  { %240 = vmatpush.msra.mxu3 %v220_v10  ;;  %181 = vmatpush.msra.mxu1 %v156_v11  ;;  %v2557_v22 = vld [vmem:[%s3890_s5] ss:$0 sm:$0xff]  ;;  %v2559_v27 = vld [vmem:[%s3890_s5 + $0x1] ss:$0 sm:$0xff]  ;;  %v2991_v34 = vld [vmem:[#allocation11 + $0x18] sm:$0xff]  ;;  %s2490_s24 = sld [smem:[#allocation6 + $0x3]] }
  0x21   :  { %211 = vmatpush.msra.mxu2 %v189_v12  ;;  %v2558_v23 = vld [vmem:[%s3891_s6] ss:$0 sm:$0xff]  ;;  %v2560_v28 = vld [vmem:[%s3891_s6 + $0x1] ss:$0 sm:$0xff]  ;;  %v2993_v35 = vld [vmem:[#allocation9 + $0x30] sm:$0xff]  ;;  %369 = vmatpush.msrb.mxu0 %v2987_v32  ;;  %p581_p0 = scmp.gt.s32.totalorder %s578_s18, 0 }
  0x22   :  { %241 = vmatpush.msra.mxu3 %v219_v13  ;;  %182 = vmatpush.msra.mxu1 %v155_v18  ;;  %v2995_v36 = vld [vmem:[#allocation11 + $0x38] sm:$0xff]  ;;  %v2999_v38 = vld [vmem:[#allocation9 + $0x8] sm:$0xff]  ;;  %v3001_v39 = vld [vmem:[#allocation11 + $0x10] sm:$0xff]  ;;  %p613_p1 = scmp.eq.s32.totalorder %s578_s18, 0  ;;  %p843_p2 = scmp.gt.s32.totalorder %s2462_s19, 0 }
  0x23   :  { %212 = vmatpush.msra.mxu2 %v188_v19  ;;  %v3003_v40 = vld [vmem:[#allocation9 + $0x28] sm:$0xff]  ;;  %v3007_v41 = vld [vmem:[#allocation11 + $0x30] sm:$0xff]  ;;  %v3013_v44 = vld [vmem:[#allocation9] sm:$0xff]  ;;  %370 = vmatpush.msrb.mxu0 %v2999_v38  ;;  %p875_p3 = scmp.eq.s32.totalorder %s2462_s19, 0  ;;  %s842_s20 = scvt.s32.f32 %s2463_s2 }
  0x24   :  { %242 = vmatpush.msra.mxu3 %v218_v20  ;;  %392 = vmatpush.msrb.mxu1 %v2991_v34  ;;  %v3009_v42 = vld [vmem:[#allocation11 + $0x8] sm:$0xff]  ;;  %v3015_v45 = vld [vmem:[#allocation9 + $0x20] sm:$0xff]  ;;  %v3040_v53 = vld [vmem:[#allocation11 + $0x58] sm:$0xff]  ;;  %s615_s15 = scalar_select %p613_p1, 1, 0 }
  0x25   :  { %414 = vmatpush.msrb.mxu2 %v2985_v31  ;;  %v3017_v46 = vld [vmem:[#allocation11 + $0x28] sm:$0xff]  ;;  %v3024_v47 = vld [vmem:[%s3892_s7] sm:$0xff]  ;;  %371 = vmatpush.msrb.mxu0 %v3013_v44  ;;  %v3042_v54 = vld [vmem:[#allocation11 + $0x50] sm:$0xff]  ;;  %s845_s4 = scalar_select %p843_p2, 1, 0 }
  0x26   :  { %434 = vmatpush.msrb.mxu3 %v2995_v36  ;;  %393 = vmatpush.msrb.mxu1 %v3001_v39  ;;  %v3026_v48 = vld [vmem:[#allocation11] sm:$0xff]  ;;  %v3045_v55 = vld [vmem:[#allocation11 + $0x48] sm:$0xff]  ;;  %v3052_v61 = vld [vmem:[#allocation9 + $0x58] sm:$0xff]  ;;  %s877_s9 = scalar_select %p875_p3, 1, 0 }
  0x27   :  { %415 = vmatpush.msrb.mxu2 %v2993_v35  ;;  %v3030_v50 = vld [vmem:[#allocation11 + $0x20] sm:$0xff]  ;;  %v3054_v62 = vld [vmem:[#allocation9 + $0x50] sm:$0xff]  ;;  %v3057_v1 = vld [vmem:[#allocation9 + $0x48] sm:$0xff]  ;;  %p1105_p4 = scmp.gt.s32.totalorder %s2476_s21, 0  ;;  %p1137_p5 = scmp.eq.s32.totalorder %s2476_s21, 0 }
  0x28   :  { %435 = vmatpush.msrb.mxu3 %v3007_v41  ;;  %394 = vmatpush.msrb.mxu1 %v3009_v42  ;;  %v3048_v58 = vld [vmem:[#allocation11 + $0x40] sm:$0xff]  ;;  %s1104_s23 = scvt.s32.f32 %s2477_s22  ;;  %s2491_s25 = sld [smem:[#allocation2 + $0x3]] }
  0x29   :  { %416 = vmatpush.msrb.mxu2 %v3003_v40  ;;  %v2561_v6 = vld [vmem:[%s3890_s5 + $0x2] ss:$0 sm:$0xff]  ;;  %s579_s5 = sld [smem:[#allocation2]]  ;;  %p1367_p6 = scmp.gt.s32.totalorder %s2490_s24, 0 }
  0x2a   :  { %436 = vmatpush.msrb.mxu3 %v3017_v46  ;;  %395 = vmatpush.msrb.mxu1 %v3026_v48  ;;  %v3063_v7 = vld [vmem:[#allocation9 + $0x40] sm:$0xff]  ;;  %s1107_s0 = scalar_select %p1105_p4, 1, 0 }
  0x2b   :  { %417 = vmatpush.msrb.mxu2 %v3015_v45  ;;  %v2562_v11 = vld [vmem:[%s3891_s6 + $0x2] ss:$0 sm:$0xff]  ;;  %s583_s6 = scalar_select %p581_p0, 1, 0 }
  0x2c   :  { %437 = vmatpush.msrb.mxu3 %v3030_v50  ;;  %s1139_s3 = scalar_select %p1137_p5, 1, 0 }
  0x2d   :  { %p1399_p7 = scmp.eq.s32.totalorder %s2490_s24, 0  ;;  %s2519_s30 = sld [smem:[#allocation2 + $0x5]] }
  0x2e   :  { %s1369_s26 = scalar_select %p1367_p6, 1, 0 }
  0x2f   :  { %s580_s17 = scvt.s32.f32 %s579_s5  ;;  %s1366_s27 = scvt.s32.f32 %s2491_s25 }
  0x30   :  { %s1401_s8 = scalar_select %p1399_p7, 1, 0 }
  0x31   :  { %s2532_s5 = sld [smem:[#allocation6 + $0x6]]  ;;  %s2861_s2 = smov [#allocation12]  }
  0x33   :  { %s1890_s18 = scvt.s32.f32 %s2519_s30 }
  0x37   :  { %p2153_p12 = scmp.gt.s32.totalorder %s2532_s5, 0  ;;  %p2185_p13 = scmp.eq.s32.totalorder %s2532_s5, 0 }
  0x8e   :  { %v125_v16 = vpop.permute.xlu0 %124 }
  0x8f   :  { %vm126_vm1 = vcmp.eq.s32.totalorder %v2963_v15, %v125_v16 }
  0x90   :  { %v2426_v17 = vsel %vm126_vm1, 1.0, %v3900_v4 }
  0x91   :  { %2427 = vmatmul.msk.f32.vlgmr.msra.gmra.mxu0 %vm131_vm0, %v2426_v17 }
  0x92   :  { %494 = vmatpush.msra.mxu0 %v3052_v61 }
  0x94   :  { %495 = vmatpush.msra.mxu0 %v3054_v62 }
  0x96   :  { %496 = vmatpush.msra.mxu0 %v3057_v1 }
  0x98   :  { %497 = vmatpush.msra.mxu0 %v3063_v7 }
  0x99   :  { %2441 = vmatmul.msk.f32.vlgmr.msrb.gmra.mxu0 %vm163_vm2, %v3024_v47 }
  0x9a   :  { %637 = vmatpush.msrb.mxu0 %v2983_v30 }
  0x9c   :  { %638 = vmatpush.msrb.mxu0 %v2987_v32 }
  0x9e   :  { %639 = vmatpush.msrb.mxu0 %v2999_v38 }
  0xa0   :  { %640 = vmatpush.msrb.mxu0 %v3013_v44 }
  0xa1   :  { %2447 = vmatmul.msk.f32.vlgmr.msra.gmra.mxu0 %vm163_vm2, %v3024_v47 }
  0xa2   :  { %759 = vmatpush.msra.mxu0 %v3052_v61 }
  0xa4   :  { %760 = vmatpush.msra.mxu0 %v3054_v62 }
  0xa6   :  { %761 = vmatpush.msra.mxu0 %v3057_v1 }
  0xa8   :  { %762 = vmatpush.msra.mxu0 %v3063_v7 }
 0x10e   :  { %v152_v21 = vpop.f32.mrf.mxu0 }
 0x10f   :  { %2428 = vmatmul.msk.f32.vlgmr.msra.gmra.mxu1 %vm163_vm2, %v152_v21  ;;  %2430 = vmatmul.msk.f32.vlgmr.msra.gmra.mxu2 %vm163_vm2, %v152_v21 }
 0x110   :  { %2432 = vmatmul.msk.f32.vlgmr.msra.gmra.mxu3 %vm163_vm2, %v152_v21  ;;  %514 = vmatpush.msra.mxu1 %v3040_v53 }
 0x112   :  { %515 = vmatpush.msra.mxu1 %v3042_v54 }
 0x114   :  { %516 = vmatpush.msra.mxu1 %v3045_v55 }
 0x116   :  { %517 = vmatpush.msra.mxu1 %v3048_v58 }
 0x117   :  { %2443 = vmatmul.msk.f32.vlgmr.msrb.gmra.mxu2 %vm163_vm2, %v3024_v47 }
 0x18c   :  { %v184_v24 = vpop.f32.mrf.mxu1 }
 0x18d   :  { %v185_v25 = vadd.f32 %v2557_v22, %v184_v24 }
 0x18f   :  { %v251_v26 = vadd.f32 %v2558_v23, %v185_v25 }
 0x191   :  { %v2433_v29 = vmul.f32 -1.442695, %v251_v26 }
 0x192   :  { %v214_v33 = vpop.f32.mrf.mxu2 }
 0x193   :  { %2563 = vpow2.f32 %v2433_v29  ;;  %v215_v37 = vadd.f32 %v2559_v27, %v214_v33  ;;  %v244_v9 = vpop.f32.mrf.mxu3 }
 0x194   :  { %v245_v16 = vadd.f32 %v2561_v6, %v244_v9 }
 0x195   :  { %v276_v43 = vadd.f32 %v2560_v28, %v215_v37  ;;  %v3099_v37 = vld [vmem:[%s3895_s10] sm:$0x1] }
 0x197   :  { %v2435_v49 = vmul.f32 -1.442695, %v276_v43  ;;  %v373_v43 = vpop.f32.mrf.mxu0 }
 0x199   :  { %v2564_v51 = vpop.eup %2563  ;;  %2565 = vpow2.f32 %v2435_v49  ;;  %v374_v49 = vadd.f32 %v373_v43, %v3099_v37 }
 0x19a   :  { %v255_v52 = vadd.f32 1.0, %v2564_v51  ;;  %v3105_v51 = vld [vmem:[%s3896_s11] sm:$0x1] }
 0x19c   :  { %2567 = vrcp.f32 %v255_v52  ;;  %v267_v0 = vand.u32 2147483648, %v255_v52  ;;  %v265_v3 = vand.u32 2147483647, %v255_v52  ;;  %vm261_vm4 = vweird.f32 %v255_v52 }
 0x19e   :  { %v268_v12 = vor.u32 1.1754944e-38, %v267_v0  ;;  %vm266_vm6 = vcmp.eq.f32.partialorder %v265_v3, 8.507059e+37 }
 0x19f   :  { %v2566_v56 = vpop.eup %2565 }
 0x1a0   :  { %v280_v57 = vadd.f32 1.0, %v2566_v56  ;;  %v3110_v56 = vld [vmem:[%s3895_s10 + $0x1] sm:$0x1] }
 0x1a2   :  { %v2568_v59 = vpop.eup %2567  ;;  %2569 = vrcp.f32 %v280_v57  ;;  %v292_v20 = vand.u32 2147483648, %v280_v57  ;;  %v290_v21 = vand.u32 2147483647, %v280_v57  ;;  %vm286_vm8 = vweird.f32 %v280_v57 }
 0x1a3   :  { %v257_v60 = vmul.f32 %v2568_v59, %v255_v52  ;;  %vm262_vm3 = vweird.f32 %v2568_v59 }
 0x1a4   :  { %vm263_vm5 = vmor %vm261_vm4, %vm262_vm3  ;;  %v293_v25 = vor.u32 1.1754944e-38, %v292_v20  ;;  %vm291_vm10 = vcmp.eq.f32.partialorder %v290_v21, 8.507059e+37 }
 0x1a5   :  { %v258_v63 = vsub.f32 1.0, %v257_v60 }
 0x1a7   :  { %v259_v2 = vmul.f32 %v2568_v59, %v258_v63 }
 0x1a8   :  { %v2570_v5 = vpop.eup %2569 }
 0x1a9   :  { %v282_v8 = vmul.f32 %v2570_v5, %v280_v57  ;;  %v260_v10 = vadd.f32 %v2568_v59, %v259_v2  ;;  %vm287_vm7 = vweird.f32 %v2570_v5  ;;  %v419_v57 = vpop.f32.mrf.mxu2  ;;  %v3117_v2 = vld [vmem:[%s3896_s11 + $0x1] sm:$0x1] }
 0x1aa   :  { %vm288_vm9 = vmor %vm286_vm8, %vm287_vm7  ;;  %v420_v63 = vadd.f32 %v3110_v56, %v419_v57  ;;  %3916 = vst [vmem:[#allocation18_spill] sm:$0xff] %v3117_v2 }
 0x1ab   :  { %v283_v13 = vsub.f32 1.0, %v282_v8  ;;  %v264_v14 = vsel %vm263_vm5, %v2568_v59, %v260_v10  ;;  %v3123_v8 = vld [vmem:[%s3897_s12 + $0x18] sm:$0xff]  ;;  %v3129_v10 = vld [vmem:[%s3897_s12 + $0x10] sm:$0xff]  ;;  %vm553_vm5 = vcmask 122880  }
 0x1ac   :  { %v269_v17 = vsel %vm266_vm6, %v268_v12, %v264_v14  ;;  %545 = vmatpush.msra.mxu2 %v3123_v8 }
 0x1ad   :  { %v301_v18 = vmul.f32 %v2562_v11, %v269_v17  ;;  %v284_v19 = vmul.f32 %v2570_v5, %v283_v13  ;;  %v3135_v11 = vld [vmem:[%s3897_s12 + $0x8] sm:$0xff]  ;;  %v3140_v13 = vld [vmem:[%s3897_s12] sm:$0xff] }
 0x1ae   :  { %546 = vmatpush.msra.mxu2 %v3129_v10 }
 0x1af   :  { %v302_v22 = vadd.f32 %v301_v18, %v245_v16  ;;  %v285_v23 = vadd.f32 %v2570_v5, %v284_v19 }
 0x1b0   :  { %547 = vmatpush.msra.mxu2 %v3135_v11 }
 0x1b1   :  { %2571 = vtanh.f32 %v302_v22  ;;  %v289_v24 = vsel %vm288_vm9, %v2570_v5, %v285_v23 }
 0x1b2   :  { %v294_v26 = vsel %vm291_vm10, %v293_v25, %v289_v24  ;;  %548 = vmatpush.msra.mxu2 %v3140_v13  ;;  %v3151_v24 = vld [vmem:[%s3895_s10 + $0x2] sm:$0x1]  ;;  %v499_v25 = vpop.f32.mrf.mxu0 }
 0x1b3   :  { %v304_v27 = vsub.f32 1.0, %v294_v26 }
 0x1b4   :  { %679 = vmatpush.msrb.mxu2 %v2985_v31 }
 0x1b6   :  { %680 = vmatpush.msrb.mxu2 %v2993_v35 }
 0x1b7   :  { %v2572_v28 = vpop.eup %2571 }
 0x1b8   :  { %v305_v29 = vmul.f32 %v2572_v28, %v304_v27  ;;  %681 = vmatpush.msrb.mxu2 %v3003_v40  ;;  %v3156_v27 = vld [vmem:[%s3896_s11 + $0x2] sm:$0x1] }
 0x1ba   :  { %v3079_v33 = vrot.slane %v305_v29, 7  ;;  %682 = vmatpush.msrb.mxu2 %v3015_v45 }
 0x1bc   :  { %2442 = vmatmul.msk.f32.vlgmr.msrb.gmra.mxu1 %vm163_vm2, %v3079_v33  ;;  %2444 = vmatmul.msk.f32.vlgmr.msrb.gmra.mxu3 %vm163_vm2, %v3079_v33 }
 0x1bd   :  { %657 = vmatpush.msrb.mxu1 %v2991_v34 }
 0x1bf   :  { %658 = vmatpush.msrb.mxu1 %v3001_v39 }
 0x1c1   :  { %659 = vmatpush.msrb.mxu1 %v3009_v42 }
 0x1c3   :  { %660 = vmatpush.msrb.mxu1 %v3026_v48 }
 0x1c4   :  { %2448 = vmatmul.msk.f32.vlgmr.msra.gmra.mxu1 %vm163_vm2, %v3079_v33 }
 0x1c5   :  { %779 = vmatpush.msra.mxu1 %v3040_v53 }
 0x1c7   :  { %780 = vmatpush.msra.mxu1 %v3042_v54 }
 0x1c9   :  { %781 = vmatpush.msra.mxu1 %v3045_v55 }
 0x1cb   :  { %782 = vmatpush.msra.mxu1 %v3048_v58 }
 0x239   :  { %v397_v52 = vpop.f32.mrf.mxu1 }
 0x23a   :  { %v400_v59 = vadd.f32 %v397_v52, %v374_v49  ;;  %v500_v52 = vadd.f32 %v3151_v24, %v499_v25 }
 0x23c   :  { %v401_v60 = vadd.f32 %v400_v59, %v3105_v51 }
 0x23e   :  { %v2445_v0 = vmul.f32 -1.442695, %v401_v60 }
 0x23f   :  { %v439_v3 = vpop.f32.mrf.mxu3 }
 0x240   :  { %2573 = vpow2.f32 %v2445_v0  ;;  %v442_v5 = vadd.f32 %v439_v3, %v420_v63 }
 0x241   :  { %v519_v28 = vpop.f32.mrf.mxu1 }
 0x242   :  { %v443_v6 = vadd.f32 %v3117_v2, %v442_v5  ;;  %v520_v60 = vadd.f32 %v3156_v27, %v519_v28  ;;  %v3194_v28 = vld [vmem:[%s3892_s7 + $0x8] sm:$0xff] }
 0x243   :  { %607 = vmatpush.msra.mxu3 %v3194_v28 }
 0x244   :  { %v2446_v9 = vmul.f32 -1.442695, %v443_v6 }
 0x245   :  { %608 = vmatpush.msra.mxu3 %v3024_v47 }
 0x246   :  { %v2574_v12 = vpop.eup %2573  ;;  %2575 = vpow2.f32 %v2446_v9 }
 0x247   :  { %v447_v14 = vadd.f32 1.0, %v2574_v12  ;;  %699 = vmatpush.msrb.mxu3 %v2995_v36 }
 0x249   :  { %2577 = vrcp.f32 %v447_v14  ;;  %v459_v21 = vand.u32 2147483648, %v447_v14  ;;  %v457_v23 = vand.u32 2147483647, %v447_v14  ;;  %vm453_vm12 = vweird.f32 %v447_v14  ;;  %700 = vmatpush.msrb.mxu3 %v3007_v41 }
 0x24b   :  { %v460_v49 = vor.u32 1.1754944e-38, %v459_v21  ;;  %vm458_vm14 = vcmp.eq.f32.partialorder %v457_v23, 8.507059e+37  ;;  %701 = vmatpush.msrb.mxu3 %v3017_v46 }
 0x24c   :  { %v2576_v16 = vpop.eup %2575 }
 0x24d   :  { %v466_v17 = vadd.f32 1.0, %v2576_v16  ;;  %702 = vmatpush.msrb.mxu3 %v3030_v50 }
 0x24f   :  { %v2578_v18 = vpop.eup %2577  ;;  %2579 = vrcp.f32 %v466_v17  ;;  %v478_v3 = vand.u32 2147483648, %v466_v17  ;;  %v476_v6 = vand.u32 2147483647, %v466_v17  ;;  %vm472_vm1 = vweird.f32 %v466_v17 }
 0x250   :  { %v449_v19 = vmul.f32 %v2578_v18, %v447_v14  ;;  %vm454_vm11 = vweird.f32 %v2578_v18 }
 0x251   :  { %vm455_vm13 = vmor %vm453_vm12, %vm454_vm11  ;;  %v479_v16 = vor.u32 1.1754944e-38, %v478_v3  ;;  %vm477_vm4 = vcmp.eq.f32.partialorder %v476_v6, 8.507059e+37 }
 0x252   :  { %v450_v20 = vsub.f32 1.0, %v449_v19 }
 0x254   :  { %v451_v22 = vmul.f32 %v2578_v18, %v450_v20 }
 0x255   :  { %v2580_v26 = vpop.eup %2579 }
 0x256   :  { %v468_v29 = vmul.f32 %v2580_v26, %v466_v17  ;;  %v452_v43 = vadd.f32 %v2578_v18, %v451_v22  ;;  %vm473_vm15 = vweird.f32 %v2580_v26 }
 0x257   :  { %vm474_vm3 = vmor %vm472_vm1, %vm473_vm15 }
 0x258   :  { %v469_v57 = vsub.f32 1.0, %v468_v29  ;;  %v456_v59 = vsel %vm455_vm13, %v2578_v18, %v452_v43  ;;  %v3203_v29 = vcvt.s32.f32 %v2963_v15  ;;  %v584_v15 = vstv %s583_s6  ;;  %s2533_s6 = sld [smem:[#allocation2 + $0x6]] }
 0x259   :  { %v461_v63 = vsel %vm458_vm14, %v460_v49, %v456_v59  ;;  %v616_v59 = vstv %s615_s15  ;;  %vm585_vm7 = vcmp.eq.s32.totalorder %v584_v15, 1  ;;  %s2155_s15 = scalar_select %p2153_p12, 1, 0 }
 0x25a   :  { %v470_v0 = vmul.f32 %v2580_v26, %v469_v57  ;;  %v522_v5 = vmul.f32 %v520_v60, %v461_v63  ;;  %v3206_v43 = vsub.f32 0.0, %v3203_v29  ;;  %v582_v60 = vstv %s580_s17  ;;  %s2187_s17 = scalar_select %p2185_p13, 1, 0 }
 0x25b   :  { %vm3214_vm8 = vcmp.eq.s32.totalorder %v616_v59, 1 }
 0x25c   :  { %v471_v9 = vadd.f32 %v2580_v26, %v470_v0  ;;  %v523_v12 = vadd.f32 %v522_v5, %v500_v52 }
 0x25e   :  { %v475_v14 = vsel %vm474_vm3, %v2580_v26, %v471_v9  ;;  %2581 = vtanh.f32 %v523_v12  ;;  %s2152_s19 = scvt.s32.f32 %s2533_s6 }
 0x25f   :  { %v480_v19 = vsel %vm477_vm4, %v479_v16, %v475_v14 }
 0x260   :  { %v525_v20 = vsub.f32 1.0, %v480_v19  ;;  %v528_v22 = vmul.f32 %v480_v19, %v3079_v33  ;;  %v3184_v33 = vld [vmem:[%s3898_s13] sm:$0x1] }
 0x264   :  { %v2582_v18 = vpop.eup %2581 }
 0x265   :  { %v526_v21 = vmul.f32 %v2582_v18, %v525_v20 }
 0x267   :  { %v3161_v23 = vadd.f32 %v528_v22, %v526_v21 }
 0x269   :  { %2449 = vmatmul.msk.f32.vlgmr.msra.gmra.mxu2 %vm163_vm2, %v3161_v23  ;;  %2454 = vmatmul.msk.f32.vlgmr.msrb.gmra.mxu1 %vm163_vm2, %v3161_v23 }
 0x26a   :  { %809 = vmatpush.msra.mxu2 %v3123_v8  ;;  %919 = vmatpush.msrb.mxu1 %v2991_v34 }
 0x26c   :  { %810 = vmatpush.msra.mxu2 %v3129_v10  ;;  %920 = vmatpush.msrb.mxu1 %v3001_v39 }
 0x26e   :  { %811 = vmatpush.msra.mxu2 %v3135_v11  ;;  %921 = vmatpush.msrb.mxu1 %v3009_v42 }
 0x270   :  { %812 = vmatpush.msra.mxu2 %v3140_v13  ;;  %922 = vmatpush.msrb.mxu1 %v3026_v48 }
 0x271   :  { %2460 = vmatmul.msk.f32.vlgmr.msra.gmra.mxu1 %vm163_vm2, %v3161_v23 }
 0x272   :  { %1041 = vmatpush.msra.mxu1 %v3040_v53 }
 0x274   :  { %1042 = vmatpush.msra.mxu1 %v3042_v54 }
 0x276   :  { %1043 = vmatpush.msra.mxu1 %v3045_v55 }
 0x278   :  { %1044 = vmatpush.msra.mxu1 %v3048_v58 }
 0x2e6   :  { %v662_v19 = vpop.f32.mrf.mxu1 }
 0x2ec   :  { %v550_v17 = vpop.f32.mrf.mxu2 }
 0x2ed   :  { %v3187_v25 = vadd.f32 %v550_v17, %v3184_v33 }
 0x2ef   :  { %3917 = vst [vmem:[#allocation19_spill] sm:$0xff] %v3187_v25  ;;  %v554_v26 = vsel %vm553_vm5, %v3187_v25, -inf }
 0x2f0   :  { %555 = vmax.xlane.f32.xlu0 %v554_v26 }
 0x363   :  { %v3208_v49 = vpop.xlane.xlu0 %555 }
 0x364   :  { %3918 = vst [vmem:[#allocation20_spill] sm:$0xff] %v3208_v49  ;;  %vm571_vm6 = vcmp.eq.f32.partialorder %v3187_v25, %v3208_v49 }
 0x365   :  { %v573_v52 = vsel %vm571_vm6, %v3206_v43, -16.0 }
 0x366   :  { %v574_v57 = vsel %vm553_vm5, %v573_v52, -inf }
 0x367   :  { %575 = vmax.xlane.f32.xlu1 %v574_v57 }
 0x3da   :  { %v576_v63 = vpop.xlane.xlu1 %575 }
 0x3db   :  { %v577_v3 = vsub.f32 0.0, %v576_v63 }
 0x3dd   :  { %v586_v5 = vsel %vm585_vm7, %v582_v60, %v577_v3  ;;  %vm3218_vm9 = vcmp.eq.f32.partialorder %v577_v3, 1.0 }
 0x3de   :  { %vm587_vm10 = vcmp.eq.f32.partialorder %v3203_v29, %v586_v5  ;;  %vm618_vm11 = vmand %vm3214_vm8, %vm3218_vm9 }
 0x3df   :  { %v2450_v9 = vsel %vm587_vm10, 1.0, %v3900_v4 }
 0x3e0   :  { %2451 = vmatmul.msk.f32.vlgmr.msra.gmra.mxu3 %vm131_vm0, %v2450_v9 }
 0x3e1   :  { %869 = vmatpush.msra.mxu3 %v3194_v28 }
 0x3e3   :  { %870 = vmatpush.msra.mxu3 %v3024_v47 }
 0x3e8   :  { %2456 = vmatmul.msk.f32.vlgmr.msrb.gmra.mxu3 %vm163_vm2, %v3161_v23 }
 0x3e9   :  { %961 = vmatpush.msrb.mxu3 %v2995_v36 }
 0x3eb   :  { %962 = vmatpush.msrb.mxu3 %v3007_v41 }
 0x3ed   :  { %963 = vmatpush.msrb.mxu3 %v3017_v46 }
 0x3ef   :  { %964 = vmatpush.msrb.mxu3 %v3030_v50 }
 0x463   :  { %v610_v12 = vpop.f32.mrf.mxu3 }
 0x464   :  { %2453 = vmatmul.msk.f32.vlgmr.msrb.gmra.mxu0 %vm163_vm2, %v610_v12  ;;  %2455 = vmatmul.msk.f32.vlgmr.msrb.gmra.mxu2 %vm163_vm2, %v610_v12 }
 0x465   :  { %899 = vmatpush.msrb.mxu0 %v2983_v30  ;;  %941 = vmatpush.msrb.mxu2 %v2985_v31 }
 0x467   :  { %900 = vmatpush.msrb.mxu0 %v2987_v32  ;;  %942 = vmatpush.msrb.mxu2 %v2993_v35 }
 0x469   :  { %901 = vmatpush.msrb.mxu0 %v2999_v38  ;;  %943 = vmatpush.msrb.mxu2 %v3003_v40 }
 0x46b   :  { %902 = vmatpush.msrb.mxu0 %v3013_v44  ;;  %944 = vmatpush.msrb.mxu2 %v3015_v45  ;;  %v704_v26 = vpop.f32.mrf.mxu3 }
 0x46c   :  { %2459 = vmatmul.msk.f32.vlgmr.msra.gmra.mxu0 %vm163_vm2, %v610_v12 }
 0x46d   :  { %1021 = vmatpush.msra.mxu0 %v3052_v61 }
 0x46f   :  { %1022 = vmatpush.msra.mxu0 %v3054_v62 }
 0x471   :  { %1023 = vmatpush.msra.mxu0 %v3057_v1 }
 0x473   :  { %1024 = vmatpush.msra.mxu0 %v3063_v7 }
 0x4e1   :  { %v642_v14 = vpop.f32.mrf.mxu0 }
 0x4e2   :  { %v643_v16 = vadd.f32 %v642_v14, %v3099_v37 }
 0x4e4   :  { %v665_v20 = vadd.f32 %v662_v19, %v643_v16 }
 0x4e6   :  { %v666_v18 = vadd.f32 %v665_v20, %v3105_v51 }
 0x4e7   :  { %v684_v21 = vpop.f32.mrf.mxu2 }
 0x4e8   :  { %v2457_v22 = vmul.f32 -1.442695, %v666_v18  ;;  %v685_v17 = vadd.f32 %v3110_v56, %v684_v21  ;;  %v784_v18 = vpop.f32.mrf.mxu1 }
 0x4ea   :  { %2583 = vpow2.f32 %v2457_v22  ;;  %v707_v52 = vadd.f32 %v704_v26, %v685_v17  ;;  %v764_v17 = vpop.f32.mrf.mxu0 }
 0x4ec   :  { %v708_v57 = vadd.f32 %v3117_v2, %v707_v52  ;;  %v785_v52 = vadd.f32 %v3156_v27, %v784_v18 }
 0x4ee   :  { %v2458_v15 = vmul.f32 -1.442695, %v708_v57 }
 0x4f0   :  { %v2584_v59 = vpop.eup %2583  ;;  %2585 = vpow2.f32 %v2458_v15 }
 0x4f1   :  { %v712_v60 = vadd.f32 1.0, %v2584_v59 }
 0x4f3   :  { %2587 = vrcp.f32 %v712_v60  ;;  %v724_v14 = vand.u32 2147483648, %v712_v60  ;;  %v722_v19 = vand.u32 2147483647, %v712_v60  ;;  %vm718_vm13 = vweird.f32 %v712_v60 }
 0x4f5   :  { %v725_v26 = vor.u32 1.1754944e-38, %v724_v14  ;;  %vm723_vm15 = vcmp.eq.f32.partialorder %v722_v19, 8.507059e+37 }
 0x4f6   :  { %v2586_v63 = vpop.eup %2585 }
 0x4f7   :  { %v731_v3 = vadd.f32 1.0, %v2586_v63  ;;  %v765_v63 = vadd.f32 %v3151_v24, %v764_v17 }
 0x4f9   :  { %v2588_v5 = vpop.eup %2587  ;;  %2589 = vrcp.f32 %v731_v3  ;;  %v741_v25 = vand.u32 2147483647, %v731_v3  ;;  %vm737_vm3 = vweird.f32 %v731_v3 }
 0x4fa   :  { %v714_v9 = vmul.f32 %v2588_v5, %v712_v60  ;;  %vm719_vm12 = vweird.f32 %v2588_v5 }
 0x4fb   :  { %vm720_vm14 = vmor %vm718_vm13, %vm719_vm12  ;;  %vm742_vm6 = vcmp.eq.f32.partialorder %v741_v25, 8.507059e+37 }
 0x4fc   :  { %v715_v12 = vsub.f32 1.0, %v714_v9 }
 0x4fe   :  { %v716_v16 = vmul.f32 %v2588_v5, %v715_v12  ;;  %v743_v12 = vand.u32 2147483648, %v731_v3 }
 0x4ff   :  { %v2590_v20 = vpop.eup %2589 }
 0x500   :  { %v733_v21 = vmul.f32 %v2590_v20, %v731_v3  ;;  %v717_v22 = vadd.f32 %v2588_v5, %v716_v16  ;;  %vm738_vm1 = vweird.f32 %v2590_v20  ;;  %v744_v2 = vor.u32 1.1754944e-38, %v743_v12 }
 0x501   :  { %vm739_vm4 = vmor %vm737_vm3, %vm738_vm1 }
 0x502   :  { %v734_v57 = vsub.f32 1.0, %v733_v21  ;;  %v721_v15 = vsel %vm720_vm14, %v2588_v5, %v717_v22 }
 0x503   :  { %v726_v59 = vsel %vm723_vm15, %v725_v26, %v721_v15  ;;  %v878_v15 = vstv %s877_s9 }
 0x504   :  { %v735_v9 = vmul.f32 %v2590_v20, %v734_v57  ;;  %v787_v4 = vmul.f32 %v785_v52, %v726_v59  ;;  %v846_v57 = vstv %s845_s4  ;;  %v844_v59 = vstv %s842_s20  ;;  %s2411_s4 = sshll.u32 %s2861_s2, 4  ;;  %s2412_s4 = int_to_ptr.vmem [resolvable:$true] %s2411_s4 }
 0x505   :  { %vm847_vm10 = vcmp.eq.s32.totalorder %v846_v57, 1  ;;  %vm3284_vm12 = vcmp.eq.s32.totalorder %v878_v15, 1 }
 0x506   :  { %v736_v49 = vadd.f32 %v2590_v20, %v735_v9  ;;  %v788_v16 = vadd.f32 %v787_v4, %v765_v63 }
 0x508   :  { %v740_v60 = vsel %vm739_vm4, %v2590_v20, %v736_v49  ;;  %2591 = vtanh.f32 %v788_v16 }
 0x509   :  { %v745_v14 = vsel %vm742_vm6, %v744_v2, %v740_v60 }
 0x50a   :  { %v790_v18 = vsub.f32 1.0, %v745_v14  ;;  %v792_v21 = vmul.f32 %v745_v14, %v3161_v23  ;;  %v3927_v14 = vmov 0.0  }
 0x50e   :  { %v2592_v5 = vpop.eup %2591 }
 0x50f   :  { %v791_v19 = vmul.f32 %v2592_v5, %v790_v18 }
 0x511   :  { %v3259_v22 = vadd.f32 %v792_v21, %v791_v19  ;;  %v3307_v19 = vsel %vm618_vm11, 1.0, %v3927_v14 }
 0x513   :  { %2461 = vmatmul.msk.f32.vlgmr.msra.gmra.mxu2 %vm163_vm2, %v3259_v22  ;;  %2468 = vmatmul.msk.f32.vlgmr.msrb.gmra.mxu1 %vm163_vm2, %v3259_v22 }
 0x514   :  { %1071 = vmatpush.msra.mxu2 %v3123_v8  ;;  %1181 = vmatpush.msrb.mxu1 %v2991_v34 }
 0x516   :  { %1072 = vmatpush.msra.mxu2 %v3129_v10  ;;  %1182 = vmatpush.msrb.mxu1 %v3001_v39 }
 0x518   :  { %1073 = vmatpush.msra.mxu2 %v3135_v11  ;;  %1183 = vmatpush.msrb.mxu1 %v3009_v42 }
 0x51a   :  { %1074 = vmatpush.msra.mxu2 %v3140_v13  ;;  %1184 = vmatpush.msrb.mxu1 %v3026_v48 }
 0x51b   :  { %2474 = vmatmul.msk.f32.vlgmr.msra.gmra.mxu1 %vm163_vm2, %v3259_v22 }
 0x51c   :  { %1303 = vmatpush.msra.mxu1 %v3040_v53 }
 0x51e   :  { %1304 = vmatpush.msra.mxu1 %v3042_v54 }
 0x520   :  { %1305 = vmatpush.msra.mxu1 %v3045_v55 }
 0x522   :  { %1306 = vmatpush.msra.mxu1 %v3048_v58 }
 0x596   :  { %v814_v4 = vpop.f32.mrf.mxu2 }
 0x597   :  { %v815_v2 = vadd.f32 %v814_v4, %v3184_v33  ;;  %v3906_v4 = vmax.f32 %v3307_v19, 0.0 }
 0x599   :  { %v817_v23 = vsel %vm553_vm5, %v815_v2, -inf  ;;  %vm829_vm1 = vcmp.gt.f32.partialorder %v3906_v4, 0.0 }
 0x59a   :  { %818 = vmax.xlane.f32.xlu1 %v817_v23 }
 0x60d   :  { %v819_v25 = vpop.xlane.xlu1 %818 }
 0x60e   :  { %v820_v49 = vsub.f32 %v815_v2, %v819_v25  ;;  %vm834_vm7 = vcmp.eq.f32.partialorder %v815_v2, %v819_v25 }
 0x60f   :  { %v835_v3 = vsel %vm834_vm7, %v3206_v43, -16.0 }
 0x610   :  { %v821_v20 = vmul.f32 1.442695, %v820_v49  ;;  %v836_v17 = vsel %vm553_vm5, %v835_v3, -inf }
 0x611   :  { %837 = vmax.xlane.f32.xlu2 %v836_v17 }
 0x612   :  { %2593 = vpow2.f32 %v821_v20 }
 0x618   :  { %v2594_v26 = vpop.eup %2593 }
 0x619   :  { %v823_v52 = vsel %vm553_vm5, %v2594_v26, 0.0 }
 0x61a   :  { %824 = vadd.xlane.f32.xlu0 %v823_v52 }
 0x684   :  { %v838_v63 = vpop.xlane.xlu2 %837 }
 0x685   :  { %v839_v12 = vsub.f32 0.0, %v838_v63 }
 0x687   :  { %v848_v16 = vsel %vm847_vm10, %v844_v59, %v839_v12  ;;  %vm3288_vm13 = vcmp.eq.f32.partialorder %v839_v12, 1.0 }
 0x688   :  { %vm849_vm14 = vcmp.eq.f32.partialorder %v3203_v29, %v848_v16  ;;  %vm880_vm15 = vmand %vm3284_vm12, %vm3288_vm13 }
 0x689   :  { %v2464_v18 = vsel %vm849_vm14, 1.0, %v3927_v14 }
 0x68a   :  { %2465 = vmatmul.msk.f32.vlgmr.msra.gmra.mxu3 %vm131_vm0, %v2464_v18 }
 0x68b   :  { %1131 = vmatpush.msra.mxu3 %v3194_v28 }
 0x68d   :  { %v825_v5 = vpop.xlane.xlu0 %824  ;;  %1132 = vmatpush.msra.mxu3 %v3024_v47 }
 0x68e   :  { %2595 = vlog2.f32 %v825_v5 }
 0x692   :  { %2470 = vmatmul.msk.f32.vlgmr.msrb.gmra.mxu3 %vm163_vm2, %v3259_v22 }
 0x693   :  { %1223 = vmatpush.msrb.mxu3 %v2995_v36 }
 0x694   :  { %v2596_v21 = vpop.eup %2595 }
 0x695   :  { %v827_v2 = vmul.f32 0.6931472, %v2596_v21  ;;  %1224 = vmatpush.msrb.mxu3 %v3007_v41 }
 0x697   :  { %v828_v23 = vsub.f32 %v820_v49, %v827_v2  ;;  %1225 = vmatpush.msrb.mxu3 %v3017_v46  ;;  %v3928_v49 = vld [vmem:[#allocation18_spill] sm:$0xff] }
 0x699   :  { %v832_v0 = vsel %vm829_vm1, 0.0, %v828_v23  ;;  %1226 = vmatpush.msrb.mxu3 %v3030_v50 }
 0x69a   :  { %833 = vst.msk [vmem:[#allocation12 + $0x1] sm:$0x1] %vm553_vm5, %v832_v0 }
 0x70d   :  { %v872_v6 = vpop.f32.mrf.mxu3 }
 0x70e   :  { %2467 = vmatmul.msk.f32.vlgmr.msrb.gmra.mxu0 %vm163_vm2, %v872_v6  ;;  %2469 = vmatmul.msk.f32.vlgmr.msrb.gmra.mxu2 %vm163_vm2, %v872_v6 }
 0x70f   :  { %1161 = vmatpush.msrb.mxu0 %v2983_v30  ;;  %1203 = vmatpush.msrb.mxu2 %v2985_v31 }
 0x711   :  { %1162 = vmatpush.msrb.mxu0 %v2987_v32  ;;  %1204 = vmatpush.msrb.mxu2 %v2993_v35  ;;  %v924_v32 = vpop.f32.mrf.mxu1 }
 0x713   :  { %1163 = vmatpush.msrb.mxu0 %v2999_v38  ;;  %1205 = vmatpush.msrb.mxu2 %v3003_v40 }
 0x715   :  { %1164 = vmatpush.msrb.mxu0 %v3013_v44  ;;  %1206 = vmatpush.msrb.mxu2 %v3015_v45  ;;  %v966_v45 = vpop.f32.mrf.mxu3 }
 0x716   :  { %2473 = vmatmul.msk.f32.vlgmr.msra.gmra.mxu0 %vm163_vm2, %v872_v6 }
 0x717   :  { %1283 = vmatpush.msra.mxu0 %v3052_v61 }
 0x719   :  { %1284 = vmatpush.msra.mxu0 %v3054_v62  ;;  %v1046_v21 = vpop.f32.mrf.mxu1 }
 0x71b   :  { %1285 = vmatpush.msra.mxu0 %v3057_v1 }
 0x71d   :  { %1286 = vmatpush.msra.mxu0 %v3063_v7 }
 0x78b   :  { %v904_v30 = vpop.f32.mrf.mxu0 }
 0x78c   :  { %v905_v31 = vadd.f32 %v904_v30, %v3099_v37  ;;  %v1047_v30 = vadd.f32 %v3156_v27, %v1046_v21 }
 0x78e   :  { %v927_v35 = vadd.f32 %v924_v32, %v905_v31 }
 0x790   :  { %v928_v36 = vadd.f32 %v927_v35, %v3105_v51 }
 0x791   :  { %v946_v38 = vpop.f32.mrf.mxu2 }
 0x792   :  { %v2471_v40 = vmul.f32 -1.442695, %v928_v36  ;;  %v947_v44 = vadd.f32 %v3110_v56, %v946_v38 }
 0x793   :  { %v1026_v0 = vpop.f32.mrf.mxu0 }
 0x794   :  { %2597 = vpow2.f32 %v2471_v40  ;;  %v969_v25 = vadd.f32 %v966_v45, %v947_v44  ;;  %v1027_v36 = vadd.f32 %v3151_v24, %v1026_v0 }
 0x796   :  { %v970_v3 = vadd.f32 %v3928_v49, %v969_v25 }
 0x798   :  { %v2472_v20 = vmul.f32 -1.442695, %v970_v3 }
 0x79a   :  { %v2598_v17 = vpop.eup %2597  ;;  %2599 = vpow2.f32 %v2472_v20 }
 0x79b   :  { %v974_v26 = vadd.f32 1.0, %v2598_v17 }
 0x79d   :  { %2601 = vrcp.f32 %v974_v26  ;;  %v986_v12 = vand.u32 2147483648, %v974_v26  ;;  %v984_v18 = vand.u32 2147483647, %v974_v26  ;;  %vm980_vm9 = vweird.f32 %v974_v26 }
 0x79f   :  { %v987_v6 = vor.u32 1.1754944e-38, %v986_v12  ;;  %vm985_vm3 = vcmp.eq.f32.partialorder %v984_v18, 8.507059e+37 }
 0x7a0   :  { %v2600_v52 = vpop.eup %2599 }
 0x7a1   :  { %v993_v57 = vadd.f32 1.0, %v2600_v52 }
 0x7a3   :  { %v2602_v15 = vpop.eup %2601  ;;  %2603 = vrcp.f32 %v993_v57  ;;  %v1005_v40 = vand.u32 2147483648, %v993_v57  ;;  %v1003_v45 = vand.u32 2147483647, %v993_v57  ;;  %vm999_vm6 = vweird.f32 %v993_v57 }
 0x7a4   :  { %v976_v59 = vmul.f32 %v2602_v15, %v974_v26  ;;  %vm981_vm8 = vweird.f32 %v2602_v15 }
 0x7a5   :  { %vm982_vm11 = vmor %vm980_vm9, %vm981_vm8  ;;  %v1006_v17 = vor.u32 1.1754944e-38, %v1005_v40  ;;  %vm1004_vm10 = vcmp.eq.f32.partialorder %v1003_v45, 8.507059e+37 }
 0x7a6   :  { %v977_v63 = vsub.f32 1.0, %v976_v59 }
 0x7a8   :  { %v978_v16 = vmul.f32 %v2602_v15, %v977_v63 }
 0x7a9   :  { %v2604_v5 = vpop.eup %2603 }
 0x7aa   :  { %v995_v2 = vmul.f32 %v2604_v5, %v993_v57  ;;  %v979_v23 = vadd.f32 %v2602_v15, %v978_v16  ;;  %vm1000_vm4 = vweird.f32 %v2604_v5 }
 0x7ab   :  { %vm1001_vm7 = vmor %vm999_vm6, %vm1000_vm4 }
 0x7ac   :  { %v996_v31 = vsub.f32 1.0, %v995_v2  ;;  %v983_v32 = vsel %vm982_vm11, %v2602_v15, %v979_v23  ;;  %v3391_v23 = vld [vmem:[#allocation11 + $0x38] sm:$0xff] }
 0x7ad   :  { %v988_v35 = vsel %vm985_vm3, %v987_v6, %v983_v32  ;;  %v3399_v6 = vld [vmem:[#allocation9 + $0x18] sm:$0xff]  ;;  %v3420_v32 = vld [vmem:[#allocation9 + $0x20] sm:$0xff] }
 0x7ae   :  { %v997_v38 = vmul.f32 %v2604_v5, %v996_v31  ;;  %v1049_v44 = vmul.f32 %v1047_v30, %v988_v35  ;;  %v3405_v30 = vld [vmem:[#allocation9 + $0x10] sm:$0xff]  ;;  %v3417_v31 = vld [vmem:[#allocation9] sm:$0xff] }
 0x7b0   :  { %v998_v25 = vadd.f32 %v2604_v5, %v997_v38  ;;  %v1050_v3 = vadd.f32 %v1049_v44, %v1027_v36 }
 0x7b2   :  { %v1002_v20 = vsel %vm1001_vm7, %v2604_v5, %v998_v25  ;;  %2605 = vtanh.f32 %v1050_v3 }
 0x7b3   :  { %v1007_v26 = vsel %vm1004_vm10, %v1006_v17, %v1002_v20 }
 0x7b4   :  { %v1052_v52 = vsub.f32 1.0, %v1007_v26  ;;  %v1054_v63 = vmul.f32 %v1007_v26, %v3259_v22  ;;  %v1106_v22 = vstv %s1104_s23 }
 0x7b8   :  { %v2606_v15 = vpop.eup %2605 }
 0x7b9   :  { %v1053_v59 = vmul.f32 %v2606_v15, %v1052_v52 }
 0x7bb   :  { %v3341_v12 = vadd.f32 %v1054_v63, %v1053_v59 }
 0x7bd   :  { %2475 = vmatmul.msk.f32.vlgmr.msra.gmra.mxu2 %vm163_vm2, %v3341_v12  ;;  %2482 = vmatmul.msk.f32.vlgmr.msrb.gmra.mxu1 %vm163_vm2, %v3341_v12 }
 0x7be   :  { %1333 = vmatpush.msra.mxu2 %v3123_v8  ;;  %1443 = vmatpush.msrb.mxu1 %v2991_v34 }
 0x7c0   :  { %1334 = vmatpush.msra.mxu2 %v3129_v10  ;;  %1444 = vmatpush.msrb.mxu1 %v3001_v39 }
 0x7c2   :  { %1335 = vmatpush.msra.mxu2 %v3135_v11  ;;  %1445 = vmatpush.msrb.mxu1 %v3009_v42 }
 0x7c4   :  { %1336 = vmatpush.msra.mxu2 %v3140_v13  ;;  %1446 = vmatpush.msrb.mxu1 %v3026_v48 }
 0x7c5   :  { %2488 = vmatmul.msk.f32.vlgmr.msra.gmra.mxu1 %vm163_vm2, %v3341_v12 }
 0x7c6   :  { %1565 = vmatpush.msra.mxu1 %v3040_v53 }
 0x7c8   :  { %1566 = vmatpush.msra.mxu1 %v3042_v54 }
 0x7ca   :  { %1567 = vmatpush.msra.mxu1 %v3045_v55  ;;  %v1108_v55 = vstv %s1107_s0 }
 0x7cb   :  { %vm1109_vm1 = vcmp.eq.s32.totalorder %v1108_v55, 1 }
 0x7cc   :  { %1568 = vmatpush.msra.mxu1 %v3048_v58  ;;  %v1140_v58 = vstv %s1139_s3 }
 0x7cd   :  { %vm3372_vm8 = vcmp.eq.s32.totalorder %v1140_v58, 1 }
 0x83a   :  { %v1186_v38 = vpop.f32.mrf.mxu1 }
 0x840   :  { %v1076_v34 = vpop.f32.mrf.mxu2 }
 0x841   :  { %v3362_v39 = vadd.f32 %v1076_v34, %v3184_v33 }
 0x843   :  { %3929 = vst [vmem:[#allocation18_spill] sm:$0xff] %v3362_v39  ;;  %v1079_v42 = vsel %vm553_vm5, %v3362_v39, -inf }
 0x844   :  { %1080 = vmax.xlane.f32.xlu2 %v1079_v42  ;;  %v1308_v42 = vpop.f32.mrf.mxu1 }
 0x845   :  { %v1309_v58 = vadd.f32 %v3156_v27, %v1308_v42 }
 0x8b7   :  { %v3366_v48 = vpop.xlane.xlu2 %1080 }
 0x8b8   :  { %3930 = vst [vmem:[#allocation21_spill] sm:$0xff] %v3366_v48  ;;  %vm1096_vm14 = vcmp.eq.f32.partialorder %v3362_v39, %v3366_v48 }
 0x8b9   :  { %v1097_v53 = vsel %vm1096_vm14, %v3206_v43, -16.0 }
 0x8ba   :  { %v1098_v54 = vsel %vm553_vm5, %v1097_v53, -inf }
 0x8bb   :  { %1099 = vmax.xlane.f32.xlu1 %v1098_v54 }
 0x92e   :  { %v1100_v57 = vpop.xlane.xlu1 %1099 }
 0x92f   :  { %v1101_v18 = vsub.f32 0.0, %v1100_v57 }
 0x931   :  { %v1110_v5 = vsel %vm1109_vm1, %v1106_v22, %v1101_v18  ;;  %vm3376_vm9 = vcmp.eq.f32.partialorder %v1101_v18, 1.0 }
 0x932   :  { %vm1111_vm11 = vcmp.eq.f32.partialorder %v3203_v29, %v1110_v5  ;;  %vm1142_vm3 = vmand %vm3372_vm8, %vm3376_vm9 }
 0x933   :  { %v2478_v2 = vsel %vm1111_vm11, 1.0, %v3927_v14 }
 0x934   :  { %2479 = vmatmul.msk.f32.vlgmr.msra.gmra.mxu3 %vm131_vm0, %v2478_v2 }
 0x935   :  { %1393 = vmatpush.msra.mxu3 %v3194_v28 }
 0x937   :  { %1394 = vmatpush.msra.mxu3 %v3024_v47  ;;  %v3402_v47 = vld [vmem:[#allocation9 + $0x38] sm:$0xff] }
 0x93c   :  { %2484 = vmatmul.msk.f32.vlgmr.msrb.gmra.mxu3 %vm163_vm2, %v3341_v12 }
 0x93d   :  { %1485 = vmatpush.msrb.mxu3 %v3391_v23 }
 0x93f   :  { %1486 = vmatpush.msrb.mxu3 %v3007_v41  ;;  %v3408_v41 = vld [vmem:[#allocation9 + $0x30] sm:$0xff] }
 0x941   :  { %1487 = vmatpush.msrb.mxu3 %v3017_v46  ;;  %v3411_v46 = vld [vmem:[#allocation9 + $0x8] sm:$0xff] }
 0x943   :  { %1488 = vmatpush.msrb.mxu3 %v3030_v50  ;;  %v3414_v50 = vld [vmem:[#allocation9 + $0x28] sm:$0xff] }
 0x9b7   :  { %v1134_v0 = vpop.f32.mrf.mxu3 }
 0x9b8   :  { %2481 = vmatmul.msk.f32.vlgmr.msrb.gmra.mxu0 %vm163_vm2, %v1134_v0  ;;  %2483 = vmatmul.msk.f32.vlgmr.msrb.gmra.mxu2 %vm163_vm2, %v1134_v0 }
 0x9b9   :  { %1423 = vmatpush.msrb.mxu0 %v3399_v6  ;;  %1465 = vmatpush.msrb.mxu2 %v3402_v47 }
 0x9bb   :  { %1424 = vmatpush.msrb.mxu0 %v3405_v30  ;;  %1466 = vmatpush.msrb.mxu2 %v3408_v41 }
 0x9bd   :  { %1425 = vmatpush.msrb.mxu0 %v3411_v46  ;;  %1467 = vmatpush.msrb.mxu2 %v3414_v50 }
 0x9bf   :  { %1426 = vmatpush.msrb.mxu0 %v3417_v31  ;;  %1468 = vmatpush.msrb.mxu2 %v3420_v32  ;;  %v1228_v20 = vpop.f32.mrf.mxu3 }
 0x9c0   :  { %2487 = vmatmul.msk.f32.vlgmr.msra.gmra.mxu0 %vm163_vm2, %v1134_v0 }
 0x9c1   :  { %1545 = vmatpush.msra.mxu0 %v3052_v61 }
 0x9c3   :  { %1546 = vmatpush.msra.mxu0 %v3054_v62 }
 0x9c5   :  { %1547 = vmatpush.msra.mxu0 %v3057_v1 }
 0x9c7   :  { %1548 = vmatpush.msra.mxu0 %v3063_v7 }
 0xa35   :  { %v1166_v35 = vpop.f32.mrf.mxu0 }
 0xa36   :  { %v1167_v36 = vadd.f32 %v1166_v35, %v3099_v37 }
 0xa38   :  { %v1189_v40 = vadd.f32 %v1186_v38, %v1167_v36 }
 0xa3a   :  { %v1190_v44 = vadd.f32 %v1189_v40, %v3105_v51 }
 0xa3b   :  { %v1208_v45 = vpop.f32.mrf.mxu2 }
 0xa3c   :  { %v2485_v25 = vmul.f32 -1.442695, %v1190_v44  ;;  %v1209_v3 = vadd.f32 %v3110_v56, %v1208_v45 }
 0xa3e   :  { %2607 = vpow2.f32 %v2485_v25  ;;  %v1231_v61 = vadd.f32 %v1228_v20, %v1209_v3 }
 0xa40   :  { %v1232_v62 = vadd.f32 %v3928_v49, %v1231_v61  ;;  %v1288_v49 = vpop.f32.mrf.mxu0 }
 0xa41   :  { %v1289_v5 = vadd.f32 %v3151_v24, %v1288_v49 }
 0xa42   :  { %v2486_v17 = vmul.f32 -1.442695, %v1232_v62  ;;  %v3442_v62 = vld [vmem:[#allocation11 + $0x18] sm:$0xff] }
 0xa44   :  { %v2608_v1 = vpop.eup %2607  ;;  %2609 = vpow2.f32 %v2486_v17  ;;  %v3446_v17 = vld [vmem:[#allocation11 + $0x10] sm:$0xff] }
 0xa45   :  { %v1236_v7 = vadd.f32 1.0, %v2608_v1  ;;  %v3454_v1 = vld [vmem:[#allocation11] sm:$0xff] }
 0xa47   :  { %2611 = vrcp.f32 %v1236_v7  ;;  %v1248_v59 = vand.u32 2147483648, %v1236_v7  ;;  %v1246_v56 = vand.u32 2147483647, %v1236_v7  ;;  %vm1242_vm6 = vweird.f32 %v1236_v7 }
 0xa49   :  { %v1249_v55 = vor.u32 1.1754944e-38, %v1248_v59  ;;  %vm1247_vm10 = vcmp.eq.f32.partialorder %v1246_v56, 8.507059e+37  ;;  %v1402_v59 = vstv %s1401_s8 }
 0xa4a   :  { %v2610_v26 = vpop.eup %2609 }
 0xa4b   :  { %v1255_v37 = vadd.f32 1.0, %v2610_v26 }
 0xa4d   :  { %v2612_v52 = vpop.eup %2611  ;;  %2613 = vrcp.f32 %v1255_v37  ;;  %v1267_v0 = vand.u32 2147483648, %v1255_v37  ;;  %v1265_v36 = vand.u32 2147483647, %v1255_v37  ;;  %vm1261_vm1 = vweird.f32 %v1255_v37 }
 0xa4e   :  { %v1238_v15 = vmul.f32 %v2612_v52, %v1236_v7  ;;  %vm1243_vm4 = vweird.f32 %v2612_v52 }
 0xa4f   :  { %vm1244_vm7 = vmor %vm1242_vm6, %vm1243_vm4  ;;  %v1268_v45 = vor.u32 1.1754944e-38, %v1267_v0  ;;  %vm1266_vm4 = vcmp.eq.f32.partialorder %v1265_v36, 8.507059e+37  ;;  %v3536_v0 = vld [vmem:[#allocation9 + $0x40] sm:$0xff] }
 0xa50   :  { %v1239_v51 = vsub.f32 1.0, %v1238_v15  ;;  %v3542_v36 = vld [vmem:[%s3895_s10] sm:$0x1] }
 0xa52   :  { %v1240_v63 = vmul.f32 %v2612_v52, %v1239_v51 }
 0xa53   :  { %v2614_v34 = vpop.eup %2613 }
 0xa54   :  { %v1257_v53 = vmul.f32 %v2614_v34, %v1255_v37  ;;  %v1241_v54 = vadd.f32 %v2612_v52, %v1240_v63  ;;  %vm1262_vm14 = vweird.f32 %v2614_v34  ;;  %v1368_v63 = vstv %s1366_s27 }
 0xa55   :  { %vm1263_vm11 = vmor %vm1261_vm1, %vm1262_vm14 }
 0xa56   :  { %v1258_v22 = vsub.f32 1.0, %v1257_v53  ;;  %v1245_v57 = vsel %vm1244_vm7, %v2612_v52, %v1241_v54 }
 0xa57   :  { %v1250_v18 = vsel %vm1247_vm10, %v1249_v55, %v1245_v57  ;;  %vm3482_vm10 = vcmp.eq.s32.totalorder %v1402_v59, 1  ;;  %v3501_v55 = vld [vmem:[%s3892_s7] sm:$0xff] }
 0xa58   :  { %v1259_v2 = vmul.f32 %v2614_v34, %v1258_v22  ;;  %v1311_v35 = vmul.f32 %v1309_v58, %v1250_v18  ;;  %v3507_v58 = vld [vmem:[#allocation11 + $0x30] sm:$0xff]  ;;  %v3510_v22 = vld [vmem:[#allocation11 + $0x28] sm:$0xff]  ;;  %v3527_v18 = vld [vmem:[#allocation9 + $0x58] sm:$0xff] }
 0xa5a   :  { %v1260_v38 = vadd.f32 %v2614_v34, %v1259_v2  ;;  %v1312_v40 = vadd.f32 %v1311_v35, %v1289_v5  ;;  %v3530_v5 = vld [vmem:[#allocation9 + $0x50] sm:$0xff]  ;;  %v3533_v2 = vld [vmem:[#allocation9 + $0x48] sm:$0xff] }
 0xa5c   :  { %v1264_v44 = vsel %vm1263_vm11, %v2614_v34, %v1260_v38  ;;  %2615 = vtanh.f32 %v1312_v40 }
 0xa5d   :  { %v1269_v27 = vsel %vm1266_vm4, %v1268_v45, %v1264_v44  ;;  %v3548_v45 = vld [vmem:[%s3896_s11] sm:$0x1] }
 0xa5e   :  { %v1314_v25 = vsub.f32 1.0, %v1269_v27  ;;  %v1316_v61 = vmul.f32 %v1269_v27, %v3341_v12  ;;  %v3450_v12 = vld [vmem:[#allocation11 + $0x8] sm:$0xff] }
 0xa62   :  { %v2616_v3 = vpop.eup %2615 }
 0xa63   :  { %v1315_v20 = vmul.f32 %v2616_v3, %v1314_v25 }
 0xa65   :  { %v3435_v24 = vadd.f32 %v1316_v61, %v1315_v20  ;;  %v3554_v20 = vld [vmem:[%s3895_s10 + $0x1] sm:$0x1] }
 0xa67   :  { %2489 = vmatmul.msk.f32.vlgmr.msra.gmra.mxu2 %vm163_vm2, %v3435_v24  ;;  %2496 = vmatmul.msk.f32.vlgmr.msrb.gmra.mxu1 %vm163_vm2, %v3435_v24 }
 0xa68   :  { %1595 = vmatpush.msra.mxu2 %v3123_v8  ;;  %1705 = vmatpush.msrb.mxu1 %v3442_v62  ;;  %v3459_v8 = vld [vmem:[#allocation11 + $0x58] sm:$0xff] }
 0xa6a   :  { %1596 = vmatpush.msra.mxu2 %v3129_v10  ;;  %1706 = vmatpush.msrb.mxu1 %v3446_v17  ;;  %v3462_v10 = vld [vmem:[#allocation11 + $0x50] sm:$0xff] }
 0xa6c   :  { %1597 = vmatpush.msra.mxu2 %v3135_v11  ;;  %1707 = vmatpush.msrb.mxu1 %v3450_v12  ;;  %v3465_v11 = vld [vmem:[#allocation11 + $0x48] sm:$0xff] }
 0xa6e   :  { %1598 = vmatpush.msra.mxu2 %v3140_v13  ;;  %1708 = vmatpush.msrb.mxu1 %v3454_v1  ;;  %v3468_v13 = vld [vmem:[#allocation11 + $0x40] sm:$0xff] }
 0xa6f   :  { %2502 = vmatmul.msk.f32.vlgmr.msra.gmra.mxu1 %vm163_vm2, %v3435_v24 }
 0xa70   :  { %1827 = vmatpush.msra.mxu1 %v3459_v8 }
 0xa72   :  { %1828 = vmatpush.msra.mxu1 %v3462_v10 }
 0xa74   :  { %1829 = vmatpush.msra.mxu1 %v3465_v11 }
 0xa76   :  { %1830 = vmatpush.msra.mxu1 %v3468_v13 }
 0xae4   :  { %v1448_v40 = vpop.f32.mrf.mxu1 }
 0xaea   :  { %v1338_v7 = vpop.f32.mrf.mxu2 }
 0xaeb   :  { %v3472_v26 = vadd.f32 %v1338_v7, %v3184_v33  ;;  %v1370_v33 = vstv %s1369_s26 }
 0xaec   :  { %vm1371_vm7 = vcmp.eq.s32.totalorder %v1370_v33, 1 }
 0xaed   :  { %3935 = vst [vmem:[#allocation22_spill] sm:$0xff] %v3472_v26  ;;  %v1341_v37 = vsel %vm553_vm5, %v3472_v26, -inf }
 0xaee   :  { %1342 = vmax.xlane.f32.xlu2 %v1341_v37 }
 0xb61   :  { %v3476_v52 = vpop.xlane.xlu2 %1342 }
 0xb62   :  { %3936 = vst [vmem:[#allocation23_spill] sm:$0xff] %v3476_v52  ;;  %vm1358_vm6 = vcmp.eq.f32.partialorder %v3472_v26, %v3476_v52 }
 0xb63   :  { %v1359_v15 = vsel %vm1358_vm6, %v3206_v43, -16.0 }
 0xb64   :  { %v1360_v51 = vsel %vm553_vm5, %v1359_v15, -inf  ;;  %v3560_v15 = vld [vmem:[%s3896_s11 + $0x1] sm:$0x1] }
 0xb65   :  { %1361 = vmax.xlane.f32.xlu1 %v1360_v51 }
 0xbd8   :  { %v1362_v56 = vpop.xlane.xlu1 %1361 }
 0xbd9   :  { %v1363_v42 = vsub.f32 0.0, %v1362_v56 }
 0xbdb   :  { %v1372_v53 = vsel %vm1371_vm7, %v1368_v63, %v1363_v42  ;;  %vm3486_vm14 = vcmp.eq.f32.partialorder %v1363_v42, 1.0 }
 0xbdc   :  { %vm1373_vm1 = vcmp.eq.f32.partialorder %v3203_v29, %v1372_v53  ;;  %vm3949_vm12 = vmand %vm3482_vm10, %vm3486_vm14 }
 0xbdd   :  { %v2492_v49 = vsel %vm1373_vm1, 1.0, %v3927_v14  ;;  %v2494_v9 = vsel %vm3949_vm12, 1.0, %v3927_v14 }
 0xbde   :  { %2493 = vmatmul.msk.f32.vlgmr.msra.gmra.mxu3 %vm131_vm0, %v2492_v49 }
 0xbdf   :  { %1655 = vmatpush.msra.mxu3 %v3194_v28  ;;  %v3513_v28 = vld [vmem:[#allocation11 + $0x20] sm:$0xff] }
 0xbe1   :  { %1656 = vmatpush.msra.mxu3 %v3501_v55 }
 0xbe6   :  { %2498 = vmatmul.msk.f32.vlgmr.msrb.gmra.mxu3 %vm163_vm2, %v3435_v24 }
 0xbe7   :  { %1747 = vmatpush.msrb.mxu3 %v3391_v23 }
 0xbe9   :  { %1748 = vmatpush.msrb.mxu3 %v3507_v58 }
 0xbeb   :  { %1749 = vmatpush.msrb.mxu3 %v3510_v22 }
 0xbed   :  { %1750 = vmatpush.msrb.mxu3 %v3513_v28 }
 0xc61   :  { %v1396_v57 = vpop.f32.mrf.mxu3 }
 0xc62   :  { %2495 = vmatmul.msk.f32.vlgmr.msrb.gmra.mxu0 %vm163_vm2, %v1396_v57  ;;  %2497 = vmatmul.msk.f32.vlgmr.msrb.gmra.mxu2 %vm163_vm2, %v1396_v57 }
 0xc63   :  { %1685 = vmatpush.msrb.mxu0 %v3399_v6  ;;  %1727 = vmatpush.msrb.mxu2 %v3402_v47 }
 0xc65   :  { %1686 = vmatpush.msrb.mxu0 %v3405_v30  ;;  %1728 = vmatpush.msrb.mxu2 %v3408_v41 }
 0xc67   :  { %1687 = vmatpush.msrb.mxu0 %v3411_v46  ;;  %1729 = vmatpush.msrb.mxu2 %v3414_v50 }
 0xc69   :  { %1688 = vmatpush.msrb.mxu0 %v3417_v31  ;;  %1730 = vmatpush.msrb.mxu2 %v3420_v32  ;;  %v1490_v7 = vpop.f32.mrf.mxu3 }
 0xc6a   :  { %2501 = vmatmul.msk.f32.vlgmr.msra.gmra.mxu0 %vm163_vm2, %v1396_v57 }
 0xc6b   :  { %1807 = vmatpush.msra.mxu0 %v3527_v18 }
 0xc6d   :  { %1808 = vmatpush.msra.mxu0 %v3530_v5 }
 0xc6f   :  { %1809 = vmatpush.msra.mxu0 %v3533_v2 }
 0xc71   :  { %1810 = vmatpush.msra.mxu0 %v3536_v0 }
 0xcdf   :  { %v1428_v35 = vpop.f32.mrf.mxu0 }
 0xce0   :  { %v1429_v38 = vadd.f32 %v3542_v36, %v1428_v35 }
 0xce2   :  { %v1451_v44 = vadd.f32 %v1448_v40, %v1429_v38 }
 0xce4   :  { %v1452_v27 = vadd.f32 %v3548_v45, %v1451_v44 }
 0xce5   :  { %v1470_v25 = vpop.f32.mrf.mxu2 }
 0xce6   :  { %v2499_v3 = vmul.f32 -1.442695, %v1452_v27  ;;  %v1471_v61 = vadd.f32 %v3554_v20, %v1470_v25  ;;  %v1570_v27 = vpop.f32.mrf.mxu1 }
 0xce8   :  { %2617 = vpow2.f32 %v2499_v3  ;;  %v1493_v37 = vadd.f32 %v1490_v7, %v1471_v61  ;;  %v1550_v61 = vpop.f32.mrf.mxu0 }
 0xcea   :  { %v1494_v51 = vadd.f32 %v3560_v15, %v1493_v37  ;;  %v3566_v37 = vld [vmem:[%s3896_s11 + $0x2] sm:$0x1]  ;;  %s2413_s11 = sshll.u32 %s3899_s14, 4  ;;  %s2414_s11 = int_to_ptr.hbm [resolvable:$true] %s2413_s11 }
 0xcec   :  { %v2500_v33 = vmul.f32 -1.442695, %v1494_v51  ;;  %v1571_v51 = vadd.f32 %v3566_v37, %v1570_v27 }
 0xcee   :  { %v2618_v59 = vpop.eup %2617  ;;  %2619 = vpow2.f32 %v2500_v33 }
 0xcef   :  { %v1498_v63 = vadd.f32 1.0, %v2618_v59 }
 0xcf1   :  { %2621 = vrcp.f32 %v1498_v63  ;;  %v1510_v35 = vand.u32 2147483648, %v1498_v63  ;;  %v1508_v40 = vand.u32 2147483647, %v1498_v63  ;;  %vm1504_vm6 = vweird.f32 %v1498_v63 }
 0xcf3   :  { %v1511_v7 = vor.u32 1.1754944e-38, %v1510_v35  ;;  %vm1509_vm1 = vcmp.eq.f32.partialorder %v1508_v40, 8.507059e+37 }
 0xcf4   :  { %v2620_v56 = vpop.eup %2619 }
 0xcf5   :  { %v1517_v42 = vadd.f32 1.0, %v2620_v56 }
 0xcf7   :  { %v2622_v53 = vpop.eup %2621  ;;  %2623 = vrcp.f32 %v1517_v42  ;;  %v1529_v35 = vand.u32 2147483648, %v1517_v42  ;;  %v1527_v4 = vand.u32 2147483647, %v1517_v42 }
 0xcf8   :  { %v1500_v49 = vmul.f32 %v2622_v53, %v1498_v63  ;;  %vm1505_vm4 = vweird.f32 %v2622_v53 }
 0xcf9   :  { %vm1506_vm7 = vmor %vm1504_vm6, %vm1505_vm4  ;;  %vm1523_vm6 = vweird.f32 %v1517_v42 }
 0xcfa   :  { %v1501_v57 = vsub.f32 1.0, %v1500_v49  ;;  %v3572_v49 = vld [vmem:[%s3895_s10 + $0x2] sm:$0x1] }
 0xcfb   :  { %v1551_v63 = vadd.f32 %v3572_v49, %v1550_v61 }
 0xcfc   :  { %v1502_v38 = vmul.f32 %v2622_v53, %v1501_v57 }
 0xcfd   :  { %v2624_v44 = vpop.eup %2623 }
 0xcfe   :  { %v1519_v25 = vmul.f32 %v2624_v44, %v1517_v42  ;;  %v1503_v3 = vadd.f32 %v2622_v53, %v1502_v38  ;;  %vm1524_vm4 = vweird.f32 %v2624_v44 }
 0xcff   :  { %vm1525_vm11 = vmor %vm1523_vm6, %vm1524_vm4 }
 0xd00   :  { %v1520_v33 = vsub.f32 1.0, %v1519_v25  ;;  %v1507_v59 = vsel %vm1506_vm7, %v2622_v53, %v1503_v3  ;;  %v1530_v53 = vor.u32 1.1754944e-38, %v1529_v35  ;;  %vm1528_vm7 = vcmp.eq.f32.partialorder %v1527_v4, 8.507059e+37  ;;  %v3592_v4 = vld [vmem:[%s3897_s12 + $0x10] sm:$0xff] }
 0xd01   :  { %v1512_v56 = vsel %vm1509_vm1, %v1511_v7, %v1507_v59 }
 0xd02   :  { %v1521_v57 = vmul.f32 %v2624_v44, %v1520_v33  ;;  %v1573_v38 = vmul.f32 %v1571_v51, %v1512_v56 }
 0xd04   :  { %v1522_v26 = vadd.f32 %v2624_v44, %v1521_v57  ;;  %v1574_v52 = vadd.f32 %v1573_v38, %v1551_v63 }
 0xd06   :  { %v1526_v27 = vsel %vm1525_vm11, %v2624_v44, %v1522_v26  ;;  %2625 = vtanh.f32 %v1574_v52  ;;  %v3585_v26 = vld [vmem:[%s3897_s12 + $0x18] sm:$0xff]  ;;  %v3606_v52 = vld [vmem:[%s3897_s12] sm:$0xff] }
 0xd07   :  { %v1531_v40 = vsel %vm1528_vm7, %v1530_v53, %v1526_v27  ;;  %v3619_v44 = vld [vmem:[%s3898_s13] sm:$0x1]  ;;  %s2505_s13 = sld [smem:[#allocation2 + $0x4]] }
 0xd08   :  { %v1576_v25 = vsub.f32 1.0, %v1531_v40  ;;  %v1578_v59 = vmul.f32 %v1531_v40, %v3435_v24  ;;  %v3599_v24 = vld [vmem:[%s3897_s12 + $0x8] sm:$0xff]  ;;  %s2504_s12 = sld [smem:[#allocation6 + $0x4]] }
 0xd0c   :  { %v2626_v3 = vpop.eup %2625 }
 0xd0d   :  { %v1577_v7 = vmul.f32 %v2626_v3, %v1576_v25  ;;  %s1628_s27 = scvt.s32.f32 %s2505_s13 }
 0xd0e   :  { %p1629_p8 = scmp.gt.s32.totalorder %s2504_s12, 0  ;;  %p1661_p9 = scmp.eq.s32.totalorder %s2504_s12, 0 }
 0xd0f   :  { %v3576_v61 = vadd.f32 %v1578_v59, %v1577_v7  ;;  %v1630_v3 = vstv %s1628_s27  ;;  %v3941_v59 = vmov 0 }
 0xd10   :  { %s1631_s26 = scalar_select %p1629_p8, 1, 0 }
 0xd11   :  { %2503 = vmatmul.msk.f32.vlgmr.msra.gmra.mxu2 %vm163_vm2, %v3576_v61  ;;  %2510 = vmatmul.msk.f32.vlgmr.msrb.gmra.mxu1 %vm163_vm2, %v3576_v61  ;;  %s1663_s8 = scalar_select %p1661_p9, 1, 0 }
 0xd12   :  { %1857 = vmatpush.msra.mxu2 %v3585_v26  ;;  %1967 = vmatpush.msrb.mxu1 %v3442_v62  ;;  %v1632_v40 = vstv %s1631_s26 }
 0xd13   :  { %v1664_v25 = vstv %s1663_s8  ;;  %vm1633_vm1 = vcmp.eq.s32.totalorder %v1632_v40, 1 }
 0xd14   :  { %1858 = vmatpush.msra.mxu2 %v3592_v4  ;;  %1968 = vmatpush.msrb.mxu1 %v3446_v17  ;;  %vm3626_vm4 = vcmp.eq.s32.totalorder %v1664_v25, 1 }
 0xd15   :  { %v3942_v59 = vsel %vm3626_vm4, 4294967295, %v3941_v59 }
 0xd16   :  { %1859 = vmatpush.msra.mxu2 %v3599_v24  ;;  %1969 = vmatpush.msrb.mxu1 %v3450_v12  ;;  %3943 = vst [vmem:[#allocation24_spill] sm:$0xff] %v3942_v59 }
 0xd18   :  { %1860 = vmatpush.msra.mxu2 %v3606_v52  ;;  %1970 = vmatpush.msrb.mxu1 %v3454_v1 }
 0xd19   :  { %2516 = vmatmul.msk.f32.vlgmr.msra.gmra.mxu1 %vm163_vm2, %v3576_v61 }
 0xd1a   :  { %2089 = vmatpush.msra.mxu1 %v3459_v8 }
 0xd1c   :  { %2090 = vmatpush.msra.mxu1 %v3462_v10 }
 0xd1e   :  { %2091 = vmatpush.msra.mxu1 %v3465_v11 }
 0xd20   :  { %2092 = vmatpush.msra.mxu1 %v3468_v13 }
 0xd94   :  { %v1600_v42 = vpop.f32.mrf.mxu2 }
 0xd95   :  { %v1601_v51 = vadd.f32 %v3619_v44, %v1600_v42 }
 0xd97   :  { %v1603_v33 = vsel %vm553_vm5, %v1601_v51, -inf }
 0xd98   :  { %1604 = vmax.xlane.f32.xlu2 %v1603_v33  ;;  %v3944_v33 = vmov 0 }
 0xe0b   :  { %v1605_v56 = vpop.xlane.xlu2 %1604 }
 0xe0c   :  { %v1606_v63 = vsub.f32 %v1601_v51, %v1605_v56  ;;  %vm1620_vm11 = vcmp.eq.f32.partialorder %v1601_v51, %v1605_v56 }
 0xe0d   :  { %v1621_v57 = vsel %vm1620_vm11, %v3206_v43, -16.0 }
 0xe0e   :  { %v1607_v35 = vmul.f32 1.442695, %v1606_v63  ;;  %v1622_v38 = vsel %vm553_vm5, %v1621_v57, -inf  ;;  %v3644_v57 = vld [vmem:[%s3892_s7 + $0x8] sm:$0xff]  ;;  %s2518_s7 = sld [smem:[#allocation6 + $0x5]] }
 0xe0f   :  { %1623 = vmax.xlane.f32.xlu1 %v1622_v38 }
 0xe10   :  { %2627 = vpow2.f32 %v1607_v35  ;;  %v2466_v35 = vsel %vm880_vm15, 1.0, %v3927_v14 }
 0xe14   :  { %p1891_p10 = scmp.gt.s32.totalorder %s2518_s7, 0  ;;  %p1923_p11 = scmp.eq.s32.totalorder %s2518_s7, 0 }
 0xe16   :  { %v2628_v27 = vpop.eup %2627  ;;  %s1893_s1 = scalar_select %p1891_p10, 1, 0 }
 0xe17   :  { %v1609_v53 = vsel %vm553_vm5, %v2628_v27, 0.0  ;;  %v2480_v27 = vsel %vm1142_vm3, 1.0, %v3927_v14  ;;  %s1925_s16 = scalar_select %p1923_p11, 1, 0 }
 0xe18   :  { %1610 = vadd.xlane.f32.xlu0 %v1609_v53  ;;  %v3947_v53 = vmax.f32 %v3307_v19, 0.0 }
 0xe1a   :  { %v3662_v40 = vmax.f32 %v3947_v53, %v2466_v35 }
 0xe1c   :  { %3948 = vst [vmem:[#allocation26_spill] sm:$0xff] %v3662_v40  ;;  %v3671_v60 = vmax.f32 %v3662_v40, %v2480_v27 }
 0xe1e   :  { %3950 = vst [vmem:[#allocation27_spill] sm:$0xff] %v3671_v60  ;;  %v3677_v19 = vmax.f32 %v3671_v60, %v2494_v9 }
 0xe20   :  { %3951 = vst [vmem:[#allocation28_spill] sm:$0xff] %v3677_v19  ;;  %vm1615_vm13 = vcmp.gt.f32.partialorder %v3677_v19, 0.0 }
 0xe82   :  { %v1624_v7 = vpop.xlane.xlu1 %1623 }
 0xe83   :  { %v1625_v42 = vsub.f32 0.0, %v1624_v7  ;;  %v1710_v7 = vpop.f32.mrf.mxu1 }
 0xe85   :  { %v1634_v51 = vsel %vm1633_vm1, %v1630_v3, %v1625_v42  ;;  %vm3630_vm6 = vcmp.eq.f32.partialorder %v1625_v42, 1.0 }
 0xe86   :  { %v3945_v33 = vsel %vm3630_vm6, 4294967295, %v3944_v33  ;;  %vm1635_vm7 = vcmp.eq.f32.partialorder %v3203_v29, %v1634_v51  ;;  %vm1666_vm11 = vmand %vm3626_vm4, %vm3630_vm6 }
 0xe87   :  { %3946 = vst [vmem:[#allocation25_spill] sm:$0xff] %v3945_v33  ;;  %v2506_v56 = vsel %vm1635_vm7, 1.0, %v3927_v14 }
 0xe88   :  { %2507 = vmatmul.msk.f32.vlgmr.msra.gmra.mxu3 %vm131_vm0, %v2506_v56 }
 0xe89   :  { %1917 = vmatpush.msra.mxu3 %v3644_v57 }
 0xe8b   :  { %v1611_v38 = vpop.xlane.xlu0 %1610  ;;  %1918 = vmatpush.msra.mxu3 %v3501_v55 }
 0xe8c   :  { %2629 = vlog2.f32 %v1611_v38 }
 0xe90   :  { %2512 = vmatmul.msk.f32.vlgmr.msrb.gmra.mxu3 %vm163_vm2, %v3576_v61 }
 0xe91   :  { %2009 = vmatpush.msrb.mxu3 %v3391_v23 }
 0xe92   :  { %v2630_v16 = vpop.eup %2629 }
 0xe93   :  { %v1613_v21 = vmul.f32 0.6931472, %v2630_v16  ;;  %2010 = vmatpush.msrb.mxu3 %v3507_v58 }
 0xe95   :  { %v1614_v34 = vsub.f32 %v1606_v63, %v1613_v21  ;;  %2011 = vmatpush.msrb.mxu3 %v3510_v22 }
 0xe97   :  { %v1618_v54 = vsel %vm1615_vm13, 0.0, %v1614_v34  ;;  %2012 = vmatpush.msrb.mxu3 %v3513_v28 }
 0xe98   :  { %1619 = vst.msk [vmem:[#allocation12 + $0x4] sm:$0x1] %vm553_vm5, %v1618_v54 }
 0xf0b   :  { %v1658_v25 = vpop.f32.mrf.mxu3 }
 0xf0c   :  { %2509 = vmatmul.msk.f32.vlgmr.msrb.gmra.mxu0 %vm163_vm2, %v1658_v25  ;;  %2511 = vmatmul.msk.f32.vlgmr.msrb.gmra.mxu2 %vm163_vm2, %v1658_v25 }
 0xf0d   :  { %1947 = vmatpush.msrb.mxu0 %v3399_v6  ;;  %1989 = vmatpush.msrb.mxu2 %v3402_v47 }
 0xf0f   :  { %1948 = vmatpush.msrb.mxu0 %v3405_v30  ;;  %1990 = vmatpush.msrb.mxu2 %v3408_v41 }
 0xf11   :  { %1949 = vmatpush.msrb.mxu0 %v3411_v46  ;;  %1991 = vmatpush.msrb.mxu2 %v3414_v50 }
 0xf13   :  { %1950 = vmatpush.msrb.mxu0 %v3417_v31  ;;  %1992 = vmatpush.msrb.mxu2 %v3420_v32  ;;  %v1752_v27 = vpop.f32.mrf.mxu3 }
 0xf14   :  { %2515 = vmatmul.msk.f32.vlgmr.msra.gmra.mxu0 %vm163_vm2, %v1658_v25 }
 0xf15   :  { %2069 = vmatpush.msra.mxu0 %v3527_v18 }
 0xf17   :  { %2070 = vmatpush.msra.mxu0 %v3530_v5 }
 0xf19   :  { %2071 = vmatpush.msra.mxu0 %v3533_v2 }
 0xf1b   :  { %2072 = vmatpush.msra.mxu0 %v3536_v0 }
 0xf89   :  { %v1690_v63 = vpop.f32.mrf.mxu0 }
 0xf8a   :  { %v1691_v3 = vadd.f32 %v3542_v36, %v1690_v63 }
 0xf8c   :  { %v1713_v42 = vadd.f32 %v1710_v7, %v1691_v3 }
 0xf8e   :  { %v1714_v51 = vadd.f32 %v3548_v45, %v1713_v42 }
 0xf8f   :  { %v1732_v56 = vpop.f32.mrf.mxu2 }
 0xf90   :  { %v2513_v35 = vmul.f32 -1.442695, %v1714_v51  ;;  %v1733_v38 = vadd.f32 %v3554_v20, %v1732_v56 }
 0xf92   :  { %2631 = vpow2.f32 %v2513_v35  ;;  %v1755_v53 = vadd.f32 %v1752_v27, %v1733_v38  ;;  %v1832_v35 = vpop.f32.mrf.mxu1 }
 0xf94   :  { %v1756_v9 = vadd.f32 %v3560_v15, %v1755_v53  ;;  %v1812_v53 = vpop.f32.mrf.mxu0 }
 0xf96   :  { %v2514_v16 = vmul.f32 -1.442695, %v1756_v9 }
 0xf98   :  { %v2632_v21 = vpop.eup %2631  ;;  %2633 = vpow2.f32 %v2514_v16  ;;  %v1833_v16 = vadd.f32 %v3566_v37, %v1832_v35 }
 0xf99   :  { %v1760_v34 = vadd.f32 1.0, %v2632_v21 }
 0xf9b   :  { %2635 = vrcp.f32 %v1760_v34  ;;  %v1772_v42 = vand.u32 2147483648, %v1760_v34  ;;  %v1770_v56 = vand.u32 2147483647, %v1760_v34  ;;  %vm1766_vm8 = vweird.f32 %v1760_v34 }
 0xf9d   :  { %v1773_v9 = vor.u32 1.1754944e-38, %v1772_v42  ;;  %vm1771_vm3 = vcmp.eq.f32.partialorder %v1770_v56, 8.507059e+37 }
 0xf9e   :  { %v2634_v54 = vpop.eup %2633 }
 0xf9f   :  { %v1779_v25 = vadd.f32 1.0, %v2634_v54 }
 0xfa1   :  { %v2636_v63 = vpop.eup %2635  ;;  %2637 = vrcp.f32 %v1779_v25  ;;  %v1789_v40 = vand.u32 2147483647, %v1779_v25  ;;  %vm1785_vm14 = vweird.f32 %v1779_v25 }
 0xfa2   :  { %v1762_v3 = vmul.f32 %v2636_v63, %v1760_v34  ;;  %vm1767_vm15 = vweird.f32 %v2636_v63 }
 0xfa3   :  { %vm1768_vm9 = vmor %vm1766_vm8, %vm1767_vm15  ;;  %vm1790_vm7 = vcmp.eq.f32.partialorder %v1789_v40, 8.507059e+37 }
 0xfa4   :  { %v1763_v7 = vsub.f32 1.0, %v1762_v3  ;;  %v1813_v3 = vadd.f32 %v3572_v49, %v1812_v53 }
 0xfa6   :  { %v1764_v51 = vmul.f32 %v2636_v63, %v1763_v7  ;;  %v1791_v7 = vand.u32 2147483648, %v1779_v25 }
 0xfa7   :  { %v2638_v60 = vpop.eup %2637 }
 0xfa8   :  { %v1781_v38 = vmul.f32 %v2638_v60, %v1779_v25  ;;  %v1765_v27 = vadd.f32 %v2636_v63, %v1764_v51  ;;  %vm1786_vm10 = vweird.f32 %v2638_v60  ;;  %v1792_v48 = vor.u32 1.1754944e-38, %v1791_v7 }
 0xfa9   :  { %vm1787_vm1 = vmor %vm1785_vm14, %vm1786_vm10 }
 0xfaa   :  { %v1782_v21 = vsub.f32 1.0, %v1781_v38  ;;  %v1769_v54 = vsel %vm1768_vm9, %v2636_v63, %v1765_v27 }
 0xfab   :  { %v1774_v19 = vsel %vm1771_vm3, %v1773_v9, %v1769_v54 }
 0xfac   :  { %v1783_v33 = vmul.f32 %v2638_v60, %v1782_v21  ;;  %v1835_v59 = vmul.f32 %v1833_v16, %v1774_v19 }
 0xfae   :  { %v1784_v39 = vadd.f32 %v2638_v60, %v1783_v33  ;;  %v1836_v51 = vadd.f32 %v1835_v59, %v1813_v3 }
 0xfb0   :  { %v1788_v34 = vsel %vm1787_vm1, %v2638_v60, %v1784_v39  ;;  %2639 = vtanh.f32 %v1836_v51 }
 0xfb1   :  { %v1793_v42 = vsel %vm1790_vm7, %v1792_v48, %v1788_v34 }
 0xfb2   :  { %v1838_v35 = vsub.f32 1.0, %v1793_v42  ;;  %v1840_v38 = vmul.f32 %v1793_v42, %v3576_v61 }
 0xfb6   :  { %v2640_v63 = vpop.eup %2639 }
 0xfb7   :  { %v1839_v56 = vmul.f32 %v2640_v63, %v1838_v35 }
 0xfb9   :  { %v3706_v27 = vadd.f32 %v1840_v38, %v1839_v56 }
 0xfbb   :  { %2517 = vmatmul.msk.f32.vlgmr.msra.gmra.mxu2 %vm163_vm2, %v3706_v27  ;;  %2524 = vmatmul.msk.f32.vlgmr.msrb.gmra.mxu1 %vm163_vm2, %v3706_v27 }
 0xfbc   :  { %2119 = vmatpush.msra.mxu2 %v3585_v26  ;;  %2229 = vmatpush.msrb.mxu1 %v3442_v62 }
 0xfbe   :  { %2120 = vmatpush.msra.mxu2 %v3592_v4  ;;  %2230 = vmatpush.msrb.mxu1 %v3446_v17 }
 0xfc0   :  { %2121 = vmatpush.msra.mxu2 %v3599_v24  ;;  %2231 = vmatpush.msrb.mxu1 %v3450_v12 }
 0xfc2   :  { %2122 = vmatpush.msra.mxu2 %v3606_v52  ;;  %2232 = vmatpush.msrb.mxu1 %v3454_v1 }
 0xfc3   :  { %2530 = vmatmul.msk.f32.vlgmr.msra.gmra.mxu1 %vm163_vm2, %v3706_v27 }
 0xfc4   :  { %2351 = vmatpush.msra.mxu1 %v3459_v8  ;;  %v1894_v8 = vstv %s1893_s1 }
 0xfc5   :  { %vm1895_vm13 = vcmp.eq.s32.totalorder %v1894_v8, 1 }
 0xfc6   :  { %2352 = vmatpush.msra.mxu1 %v3462_v10  ;;  %v1926_v10 = vstv %s1925_s16 }
 0xfc7   :  { %vm3737_vm15 = vcmp.eq.s32.totalorder %v1926_v10, 1 }
 0xfc8   :  { %2353 = vmatpush.msra.mxu1 %v3465_v11  ;;  %v1892_v11 = vstv %s1890_s18 }
 0xfca   :  { %2354 = vmatpush.msra.mxu1 %v3468_v13 }
0x103e   :  { %v1862_v39 = vpop.f32.mrf.mxu2 }
0x103f   :  { %v3727_v48 = vadd.f32 %v3619_v44, %v1862_v39 }
0x1041   :  { %v1865_v62 = vsel %vm553_vm5, %v3727_v48, -inf }
0x1042   :  { %1866 = vmax.xlane.f32.xlu2 %v1865_v62 }
0x10b5   :  { %v3731_v17 = vpop.xlane.xlu2 %1866 }
0x10b6   :  { %vm1882_vm12 = vcmp.eq.f32.partialorder %v3727_v48, %v3731_v17 }
0x10b7   :  { %v1883_v12 = vsel %vm1882_vm12, %v3206_v43, -16.0 }
0x10b8   :  { %v1884_v1 = vsel %vm553_vm5, %v1883_v12, -inf }
0x10b9   :  { %1885 = vmax.xlane.f32.xlu1 %v1884_v1 }
0x112c   :  { %v1886_v13 = vpop.xlane.xlu1 %1885 }
0x112d   :  { %v1887_v59 = vsub.f32 0.0, %v1886_v13 }
0x112f   :  { %v1896_v33 = vsel %vm1895_vm13, %v1892_v11, %v1887_v59  ;;  %vm3741_vm8 = vcmp.eq.f32.partialorder %v1887_v59, 1.0 }
0x1130   :  { %vm1897_vm9 = vcmp.eq.f32.partialorder %v3203_v29, %v1896_v33  ;;  %vm1928_vm3 = vmand %vm3737_vm15, %vm3741_vm8 }
0x1131   :  { %v2520_v60 = vsel %vm1897_vm9, 1.0, %v3927_v14 }
0x1132   :  { %2521 = vmatmul.msk.f32.vlgmr.msra.gmra.mxu3 %vm131_vm0, %v2520_v60 }
0x1133   :  { %2179 = vmatpush.msra.mxu3 %v3644_v57 }
0x1135   :  { %2180 = vmatpush.msra.mxu3 %v3501_v55 }
0x113a   :  { %2526 = vmatmul.msk.f32.vlgmr.msrb.gmra.mxu3 %vm163_vm2, %v3706_v27 }
0x113b   :  { %2271 = vmatpush.msrb.mxu3 %v3391_v23 }
0x113d   :  { %2272 = vmatpush.msrb.mxu3 %v3507_v58 }
0x113f   :  { %2273 = vmatpush.msrb.mxu3 %v3510_v22 }
0x1141   :  { %2274 = vmatpush.msrb.mxu3 %v3513_v28 }
0x11b5   :  { %v1920_v19 = vpop.f32.mrf.mxu3 }
0x11b6   :  { %2523 = vmatmul.msk.f32.vlgmr.msrb.gmra.mxu0 %vm163_vm2, %v1920_v19  ;;  %2525 = vmatmul.msk.f32.vlgmr.msrb.gmra.mxu2 %vm163_vm2, %v1920_v19 }
0x11b7   :  { %2209 = vmatpush.msrb.mxu0 %v3399_v6  ;;  %2251 = vmatpush.msrb.mxu2 %v3402_v47  ;;  %v1972_v47 = vpop.f32.mrf.mxu1 }
0x11b9   :  { %2210 = vmatpush.msrb.mxu0 %v3405_v30  ;;  %2252 = vmatpush.msrb.mxu2 %v3408_v41 }
0x11bb   :  { %2211 = vmatpush.msrb.mxu0 %v3411_v46  ;;  %2253 = vmatpush.msrb.mxu2 %v3414_v50 }
0x11bd   :  { %2212 = vmatpush.msrb.mxu0 %v3417_v31  ;;  %2254 = vmatpush.msrb.mxu2 %v3420_v32  ;;  %v2014_v32 = vpop.f32.mrf.mxu3 }
0x11be   :  { %2529 = vmatmul.msk.f32.vlgmr.msra.gmra.mxu0 %vm163_vm2, %v1920_v19 }
0x11bf   :  { %2331 = vmatpush.msra.mxu0 %v3527_v18  ;;  %v2094_v54 = vpop.f32.mrf.mxu1 }
0x11c0   :  { %v2095_v42 = vadd.f32 %v3566_v37, %v2094_v54 }
0x11c1   :  { %2332 = vmatpush.msra.mxu0 %v3530_v5 }
0x11c3   :  { %2333 = vmatpush.msra.mxu0 %v3533_v2 }
0x11c5   :  { %2334 = vmatpush.msra.mxu0 %v3536_v0 }
0x1233   :  { %v1952_v23 = vpop.f32.mrf.mxu0 }
0x1234   :  { %v1953_v6 = vadd.f32 %v3542_v36, %v1952_v23 }
0x1236   :  { %v1975_v30 = vadd.f32 %v1972_v47, %v1953_v6 }
0x1238   :  { %v1976_v41 = vadd.f32 %v3548_v45, %v1975_v30 }
0x1239   :  { %v1994_v46 = vpop.f32.mrf.mxu2 }
0x123a   :  { %v2527_v50 = vmul.f32 -1.442695, %v1976_v41  ;;  %v1995_v31 = vadd.f32 %v3554_v20, %v1994_v46  ;;  %v3956_v41 = vld [vmem:[#allocation21_spill] sm:$0xff]  ;;  %v3957_v46 = vld [vmem:[#allocation18_spill] sm:$0xff] }
0x123b   :  { %v2074_v51 = vpop.f32.mrf.mxu0 }
0x123c   :  { %2641 = vpow2.f32 %v2527_v50  ;;  %v2017_v55 = vadd.f32 %v2014_v32, %v1995_v31  ;;  %v2075_v38 = vadd.f32 %v3572_v49, %v2074_v51 }
0x123e   :  { %v2018_v58 = vadd.f32 %v3560_v15, %v2017_v55 }
0x1240   :  { %v2528_v22 = vmul.f32 -1.442695, %v2018_v58  ;;  %v3958_v58 = vld [vmem:[#allocation20_spill] sm:$0xff] }
0x1242   :  { %v2642_v28 = vpop.eup %2641  ;;  %2643 = vpow2.f32 %v2528_v22  ;;  %v3959_v22 = vld [vmem:[#allocation19_spill] sm:$0xff] }
0x1243   :  { %v2022_v18 = vadd.f32 1.0, %v2642_v28  ;;  %v557_v28 = vsub.f32 %v3959_v22, %v3958_v58 }
0x1245   :  { %2645 = vrcp.f32 %v2022_v18  ;;  %v2034_v53 = vand.u32 2147483648, %v2022_v18  ;;  %v2032_v16 = vand.u32 2147483647, %v2022_v18  ;;  %vm2028_vm14 = vweird.f32 %v2022_v18 }
0x1247   :  { %v2035_v34 = vor.u32 1.1754944e-38, %v2034_v53  ;;  %vm2033_vm7 = vcmp.eq.f32.partialorder %v2032_v16, 8.507059e+37 }
0x1248   :  { %v2644_v5 = vpop.eup %2643 }
0x1249   :  { %v2041_v2 = vadd.f32 1.0, %v2644_v5  ;;  %v558_v5 = vmul.f32 1.442695, %v557_v28 }
0x124b   :  { %v2646_v0 = vpop.eup %2645  ;;  %2647 = vrcp.f32 %v2041_v2  ;;  %v2053_v62 = vand.u32 2147483648, %v2041_v2  ;;  %v2051_v1 = vand.u32 2147483647, %v2041_v2  ;;  %vm2047_vm13 = vweird.f32 %v2041_v2 }
0x124c   :  { %v2024_v57 = vmul.f32 %v2646_v0, %v2022_v18  ;;  %vm2029_vm10 = vweird.f32 %v2646_v0 }
0x124d   :  { %vm2030_vm1 = vmor %vm2028_vm14, %vm2029_vm10  ;;  %v2054_v13 = vor.u32 1.1754944e-38, %v2053_v62  ;;  %vm2052_vm10 = vcmp.eq.f32.partialorder %v2051_v1, 8.507059e+37 }
0x124e   :  { %v2025_v25 = vsub.f32 1.0, %v2024_v57  ;;  %v2188_v57 = vstv %s2187_s17 }
0x1250   :  { %v2026_v9 = vmul.f32 %v2646_v0, %v2025_v25  ;;  %v2154_v25 = vstv %s2152_s19 }
0x1251   :  { %v2648_v21 = vpop.eup %2647 }
0x1252   :  { %v2043_v3 = vmul.f32 %v2648_v21, %v2041_v2  ;;  %v2027_v7 = vadd.f32 %v2646_v0, %v2026_v9  ;;  %vm2048_vm12 = vweird.f32 %v2648_v21 }
0x1253   :  { %vm2049_vm9 = vmor %vm2047_vm13, %vm2048_vm12 }
0x1254   :  { %v2044_v35 = vsub.f32 1.0, %v2043_v3  ;;  %v2031_v63 = vsel %vm2030_vm1, %v2646_v0, %v2027_v7 }
0x1255   :  { %v2036_v56 = vsel %vm2033_vm7, %v2035_v34, %v2031_v63  ;;  %vm3814_vm7 = vcmp.eq.s32.totalorder %v2188_v57, 1 }
0x1256   :  { %v2045_v39 = vmul.f32 %v2648_v21, %v2044_v35  ;;  %v2097_v12 = vmul.f32 %v2095_v42, %v2036_v56 }
0x1258   :  { %v2046_v8 = vadd.f32 %v2648_v21, %v2045_v39  ;;  %v2098_v10 = vadd.f32 %v2097_v12, %v2075_v38  ;;  %v2508_v38 = vsel %vm1666_vm11, 1.0, %v3927_v14  ;;  %v3967_v12 = vld [vmem:[#allocation28_spill] sm:$0xff] }
0x1259   :  { %v3840_v1 = vmax.f32 %v3967_v12, %v2508_v38 }
0x125a   :  { %v2050_v11 = vsel %vm2049_vm9, %v2648_v21, %v2046_v8  ;;  %2649 = vtanh.f32 %v2098_v10 }
0x125b   :  { %v2055_v59 = vsel %vm2052_vm10, %v2054_v13, %v2050_v11 }
0x125c   :  { %v2100_v33 = vsub.f32 1.0, %v2055_v59  ;;  %v2102_v23 = vmul.f32 %v2055_v59, %v3706_v27 }
0x1260   :  { %v2650_v60 = vpop.eup %2649 }
0x1261   :  { %v2101_v19 = vmul.f32 %v2650_v60, %v2100_v33 }
0x1263   :  { %v3782_v6 = vadd.f32 %v2102_v23, %v2101_v19 }
0x1265   :  { %2531 = vmatmul.msk.f32.vlgmr.msra.gmra.mxu2 %vm163_vm2, %v3782_v6  ;;  %2538 = vmatmul.msk.f32.vlgmr.msrb.gmra.mxu1 %vm163_vm2, %v3782_v6 }
0x1266   :  { %2381 = vmatpush.msra.mxu2 %v3585_v26  ;;  %v1082_v26 = vsub.f32 %v3957_v46, %v3956_v41 }
0x1268   :  { %2382 = vmatpush.msra.mxu2 %v3592_v4  ;;  %v1083_v50 = vmul.f32 1.442695, %v1082_v26 }
0x126a   :  { %2383 = vmatpush.msra.mxu2 %v3599_v24  ;;  %2651 = vpow2.f32 %v1083_v50  ;;  %v1868_v24 = vsub.f32 %v3727_v48, %v3731_v17  ;;  %v2156_v17 = vstv %s2155_s15 }
0x126b   :  { %vm2157_vm1 = vcmp.eq.s32.totalorder %v2156_v17, 1 }
0x126c   :  { %2384 = vmatpush.msra.mxu2 %v3606_v52  ;;  %v1869_v32 = vmul.f32 1.442695, %v1868_v24 }
0x126d   :  { %2544 = vmatmul.msk.f32.vlgmr.msra.gmra.mxu1 %vm163_vm2, %v3782_v6 }
0x126e   :  { %2653 = vpow2.f32 %v1869_v32 }
0x126f   :  { %2655 = vpow2.f32 %v558_v5 }
0x1270   :  { %v2652_v55 = vpop.eup %2651 }
0x1271   :  { %v1085_v18 = vsel %vm553_vm5, %v2652_v55, 0.0 }
0x1274   :  { %v2654_v2 = vpop.eup %2653 }
0x1275   :  { %v1871_v0 = vsel %vm553_vm5, %v2654_v2, 0.0  ;;  %v2656_v48 = vpop.eup %2655 }
0x12e8   :  { %v2124_v27 = vpop.f32.mrf.mxu2 }
0x12e9   :  { %v3795_v47 = vadd.f32 %v3619_v44, %v2124_v27 }
0x12eb   :  { %v2127_v30 = vsel %vm553_vm5, %v3795_v47, -inf }
0x12ec   :  { %2128 = vmax.xlane.f32.xlu2 %v2127_v30  ;;  %v2234_v30 = vpop.f32.mrf.mxu1 }
0x135f   :  { %v3801_v4 = vpop.xlane.xlu2 %2128 }
0x1360   :  { %vm2144_vm14 = vcmp.eq.f32.partialorder %v3795_v47, %v3801_v4 }
0x1361   :  { %v2145_v52 = vsel %vm2144_vm14, %v3206_v43, -16.0  ;;  %v560_v43 = vsel %vm553_vm5, %v2656_v48, 0.0 }
0x1362   :  { %v2146_v31 = vsel %vm553_vm5, %v2145_v52, -inf }
0x1363   :  { %2147 = vmax.xlane.f32.xlu1 %v2146_v31 }
0x136b   :  { %1086 = vadd.xlane.f32.xlu1 %v1085_v18 }
0x1373   :  { %1872 = vadd.xlane.f32.xlu1 %v1871_v0 }
0x137b   :  { %561 = vadd.xlane.f32.xlu1 %v560_v43  ;;  %v2356_v43 = vpop.f32.mrf.mxu1 }
0x13d6   :  { %v2148_v53 = vpop.xlane.xlu1 %2147 }
0x13d7   :  { %v2149_v16 = vsub.f32 0.0, %v2148_v53  ;;  %v2357_v53 = vadd.f32 %v3566_v37, %v2356_v43 }
0x13d9   :  { %v2158_v21 = vsel %vm2157_vm1, %v2154_v25, %v2149_v16  ;;  %vm3818_vm12 = vcmp.eq.f32.partialorder %v2149_v16, 1.0 }
0x13da   :  { %vm2159_vm13 = vcmp.eq.f32.partialorder %v3203_v29, %v2158_v21  ;;  %vm2190_vm9 = vmand %vm3814_vm7, %vm3818_vm12  ;;  %v3964_v29 = vld [vmem:[#allocation26_spill] sm:$0xff] }
0x13db   :  { %v2534_v3 = vsel %vm2159_vm13, 1.0, %v3927_v14  ;;  %vm1091_vm10 = vcmp.gt.f32.partialorder %v3964_v29, 0.0  ;;  %v2536_v61 = vsel %vm2190_vm9, 1.0, %v3927_v14 }
0x13dc   :  { %2535 = vmatmul.msk.f32.vlgmr.msra.gmra.mxu3 %vm131_vm0, %v2534_v3  ;;  %vm1877_vm0 = vcmp.gt.f32.partialorder %v3840_v1, 0.0 }
0x13de   :  { %v1087_v7 = vpop.xlane.xlu1 %1086 }
0x13df   :  { %2657 = vlog2.f32 %v1087_v7 }
0x13e4   :  { %2540 = vmatmul.msk.f32.vlgmr.msrb.gmra.mxu3 %vm163_vm2, %v3782_v6 }
0x13e5   :  { %v2658_v51 = vpop.eup %2657 }
0x13e6   :  { %v1089_v34 = vmul.f32 0.6931472, %v2658_v51  ;;  %v1873_v42 = vpop.xlane.xlu1 %1872 }
0x13e7   :  { %2659 = vlog2.f32 %v1873_v42 }
0x13e8   :  { %v1090_v35 = vsub.f32 %v1082_v26, %v1089_v34 }
0x13ea   :  { %v1094_v39 = vsel %vm1091_vm10, 0.0, %v1090_v35 }
0x13eb   :  { %1095 = vst.msk [vmem:[#allocation12 + $0x2] sm:$0x1] %vm553_vm5, %v1094_v39 }
0x13ed   :  { %v2660_v62 = vpop.eup %2659 }
0x13ee   :  { %v1875_v8 = vmul.f32 0.6931472, %v2660_v62  ;;  %v562_v10 = vpop.xlane.xlu1 %561 }
0x13ef   :  { %2661 = vlog2.f32 %v562_v10  ;;  %v3968_v10 = vld [vmem:[#allocation23_spill] sm:$0xff] }
0x13f0   :  { %v1876_v11 = vsub.f32 %v1868_v24, %v1875_v8 }
0x13f2   :  { %v1880_v13 = vsel %vm1877_vm0, 0.0, %v1876_v11  ;;  %v3969_v11 = vld [vmem:[#allocation22_spill] sm:$0xff] }
0x13f3   :  { %1881 = vst.msk [vmem:[#allocation12 + $0x5] sm:$0x1] %vm553_vm5, %v1880_v13  ;;  %v1344_v13 = vsub.f32 %v3969_v11, %v3968_v10 }
0x13f5   :  { %v2662_v59 = vpop.eup %2661 }
0x13f6   :  { %v564_v33 = vmul.f32 0.6931472, %v2662_v59  ;;  %v1345_v59 = vmul.f32 1.442695, %v1344_v13 }
0x13f8   :  { %v565_v60 = vsub.f32 %v557_v28, %v564_v33 }
0x13fa   :  { %570 = vst.msk [vmem:[#allocation12] sm:$0x1] %vm553_vm5, %v565_v60 }
0x145f   :  { %v2182_v19 = vpop.f32.mrf.mxu3 }
0x1460   :  { %2537 = vmatmul.msk.f32.vlgmr.msrb.gmra.mxu0 %vm163_vm2, %v2182_v19  ;;  %2539 = vmatmul.msk.f32.vlgmr.msrb.gmra.mxu2 %vm163_vm2, %v2182_v19 }
0x1467   :  { %v2276_v52 = vpop.f32.mrf.mxu3 }
0x1468   :  { %2543 = vmatmul.msk.f32.vlgmr.msra.gmra.mxu0 %vm163_vm2, %v2182_v19  ;;  %v2130_v19 = vsub.f32 %v3795_v47, %v3801_v4 }
0x14dd   :  { %v2214_v23 = vpop.f32.mrf.mxu0 }
0x14de   :  { %v2215_v27 = vadd.f32 %v3542_v36, %v2214_v23 }
0x14e0   :  { %v2237_v41 = vadd.f32 %v2234_v30, %v2215_v27  ;;  %v2131_v27 = vmul.f32 1.442695, %v2130_v19 }
0x14e2   :  { %v2238_v46 = vadd.f32 %v3548_v45, %v2237_v41 }
0x14e3   :  { %v2256_v26 = vpop.f32.mrf.mxu2 }
0x14e4   :  { %v2541_v50 = vmul.f32 -1.442695, %v2238_v46  ;;  %v2257_v24 = vadd.f32 %v3554_v20, %v2256_v26 }
0x14e6   :  { %2663 = vpow2.f32 %v2541_v50  ;;  %v2279_v31 = vadd.f32 %v2276_v52, %v2257_v24 }
0x14e8   :  { %v2280_v32 = vadd.f32 %v3560_v15, %v2279_v31  ;;  %v2336_v15 = vpop.f32.mrf.mxu0 }
0x14e9   :  { %v2337_v7 = vadd.f32 %v3572_v49, %v2336_v15 }
0x14ea   :  { %v2542_v55 = vmul.f32 -1.442695, %v2280_v32 }
0x14ec   :  { %v2664_v58 = vpop.eup %2663  ;;  %2665 = vpow2.f32 %v2542_v55 }
0x14ed   :  { %v2284_v22 = vadd.f32 1.0, %v2664_v58  ;;  %v3970_v58 = vld [vmem:[#allocation27_spill] sm:$0xff] }
0x14ef   :  { %2667 = vrcp.f32 %v2284_v22  ;;  %v2296_v2 = vand.u32 2147483648, %v2284_v22  ;;  %v2294_v20 = vand.u32 2147483647, %v2284_v22  ;;  %vm2290_vm6 = vweird.f32 %v2284_v22 }
0x14f1   :  { %v2297_v25 = vor.u32 1.1754944e-38, %v2296_v2  ;;  %vm2295_vm14 = vcmp.eq.f32.partialorder %v2294_v20, 8.507059e+37 }
0x14f2   :  { %v2666_v28 = vpop.eup %2665 }
0x14f3   :  { %v2303_v36 = vadd.f32 1.0, %v2666_v28 }
0x14f5   :  { %v2668_v18 = vpop.eup %2667  ;;  %2669 = vrcp.f32 %v2303_v36  ;;  %v2315_v34 = vand.u32 2147483648, %v2303_v36  ;;  %v2313_v35 = vand.u32 2147483647, %v2303_v36  ;;  %vm2309_vm13 = vweird.f32 %v2303_v36 }
0x14f6   :  { %v2286_v5 = vmul.f32 %v2668_v18, %v2284_v22  ;;  %vm2291_vm4 = vweird.f32 %v2668_v18  ;;  %v2522_v22 = vsel %vm1928_vm3, 1.0, %v3927_v14 }
0x14f7   :  { %vm2292_vm11 = vmor %vm2290_vm6, %vm2291_vm4  ;;  %v2316_v38 = vor.u32 1.1754944e-38, %v2315_v34  ;;  %vm2314_vm0 = vcmp.eq.f32.partialorder %v2313_v35, 8.507059e+37 }
0x14f8   :  { %v2287_v45 = vsub.f32 1.0, %v2286_v5 }
0x14fa   :  { %v2288_v0 = vmul.f32 %v2668_v18, %v2287_v45 }
0x14fb   :  { %v2670_v48 = vpop.eup %2669 }
0x14fc   :  { %v2305_v17 = vmul.f32 %v2670_v48, %v2303_v36  ;;  %v2289_v57 = vadd.f32 %v2668_v18, %v2288_v0  ;;  %vm2310_vm1 = vweird.f32 %v2670_v48 }
0x14fd   :  { %vm2311_vm10 = vmor %vm2309_vm13, %vm2310_vm1 }
0x14fe   :  { %v2306_v16 = vsub.f32 1.0, %v2305_v17  ;;  %v2293_v21 = vsel %vm2292_vm11, %v2668_v18, %v2289_v57  ;;  %v1931_v18 = vmax.f32 %v3840_v1, %v2522_v22 }
0x14ff   :  { %v2298_v3 = vsel %vm2295_vm14, %v2297_v25, %v2293_v21 }
0x1500   :  { %v2307_v51 = vmul.f32 %v2670_v48, %v2306_v16  ;;  %v2359_v42 = vmul.f32 %v2357_v53, %v2298_v3  ;;  %vm2139_vm4 = vcmp.gt.f32.partialorder %v1931_v18, 0.0  ;;  %v2193_v20 = vmax.f32 %v1931_v18, %v2536_v61 }
0x1502   :  { %v2308_v29 = vadd.f32 %v2670_v48, %v2307_v51  ;;  %v2360_v63 = vadd.f32 %v2359_v42, %v2337_v7  ;;  %vm2401_vm15 = vcmp.gt.f32.partialorder %v2193_v20, 0.0 }
0x1504   :  { %v2312_v56 = vsel %vm2311_vm10, %v2670_v48, %v2308_v29  ;;  %2671 = vtanh.f32 %v2360_v63 }
0x1505   :  { %v2317_v37 = vsel %vm2314_vm0, %v2316_v38, %v2312_v56  ;;  %2673 = vpow2.f32 %v1345_v59 }
0x1506   :  { %v2362_v39 = vsub.f32 1.0, %v2317_v37  ;;  %v2364_v8 = vmul.f32 %v2317_v37, %v3782_v6  ;;  %2675 = vpow2.f32 %v2131_v27 }
0x150a   :  { %v2672_v62 = vpop.eup %2671 }
0x150b   :  { %v2363_v12 = vmul.f32 %v2672_v62, %v2362_v39  ;;  %v2674_v30 = vpop.eup %2673 }
0x150c   :  { %v1347_v6 = vsel %vm553_vm5, %v2674_v30, 0.0  ;;  %v2676_v41 = vpop.eup %2675 }
0x150d   :  { %v2365_v49 = vadd.f32 %v2364_v8, %v2363_v12  ;;  %v2133_v46 = vsel %vm553_vm5, %v2676_v41, 0.0 }
0x150f   :  { %2545 = vmatmul.msk.f32.vlgmr.msra.gmra.mxu2 %vm163_vm2, %v2365_v49  ;;  %vm1353_vm2 = vcmp.gt.f32.partialorder %v3970_v58, 0.0 }
0x1592   :  { %v2386_v33 = vpop.f32.mrf.mxu2 }
0x1593   :  { %v2387_v60 = vadd.f32 %v3619_v44, %v2386_v33 }
0x1595   :  { %v2389_v23 = vsel %vm553_vm5, %v2387_v60, -inf }
0x1596   :  { %2390 = vmax.xlane.f32.xlu2 %v2389_v23 }
0x159e   :  { %1348 = vadd.xlane.f32.xlu2 %v1347_v6 }
0x15a6   :  { %2134 = vadd.xlane.f32.xlu2 %v2133_v46 }
0x1609   :  { %v2391_v26 = vpop.xlane.xlu2 %2390 }
0x160a   :  { %v2392_v50 = vsub.f32 %v2387_v60, %v2391_v26 }
0x160c   :  { %v2393_v44 = vmul.f32 1.442695, %v2392_v50 }
0x160e   :  { %2677 = vpow2.f32 %v2393_v44 }
0x1611   :  { %v1349_v24 = vpop.xlane.xlu2 %1348 }
0x1612   :  { %2679 = vlog2.f32 %v1349_v24 }
0x1614   :  { %v2678_v47 = vpop.eup %2677 }
0x1615   :  { %v2395_v4 = vsel %vm553_vm5, %v2678_v47, 0.0 }
0x1616   :  { %2396 = vadd.xlane.f32.xlu0 %v2395_v4 }
0x1618   :  { %v2680_v52 = vpop.eup %2679 }
0x1619   :  { %v1351_v31 = vmul.f32 0.6931472, %v2680_v52  ;;  %v2135_v32 = vpop.xlane.xlu2 %2134 }
0x161a   :  { %2681 = vlog2.f32 %v2135_v32 }
0x161b   :  { %v1352_v55 = vsub.f32 %v1344_v13, %v1351_v31 }
0x161d   :  { %v1356_v28 = vsel %vm1353_vm2, 0.0, %v1352_v55 }
0x161e   :  { %1357 = vst.msk [vmem:[#allocation12 + $0x3] sm:$0x1] %vm553_vm5, %v1356_v28 }
0x1620   :  { %v2682_v36 = vpop.eup %2681 }
0x1621   :  { %v2137_v5 = vmul.f32 0.6931472, %v2682_v36 }
0x1623   :  { %v2138_v45 = vsub.f32 %v2130_v19, %v2137_v5 }
0x1625   :  { %v2142_v2 = vsel %vm2139_vm4, 0.0, %v2138_v45 }
0x1626   :  { %2143 = vst.msk [vmem:[#allocation12 + $0x6] sm:$0x1] %vm553_vm5, %v2142_v2 }
0x1689   :  { %v2397_v0 = vpop.xlane.xlu0 %2396 }
0x168a   :  { %2683 = vlog2.f32 %v2397_v0 }
0x1690   :  { %v2684_v40 = vpop.eup %2683 }
0x1691   :  { %v2399_v48 = vmul.f32 0.6931472, %v2684_v40 }
0x1693   :  { %v2400_v1 = vsub.f32 %v2392_v50, %v2399_v48 }
0x1695   :  { %v2404_v43 = vsel %vm2401_vm15, 0.0, %v2400_v1 }
0x1696   :  { %2405 = vst.msk [vmem:[#allocation12 + $0x7] sm:$0x1] %vm553_vm5, %v2404_v43 }
0x1697   :  { %2416 = dma.vmem_to_hbm [thread:$0]  %s2412_s4, 128, %s2414_s11, [#allocation4]  }
0x1698   :  { %2850 = dma.done.wait [#allocation4], 128  }
0x1699   :  { %2851 = vsyncadd [#allocation4], 4294967168 }
0x169a   :  { %2421 = vsyncpa [#allocation3], 1 }
0x169b   :  { %2422 = vsyncpa [#allocation10], 1 }
0x169c   :  { %2423 = vsyncpa [#allocation4], 1 }
0x169d   :  { %2424 = vsyncpa [#allocation5], 1 }
0x169e   :  { %2425 = vsyncpa [#allocation7], 1 }

</bundles_post_ra>
